<compile_context>
chip_gen: v7x
topology: tpu7x:2x2x1
jax: 0.10.0
libtpu: 0.0.40
codegen_flags: <defaults>
</compile_context>

<pallas_src>
import jax
import jax.numpy as jnp
from jax.experimental import pallas as pl
from jax.experimental.pallas import tpu as pltpu


# ----------------------------- fused Pallas kernel ---------------------------

def _make_block_kernel(H, W, has_w):
    """Fused CResidualBlock forward for one batch element (flat (H*W, C))."""
    HW = H * W
    HPW = (H + 2) * W   # rows of the vertically reflection-padded flat image

    def conv3x3_reflect(x2d, k_ref):
        """Reflection-pad-1 3x3 conv, no bias.  x2d: (HW, Cin) f32 value."""
        cout = k_ref.shape[2]
        # Vertical reflection pad: prepend image row 1, append image row H-2
        # (all slice sizes are multiples of 8 rows -> aligned concat).
        vp = jnp.concatenate(
            [x2d[W:2 * W], x2d, x2d[(H - 2) * W:(H - 1) * W]], axis=0)
        # Horizontal neighbours on the flat layout: dn[k]=vp[k-1], up[k]=vp[k+1].
        # The duplicated edge rows are never selected (only the reflected branch
        # of the jnp.where reads them at the image borders).
        dn = jnp.concatenate([vp[:1], vp[:-1]], axis=0)
        up = jnp.concatenate([vp[1:], vp[-1:]], axis=0)
        col = jax.lax.broadcasted_iota(jnp.int32, (HPW, 1), 0) % W
        left = jnp.where(col == 0, up, dn)        # x[r, j-1] with reflection
        right = jnp.where(col == W - 1, dn, up)   # x[r, j+1] with reflection
        variants = (left.astype(jnp.bfloat16),    # dj = 0
                    vp.astype(jnp.bfloat16),      # dj = 1
                    right.astype(jnp.bfloat16))   # dj = 2
        acc = jnp.zeros((HW, cout), jnp.float32)
        for dj, v in enumerate(variants):
            for di in range(3):
                tap = v[di * W: di * W + HW, :]           # aligned static slice
                acc = acc + jnp.dot(tap, k_ref[di * 3 + dj],
                                    preferred_element_type=jnp.float32)
        return acc

    def cin(h, cb, gamma, beta):
        # Conditional instance norm: (IN(h) + tanh(Linear(c))) * gamma + beta.
        # Single-pass biased stats over HW, eps=1e-5 (matches InstanceNorm2d).
        inv_n = 1.0 / HW
        mean = jnp.sum(h, axis=0, keepdims=True) * inv_n
        msq = jnp.sum(h * h, axis=0, keepdims=True) * inv_n
        var = msq - mean * mean
        hn = (h - mean) * jax.lax.rsqrt(var + 1e-5)
        return (hn + cb) * gamma + beta

    def kernel(*refs):
        if has_w:
            (x_ref, w_ref, cb1_ref, cb2_ref, g1_ref, b1_ref,
             g2_ref, b2_ref, k1_ref, k2_ref, o_ref) = refs
        else:
            (x_ref, cb1_ref, cb2_ref, g1_ref, b1_ref,
             g2_ref, b2_ref, k1_ref, k2_ref, o_ref) = refs
            w_ref = None
        x2d = x_ref[0]                                     # (HW, C) f32
        h = conv3x3_reflect(x2d, k1_ref)                   # c1 (bias=False)
        h = cin(h, cb1_ref[0], g1_ref[...], b1_ref[...])   # n1
        h = jnp.where(h >= 0.0, h, 0.2 * h)                # l1: LeakyReLU(0.2)
        y = conv3x3_reflect(h, k2_ref)                     # c2 (bias=False)
        y = cin(y, cb2_ref[0], g2_ref[...], b2_ref[...])   # n2
        if has_w:
            y = y * w_ref[0]                               # optional mask
        o_ref[0] = (x2d + y).astype(o_ref.dtype)           # residual add

    return kernel


# ------------------------------ python wrapper --------------------------------

def c_residual_block(params, x_nhwc, w_nhwc, c):
    """CResidualBlock.forward([x, w, c]) -> [x + y, w, c]   (NHWC layout)."""
    B, H, W, C = x_nhwc.shape
    HW = H * W

    # ConBias of the conditional norm: tanh(Linear(c)).  (B, C) is tiny, so it
    # stays in plain XLA; all heavy work is inside the single fused kernel.
    cb1 = jnp.tanh(c @ params["n1_cb_w"] + params["n1_cb_b"])
    cb2 = jnp.tanh(c @ params["n2_cb_w"] + params["n2_cb_b"])
    cb1 = cb1.reshape(B, 1, C).astype(jnp.float32)
    cb2 = cb2.reshape(B, 1, C).astype(jnp.float32)
    g1 = params["n1_gamma"].reshape(1, C).astype(jnp.float32)
    b1 = params["n1_beta"].reshape(1, C).astype(jnp.float32)
    g2 = params["n2_gamma"].reshape(1, C).astype(jnp.float32)
    b2 = params["n2_beta"].reshape(1, C).astype(jnp.float32)
    # Conv taps (9, Cin, Cout) as bf16 MXU operands (f32 accumulation in-kernel).
    k1 = params["c1_w"].astype(jnp.bfloat16)
    k2 = params["c2_w"].astype(jnp.bfloat16)

    x2 = x_nhwc.reshape(B, HW, C).astype(jnp.float32)
    has_w = w_nhwc is not None

    img_spec = pl.BlockSpec((1, HW, C), lambda b: (b, 0, 0))
    cb_spec = pl.BlockSpec((1, 1, C), lambda b: (b, 0, 0))
    par_spec = pl.BlockSpec((1, C), lambda b: (0, 0))
    tap_spec = pl.BlockSpec((9, C, C), lambda b: (0, 0, 0))

    inputs = [x2]
    in_specs = [img_spec]
    if has_w:
        inputs.append(w_nhwc.reshape(B, HW, C).astype(jnp.float32))
        in_specs.append(img_spec)
    inputs += [cb1, cb2, g1, b1, g2, b2, k1, k2]
    in_specs += [cb_spec, cb_spec, par_spec, par_spec, par_spec, par_spec,
                 tap_spec, tap_spec]

    out2 = pl.pallas_call(
        _make_block_kernel(H, W, has_w),
        out_shape=jax.ShapeDtypeStruct((B, HW, C), jnp.float32),
        grid=(B,),   # one image per step; B=2 balanced "parallel" steps (v7x 2 TCs)
        in_specs=in_specs,
        out_specs=img_spec,
        compiler_params=pltpu.CompilerParams(
            dimension_semantics=("parallel",)),
    )(*inputs)

    return out2.reshape(B, H, W, C), w_nhwc, c


# --------------------------- pure-JAX reference check -------------------------

def reference_forward(params, x, w, c):
    B, H, W, C = x.shape

    def conv(h, taps):
        hp = jnp.pad(h, ((0, 0), (1, 1), (1, 1), (0, 0)), mode="reflect")
        out = 0.0
        for di in range(3):
            for dj in range(3):
                win = hp[:, di:di + H, dj:dj + W, :]
                out = out + jnp.einsum("bhwc,co->bhwo", win, taps[di * 3 + dj])
        return out

    def cin(h, cbw, cbb, g, bta):
        cb = jnp.tanh(c @ cbw + cbb)[:, None, None, :]
        m = jnp.mean(h, axis=(1, 2), keepdims=True)
        v = jnp.mean((h - m) ** 2, axis=(1, 2), keepdims=True)
        return ((h - m) * jax.lax.rsqrt(v + 1e-5) + cb) * g + bta

    y = conv(x, params["c1_w"])
    y = cin(y, params["n1_cb_w"], params["n1_cb_b"],
            params["n1_gamma"], params["n1_beta"])
    y = jnp.where(y >= 0, y, 0.2 * y)
    y = conv(y, params["c2_w"])
    y = cin(y, params["n2_cb_w"], params["n2_cb_b"],
            params["n2_gamma"], params["n2_beta"])
    if w is not None:
        y = y * w
    return x + y


# --------------------------------- params ------------------------------------

def init_params(key, h_dim, c_dim):
    ks = jax.random.split(key, 4)

    def conv_taps(k, cin, cout):
        # Tap layout (kh*kw, Cin, Cout); tap t = di*3 + dj over the padded input
        # (== PyTorch Conv2d weight[co, ci, di, dj] transposed).
        return (jax.random.normal(k, (9, cin, cout), jnp.float32)
                / jnp.sqrt(9.0 * cin))

    def lin(k, cin, cout):
        return jax.random.normal(k, (cin, cout), jnp.float32) / jnp.sqrt(1.0 * cin)

    return {
        "c1_w": conv_taps(ks[0], h_dim, h_dim),
        "c2_w": conv_taps(ks[1], h_dim, h_dim),
        "n1_cb_w": lin(ks[2], c_dim, h_dim),
        "n1_cb_b": jnp.zeros((h_dim,), jnp.float32),
        "n1_gamma": jnp.ones((h_dim,), jnp.float32),
        "n1_beta": jnp.zeros((h_dim,), jnp.float32),
        "n2_cb_w": lin(ks[3], c_dim, h_dim),
        "n2_cb_b": jnp.zeros((h_dim,), jnp.float32),
        "n2_gamma": jnp.ones((h_dim,), jnp.float32),
        "n2_beta": jnp.zeros((h_dim,), jnp.float32),
    }


# ---------------------------------- main --------------------------------------

if __name__ == "__main__":
    key = jax.random.PRNGKey(0)
    kp, kx, kw, kc = jax.random.split(key, 4)

    B, h_dim, Hs, Ws, c_dim = 2, 32, 16, 16, 4
    params = init_params(kp, h_dim, c_dim)

    x_nchw = jax.random.normal(kx, (B, h_dim, Hs, Ws), jnp.float32)  # torch layout
    w_nchw = jax.nn.sigmoid(
        jax.random.normal(kw, (B, h_dim, Hs, Ws), jnp.float32))
    c = jax.random.normal(kc, (B, c_dim), jnp.float32)

    # NHWC inside the Pallas implementation (transpose once at the boundary).
    x = jnp.transpose(x_nchw, (0, 2, 3, 1))
    wmask = jnp.transpose(w_nchw, (0, 2, 3, 1))

    fwd = jax.jit(c_residual_block)

    # --- w provided -----------------------------------------------------------
    out, w_out, c_out = fwd(params, x, wmask, c)
    out = jax.block_until_ready(out)
    assert out.shape == (B, Hs, Ws, h_dim)
    ref = reference_forward(params, x, wmask, c)
    assert bool(jnp.allclose(out, ref, rtol=1e-1, atol=1e-1)), (
        "max abs diff: %f" % float(jnp.max(jnp.abs(out - ref))))

    # --- w is None branch of the module forward -------------------------------
    out_nw, _, _ = fwd(params, x, None, c)
    out_nw = jax.block_until_ready(out_nw)
    ref_nw = reference_forward(params, x, None, c)
    assert bool(jnp.allclose(out_nw, ref_nw, rtol=1e-1, atol=1e-1))

    print("KERNEL_OK")
</pallas_src>

<mosaic_0001>
module attributes {stable_mosaic.version = 11 : i64} {
  func.func @kernel(%arg0: i32, %arg1: memref<1x256x32xf32, #tpu.memory_space<vmem>>, %arg2: memref<1x256x32xf32, #tpu.memory_space<vmem>>, %arg3: memref<1x1x32xf32, #tpu.memory_space<vmem>>, %arg4: memref<1x1x32xf32, #tpu.memory_space<vmem>>, %arg5: memref<1x32xf32, #tpu.memory_space<vmem>>, %arg6: memref<1x32xf32, #tpu.memory_space<vmem>>, %arg7: memref<1x32xf32, #tpu.memory_space<vmem>>, %arg8: memref<1x32xf32, #tpu.memory_space<vmem>>, %arg9: memref<9x32x32xbf16, #tpu.memory_space<vmem>>, %arg10: memref<9x32x32xbf16, #tpu.memory_space<vmem>>, %arg11: memref<1x256x32xf32, #tpu.memory_space<vmem>>) attributes {dimension_semantics = [#tpu.dimension_semantics<parallel>], iteration_bounds = array<i64: 2>, scalar_prefetch = 0 : i64, scratch_operands = 0 : i64, tpu.core_type = #tpu.core_type<tc>, window_params = [{transform_indices = @transform_0, window_bounds = array<i64: 1, 256, 32>}, {transform_indices = @transform_1, window_bounds = array<i64: 1, 256, 32>}, {transform_indices = @transform_2, window_bounds = array<i64: 1, 1, 32>}, {transform_indices = @transform_3, window_bounds = array<i64: 1, 1, 32>}, {pipeline_mode = #tpu.pipeline_mode<synchronous>, transform_indices = @transform_4, window_bounds = array<i64: 1, 32>}, {pipeline_mode = #tpu.pipeline_mode<synchronous>, transform_indices = @transform_5, window_bounds = array<i64: 1, 32>}, {pipeline_mode = #tpu.pipeline_mode<synchronous>, transform_indices = @transform_6, window_bounds = array<i64: 1, 32>}, {pipeline_mode = #tpu.pipeline_mode<synchronous>, transform_indices = @transform_7, window_bounds = array<i64: 1, 32>}, {pipeline_mode = #tpu.pipeline_mode<synchronous>, transform_indices = @transform_8, window_bounds = array<i64: 9, 32, 32>}, {pipeline_mode = #tpu.pipeline_mode<synchronous>, transform_indices = @transform_9, window_bounds = array<i64: 9, 32, 32>}, {transform_indices = @transform_10, window_bounds = array<i64: 1, 256, 32>}]} {
    %c0 = arith.constant 0 : index
    %c0_0 = arith.constant 0 : index
    %c0_1 = arith.constant 0 : index
    %0 = vector.load %arg1[%c0, %c0_0, %c0_1] : memref<1x256x32xf32, #tpu.memory_space<vmem>>, vector<1x256x32xf32>
    %1 = vector.shape_cast %0 : vector<1x256x32xf32> to vector<256x32xf32>
    %2 = vector.extract_strided_slice %1 {offsets = [16, 0], sizes = [16, 32], strides = [1, 1]} : vector<256x32xf32> to vector<16x32xf32>
    %3 = vector.extract_strided_slice %1 {offsets = [224, 0], sizes = [16, 32], strides = [1, 1]} : vector<256x32xf32> to vector<16x32xf32>
    %4 = tpu.concatenate %2, %1, %3 in 0 : vector<16x32xf32>, vector<256x32xf32>, vector<16x32xf32> -> vector<288x32xf32>
    %5 = vector.extract_strided_slice %4 {offsets = [0, 0], sizes = [1, 32], strides = [1, 1]} : vector<288x32xf32> to vector<1x32xf32>
    %6 = vector.extract_strided_slice %4 {offsets = [0, 0], sizes = [287, 32], strides = [1, 1]} : vector<288x32xf32> to vector<287x32xf32>
    %7 = tpu.concatenate %5, %6 in 0 : vector<1x32xf32>, vector<287x32xf32> -> vector<288x32xf32>
    %8 = vector.extract_strided_slice %4 {offsets = [1, 0], sizes = [287, 32], strides = [1, 1]} : vector<288x32xf32> to vector<287x32xf32>
    %9 = vector.extract_strided_slice %4 {offsets = [287, 0], sizes = [1, 32], strides = [1, 1]} : vector<288x32xf32> to vector<1x32xf32>
    %10 = tpu.concatenate %8, %9 in 0 : vector<287x32xf32>, vector<1x32xf32> -> vector<288x32xf32>
    %11 = tpu.iota {dimensions = array<i32: 0>} : vector<288x1xi32>
    %c16_i32 = arith.constant 16 : i32
    %c0_i32 = arith.constant 0 : i32
    %12 = arith.cmpi eq, %c16_i32, %c0_i32 : i32
    %c1_i32 = arith.constant 1 : i32
    %13 = arith.select %12, %c1_i32, %c16_i32 : i32
    %14 = vector.broadcast %13 : i32 to vector<288x1xi32>
    %15 = arith.remsi %11, %14 : vector<288x1xi32>
    %c0_i32_2 = arith.constant 0 : i32
    %16 = vector.broadcast %c0_i32_2 : i32 to vector<288x1xi32>
    %17 = arith.cmpi ne, %15, %16 : vector<288x1xi32>
    %c0_i32_3 = arith.constant 0 : i32
    %18 = vector.broadcast %c0_i32_3 : i32 to vector<288x1xi32>
    %19 = arith.cmpi slt, %15, %18 : vector<288x1xi32>
    %c0_i32_4 = arith.constant 0 : i32
    %20 = arith.cmpi slt, %13, %c0_i32_4 : i32
    %21 = vector.broadcast %20 : i1 to vector<288x1xi1>
    %22 = vector.broadcast %21 : vector<288x1xi1> to vector<288x1xi1>
    %23 = arith.xori %19, %22 : vector<288x1xi1>
    %24 = arith.andi %23, %17 : vector<288x1xi1>
    %25 = vector.broadcast %13 : i32 to vector<288x1xi32>
    %26 = arith.addi %15, %25 : vector<288x1xi32>
    %27 = arith.select %24, %26, %15 : vector<288x1xi1>, vector<288x1xi32>
    %c0_i32_5 = arith.constant 0 : i32
    %28 = vector.broadcast %c0_i32_5 : i32 to vector<288x1xi32>
    %29 = arith.cmpi eq, %27, %28 : vector<288x1xi32>
    %30 = vector.shape_cast %29 : vector<288x1xi1> to vector<288x1xi1>
    %31 = vector.broadcast %30 : vector<288x1xi1> to vector<288x32xi1>
    %32 = arith.select %31, %10, %7 : vector<288x32xi1>, vector<288x32xf32>
    %c15_i32 = arith.constant 15 : i32
    %33 = vector.broadcast %c15_i32 : i32 to vector<288x1xi32>
    %34 = arith.cmpi eq, %27, %33 : vector<288x1xi32>
    %35 = vector.shape_cast %34 : vector<288x1xi1> to vector<288x1xi1>
    %36 = vector.broadcast %35 : vector<288x1xi1> to vector<288x32xi1>
    %37 = arith.select %36, %7, %10 : vector<288x32xi1>, vector<288x32xf32>
    %38 = arith.truncf %32 : vector<288x32xf32> to vector<288x32xbf16>
    %39 = arith.truncf %4 : vector<288x32xf32> to vector<288x32xbf16>
    %40 = arith.truncf %37 : vector<288x32xf32> to vector<288x32xbf16>
    %cst = arith.constant 0.000000e+00 : f32
    %41 = vector.broadcast %cst : f32 to vector<256x32xf32>
    %42 = vector.extract_strided_slice %38 {offsets = [0, 0], sizes = [256, 32], strides = [1, 1]} : vector<288x32xbf16> to vector<256x32xbf16>
    %c0_6 = arith.constant 0 : index
    %c0_7 = arith.constant 0 : index
    %c0_8 = arith.constant 0 : index
    %43 = vector.load %arg9[%c0_6, %c0_7, %c0_8] : memref<9x32x32xbf16, #tpu.memory_space<vmem>>, vector<1x32x32xbf16>
    %44 = vector.shape_cast %43 : vector<1x32x32xbf16> to vector<32x32xbf16>
    %cst_9 = arith.constant dense<0.000000e+00> : vector<256x32xf32>
    %45 = tpu.matmul %42, %44, %cst_9 {dimension_numbers = #tpu.dot_dimension_numbers<[1], [0], [0], [1], [0, 0, 1, 1], [], []>} : vector<256x32xbf16>, vector<32x32xbf16>, vector<256x32xf32> -> vector<256x32xf32>
    %46 = arith.addf %41, %45 : vector<256x32xf32>
    %47 = vector.extract_strided_slice %38 {offsets = [16, 0], sizes = [256, 32], strides = [1, 1]} : vector<288x32xbf16> to vector<256x32xbf16>
    %c3 = arith.constant 3 : index
    %c0_10 = arith.constant 0 : index
    %c0_11 = arith.constant 0 : index
    %48 = vector.load %arg9[%c3, %c0_10, %c0_11] : memref<9x32x32xbf16, #tpu.memory_space<vmem>>, vector<1x32x32xbf16>
    %49 = vector.shape_cast %48 : vector<1x32x32xbf16> to vector<32x32xbf16>
    %cst_12 = arith.constant dense<0.000000e+00> : vector<256x32xf32>
    %50 = tpu.matmul %47, %49, %cst_12 {dimension_numbers = #tpu.dot_dimension_numbers<[1], [0], [0], [1], [0, 0, 1, 1], [], []>} : vector<256x32xbf16>, vector<32x32xbf16>, vector<256x32xf32> -> vector<256x32xf32>
    %51 = arith.addf %46, %50 : vector<256x32xf32>
    %52 = vector.extract_strided_slice %38 {offsets = [32, 0], sizes = [256, 32], strides = [1, 1]} : vector<288x32xbf16> to vector<256x32xbf16>
    %c6 = arith.constant 6 : index
    %c0_13 = arith.constant 0 : index
    %c0_14 = arith.constant 0 : index
    %53 = vector.load %arg9[%c6, %c0_13, %c0_14] : memref<9x32x32xbf16, #tpu.memory_space<vmem>>, vector<1x32x32xbf16>
    %54 = vector.shape_cast %53 : vector<1x32x32xbf16> to vector<32x32xbf16>
    %cst_15 = arith.constant dense<0.000000e+00> : vector<256x32xf32>
    %55 = tpu.matmul %52, %54, %cst_15 {dimension_numbers = #tpu.dot_dimension_numbers<[1], [0], [0], [1], [0, 0, 1, 1], [], []>} : vector<256x32xbf16>, vector<32x32xbf16>, vector<256x32xf32> -> vector<256x32xf32>
    %56 = arith.addf %51, %55 : vector<256x32xf32>
    %57 = vector.extract_strided_slice %39 {offsets = [0, 0], sizes = [256, 32], strides = [1, 1]} : vector<288x32xbf16> to vector<256x32xbf16>
    %c1 = arith.constant 1 : index
    %c0_16 = arith.constant 0 : index
    %c0_17 = arith.constant 0 : index
    %58 = vector.load %arg9[%c1, %c0_16, %c0_17] : memref<9x32x32xbf16, #tpu.memory_space<vmem>>, vector<1x32x32xbf16>
    %59 = vector.shape_cast %58 : vector<1x32x32xbf16> to vector<32x32xbf16>
    %cst_18 = arith.constant dense<0.000000e+00> : vector<256x32xf32>
    %60 = tpu.matmul %57, %59, %cst_18 {dimension_numbers = #tpu.dot_dimension_numbers<[1], [0], [0], [1], [0, 0, 1, 1], [], []>} : vector<256x32xbf16>, vector<32x32xbf16>, vector<256x32xf32> -> vector<256x32xf32>
    %61 = arith.addf %56, %60 : vector<256x32xf32>
    %62 = vector.extract_strided_slice %39 {offsets = [16, 0], sizes = [256, 32], strides = [1, 1]} : vector<288x32xbf16> to vector<256x32xbf16>
    %c4 = arith.constant 4 : index
    %c0_19 = arith.constant 0 : index
    %c0_20 = arith.constant 0 : index
    %63 = vector.load %arg9[%c4, %c0_19, %c0_20] : memref<9x32x32xbf16, #tpu.memory_space<vmem>>, vector<1x32x32xbf16>
    %64 = vector.shape_cast %63 : vector<1x32x32xbf16> to vector<32x32xbf16>
    %cst_21 = arith.constant dense<0.000000e+00> : vector<256x32xf32>
    %65 = tpu.matmul %62, %64, %cst_21 {dimension_numbers = #tpu.dot_dimension_numbers<[1], [0], [0], [1], [0, 0, 1, 1], [], []>} : vector<256x32xbf16>, vector<32x32xbf16>, vector<256x32xf32> -> vector<256x32xf32>
    %66 = arith.addf %61, %65 : vector<256x32xf32>
    %67 = vector.extract_strided_slice %39 {offsets = [32, 0], sizes = [256, 32], strides = [1, 1]} : vector<288x32xbf16> to vector<256x32xbf16>
    %c7 = arith.constant 7 : index
    %c0_22 = arith.constant 0 : index
    %c0_23 = arith.constant 0 : index
    %68 = vector.load %arg9[%c7, %c0_22, %c0_23] : memref<9x32x32xbf16, #tpu.memory_space<vmem>>, vector<1x32x32xbf16>
    %69 = vector.shape_cast %68 : vector<1x32x32xbf16> to vector<32x32xbf16>
    %cst_24 = arith.constant dense<0.000000e+00> : vector<256x32xf32>
    %70 = tpu.matmul %67, %69, %cst_24 {dimension_numbers = #tpu.dot_dimension_numbers<[1], [0], [0], [1], [0, 0, 1, 1], [], []>} : vector<256x32xbf16>, vector<32x32xbf16>, vector<256x32xf32> -> vector<256x32xf32>
    %71 = arith.addf %66, %70 : vector<256x32xf32>
    %72 = vector.extract_strided_slice %40 {offsets = [0, 0], sizes = [256, 32], strides = [1, 1]} : vector<288x32xbf16> to vector<256x32xbf16>
    %c2 = arith.constant 2 : index
    %c0_25 = arith.constant 0 : index
    %c0_26 = arith.constant 0 : index
    %73 = vector.load %arg9[%c2, %c0_25, %c0_26] : memref<9x32x32xbf16, #tpu.memory_space<vmem>>, vector<1x32x32xbf16>
    %74 = vector.shape_cast %73 : vector<1x32x32xbf16> to vector<32x32xbf16>
    %cst_27 = arith.constant dense<0.000000e+00> : vector<256x32xf32>
    %75 = tpu.matmul %72, %74, %cst_27 {dimension_numbers = #tpu.dot_dimension_numbers<[1], [0], [0], [1], [0, 0, 1, 1], [], []>} : vector<256x32xbf16>, vector<32x32xbf16>, vector<256x32xf32> -> vector<256x32xf32>
    %76 = arith.addf %71, %75 : vector<256x32xf32>
    %77 = vector.extract_strided_slice %40 {offsets = [16, 0], sizes = [256, 32], strides = [1, 1]} : vector<288x32xbf16> to vector<256x32xbf16>
    %c5 = arith.constant 5 : index
    %c0_28 = arith.constant 0 : index
    %c0_29 = arith.constant 0 : index
    %78 = vector.load %arg9[%c5, %c0_28, %c0_29] : memref<9x32x32xbf16, #tpu.memory_space<vmem>>, vector<1x32x32xbf16>
    %79 = vector.shape_cast %78 : vector<1x32x32xbf16> to vector<32x32xbf16>
    %cst_30 = arith.constant dense<0.000000e+00> : vector<256x32xf32>
    %80 = tpu.matmul %77, %79, %cst_30 {dimension_numbers = #tpu.dot_dimension_numbers<[1], [0], [0], [1], [0, 0, 1, 1], [], []>} : vector<256x32xbf16>, vector<32x32xbf16>, vector<256x32xf32> -> vector<256x32xf32>
    %81 = arith.addf %76, %80 : vector<256x32xf32>
    %82 = vector.extract_strided_slice %40 {offsets = [32, 0], sizes = [256, 32], strides = [1, 1]} : vector<288x32xbf16> to vector<256x32xbf16>
    %c8 = arith.constant 8 : index
    %c0_31 = arith.constant 0 : index
    %c0_32 = arith.constant 0 : index
    %83 = vector.load %arg9[%c8, %c0_31, %c0_32] : memref<9x32x32xbf16, #tpu.memory_space<vmem>>, vector<1x32x32xbf16>
    %84 = vector.shape_cast %83 : vector<1x32x32xbf16> to vector<32x32xbf16>
    %cst_33 = arith.constant dense<0.000000e+00> : vector<256x32xf32>
    %85 = tpu.matmul %82, %84, %cst_33 {dimension_numbers = #tpu.dot_dimension_numbers<[1], [0], [0], [1], [0, 0, 1, 1], [], []>} : vector<256x32xbf16>, vector<32x32xbf16>, vector<256x32xf32> -> vector<256x32xf32>
    %86 = arith.addf %81, %85 : vector<256x32xf32>
    %c0_34 = arith.constant 0 : index
    %c0_35 = arith.constant 0 : index
    %c0_36 = arith.constant 0 : index
    %87 = vector.load %arg3[%c0_34, %c0_35, %c0_36] : memref<1x1x32xf32, #tpu.memory_space<vmem>>, vector<1x1x32xf32>
    %88 = vector.shape_cast %87 : vector<1x1x32xf32> to vector<1x32xf32>
    %c0_37 = arith.constant 0 : index
    %c0_38 = arith.constant 0 : index
    %89 = vector.load %arg5[%c0_37, %c0_38] : memref<1x32xf32, #tpu.memory_space<vmem>>, vector<1x32xf32>
    %c0_39 = arith.constant 0 : index
    %c0_40 = arith.constant 0 : index
    %90 = vector.load %arg6[%c0_39, %c0_40] : memref<1x32xf32, #tpu.memory_space<vmem>>, vector<1x32xf32>
    %cst_41 = arith.constant dense<0.000000e+00> : vector<32xf32>
    %91 = vector.multi_reduction <add>, %86, %cst_41 [0] : vector<256x32xf32> to vector<32xf32>
    %92 = vector.shape_cast %91 : vector<32xf32> to vector<1x32xf32>
    %cst_42 = arith.constant 3.906250e-03 : f32
    %93 = vector.broadcast %cst_42 : f32 to vector<1x32xf32>
    %94 = arith.mulf %92, %93 : vector<1x32xf32>
    %95 = arith.mulf %86, %86 : vector<256x32xf32>
    %cst_43 = arith.constant dense<0.000000e+00> : vector<32xf32>
    %96 = vector.multi_reduction <add>, %95, %cst_43 [0] : vector<256x32xf32> to vector<32xf32>
    %97 = vector.shape_cast %96 : vector<32xf32> to vector<1x32xf32>
    %cst_44 = arith.constant 3.906250e-03 : f32
    %98 = vector.broadcast %cst_44 : f32 to vector<1x32xf32>
    %99 = arith.mulf %97, %98 : vector<1x32xf32>
    %100 = arith.mulf %94, %94 : vector<1x32xf32>
    %101 = arith.subf %99, %100 : vector<1x32xf32>
    %102 = vector.broadcast %94 : vector<1x32xf32> to vector<256x32xf32>
    %103 = arith.subf %86, %102 : vector<256x32xf32>
    %cst_45 = arith.constant 9.99999974E-6 : f32
    %104 = vector.broadcast %cst_45 : f32 to vector<1x32xf32>
    %105 = arith.addf %101, %104 : vector<1x32xf32>
    %106 = math.rsqrt %105 : vector<1x32xf32>
    %107 = vector.broadcast %106 : vector<1x32xf32> to vector<256x32xf32>
    %108 = arith.mulf %103, %107 : vector<256x32xf32>
    %109 = vector.broadcast %88 : vector<1x32xf32> to vector<256x32xf32>
    %110 = arith.addf %108, %109 : vector<256x32xf32>
    %111 = vector.broadcast %89 : vector<1x32xf32> to vector<256x32xf32>
    %112 = arith.mulf %110, %111 : vector<256x32xf32>
    %113 = vector.broadcast %90 : vector<1x32xf32> to vector<256x32xf32>
    %114 = arith.addf %112, %113 : vector<256x32xf32>
    %cst_46 = arith.constant 0.000000e+00 : f32
    %115 = vector.broadcast %cst_46 : f32 to vector<256x32xf32>
    %116 = arith.cmpf oge, %114, %115 : vector<256x32xf32>
    %cst_47 = arith.constant 2.000000e-01 : f32
    %117 = vector.broadcast %cst_47 : f32 to vector<256x32xf32>
    %118 = arith.mulf %117, %114 : vector<256x32xf32>
    %119 = arith.select %116, %114, %118 : vector<256x32xi1>, vector<256x32xf32>
    %120 = vector.extract_strided_slice %119 {offsets = [16, 0], sizes = [16, 32], strides = [1, 1]} : vector<256x32xf32> to vector<16x32xf32>
    %121 = vector.extract_strided_slice %119 {offsets = [224, 0], sizes = [16, 32], strides = [1, 1]} : vector<256x32xf32> to vector<16x32xf32>
    %122 = tpu.concatenate %120, %119, %121 in 0 : vector<16x32xf32>, vector<256x32xf32>, vector<16x32xf32> -> vector<288x32xf32>
    %123 = vector.extract_strided_slice %122 {offsets = [0, 0], sizes = [1, 32], strides = [1, 1]} : vector<288x32xf32> to vector<1x32xf32>
    %124 = vector.extract_strided_slice %122 {offsets = [0, 0], sizes = [287, 32], strides = [1, 1]} : vector<288x32xf32> to vector<287x32xf32>
    %125 = tpu.concatenate %123, %124 in 0 : vector<1x32xf32>, vector<287x32xf32> -> vector<288x32xf32>
    %126 = vector.extract_strided_slice %122 {offsets = [1, 0], sizes = [287, 32], strides = [1, 1]} : vector<288x32xf32> to vector<287x32xf32>
    %127 = vector.extract_strided_slice %122 {offsets = [287, 0], sizes = [1, 32], strides = [1, 1]} : vector<288x32xf32> to vector<1x32xf32>
    %128 = tpu.concatenate %126, %127 in 0 : vector<287x32xf32>, vector<1x32xf32> -> vector<288x32xf32>
    %129 = tpu.iota {dimensions = array<i32: 0>} : vector<288x1xi32>
    %c16_i32_48 = arith.constant 16 : i32
    %c0_i32_49 = arith.constant 0 : i32
    %130 = arith.cmpi eq, %c16_i32_48, %c0_i32_49 : i32
    %c1_i32_50 = arith.constant 1 : i32
    %131 = arith.select %130, %c1_i32_50, %c16_i32_48 : i32
    %132 = vector.broadcast %131 : i32 to vector<288x1xi32>
    %133 = arith.remsi %129, %132 : vector<288x1xi32>
    %c0_i32_51 = arith.constant 0 : i32
    %134 = vector.broadcast %c0_i32_51 : i32 to vector<288x1xi32>
    %135 = arith.cmpi ne, %133, %134 : vector<288x1xi32>
    %c0_i32_52 = arith.constant 0 : i32
    %136 = vector.broadcast %c0_i32_52 : i32 to vector<288x1xi32>
    %137 = arith.cmpi slt, %133, %136 : vector<288x1xi32>
    %c0_i32_53 = arith.constant 0 : i32
    %138 = arith.cmpi slt, %131, %c0_i32_53 : i32
    %139 = vector.broadcast %138 : i1 to vector<288x1xi1>
    %140 = vector.broadcast %139 : vector<288x1xi1> to vector<288x1xi1>
    %141 = arith.xori %137, %140 : vector<288x1xi1>
    %142 = arith.andi %141, %135 : vector<288x1xi1>
    %143 = vector.broadcast %131 : i32 to vector<288x1xi32>
    %144 = arith.addi %133, %143 : vector<288x1xi32>
    %145 = arith.select %142, %144, %133 : vector<288x1xi1>, vector<288x1xi32>
    %c0_i32_54 = arith.constant 0 : i32
    %146 = vector.broadcast %c0_i32_54 : i32 to vector<288x1xi32>
    %147 = arith.cmpi eq, %145, %146 : vector<288x1xi32>
    %148 = vector.shape_cast %147 : vector<288x1xi1> to vector<288x1xi1>
    %149 = vector.broadcast %148 : vector<288x1xi1> to vector<288x32xi1>
    %150 = arith.select %149, %128, %125 : vector<288x32xi1>, vector<288x32xf32>
    %c15_i32_55 = arith.constant 15 : i32
    %151 = vector.broadcast %c15_i32_55 : i32 to vector<288x1xi32>
    %152 = arith.cmpi eq, %145, %151 : vector<288x1xi32>
    %153 = vector.shape_cast %152 : vector<288x1xi1> to vector<288x1xi1>
    %154 = vector.broadcast %153 : vector<288x1xi1> to vector<288x32xi1>
    %155 = arith.select %154, %125, %128 : vector<288x32xi1>, vector<288x32xf32>
    %156 = arith.truncf %150 : vector<288x32xf32> to vector<288x32xbf16>
    %157 = arith.truncf %122 : vector<288x32xf32> to vector<288x32xbf16>
    %158 = arith.truncf %155 : vector<288x32xf32> to vector<288x32xbf16>
    %cst_56 = arith.constant 0.000000e+00 : f32
    %159 = vector.broadcast %cst_56 : f32 to vector<256x32xf32>
    %160 = vector.extract_strided_slice %156 {offsets = [0, 0], sizes = [256, 32], strides = [1, 1]} : vector<288x32xbf16> to vector<256x32xbf16>
    %c0_57 = arith.constant 0 : index
    %c0_58 = arith.constant 0 : index
    %c0_59 = arith.constant 0 : index
    %161 = vector.load %arg10[%c0_57, %c0_58, %c0_59] : memref<9x32x32xbf16, #tpu.memory_space<vmem>>, vector<1x32x32xbf16>
    %162 = vector.shape_cast %161 : vector<1x32x32xbf16> to vector<32x32xbf16>
    %cst_60 = arith.constant dense<0.000000e+00> : vector<256x32xf32>
    %163 = tpu.matmul %160, %162, %cst_60 {dimension_numbers = #tpu.dot_dimension_numbers<[1], [0], [0], [1], [0, 0, 1, 1], [], []>} : vector<256x32xbf16>, vector<32x32xbf16>, vector<256x32xf32> -> vector<256x32xf32>
    %164 = arith.addf %159, %163 : vector<256x32xf32>
    %165 = vector.extract_strided_slice %156 {offsets = [16, 0], sizes = [256, 32], strides = [1, 1]} : vector<288x32xbf16> to vector<256x32xbf16>
    %c3_61 = arith.constant 3 : index
    %c0_62 = arith.constant 0 : index
    %c0_63 = arith.constant 0 : index
    %166 = vector.load %arg10[%c3_61, %c0_62, %c0_63] : memref<9x32x32xbf16, #tpu.memory_space<vmem>>, vector<1x32x32xbf16>
    %167 = vector.shape_cast %166 : vector<1x32x32xbf16> to vector<32x32xbf16>
    %cst_64 = arith.constant dense<0.000000e+00> : vector<256x32xf32>
    %168 = tpu.matmul %165, %167, %cst_64 {dimension_numbers = #tpu.dot_dimension_numbers<[1], [0], [0], [1], [0, 0, 1, 1], [], []>} : vector<256x32xbf16>, vector<32x32xbf16>, vector<256x32xf32> -> vector<256x32xf32>
    %169 = arith.addf %164, %168 : vector<256x32xf32>
    %170 = vector.extract_strided_slice %156 {offsets = [32, 0], sizes = [256, 32], strides = [1, 1]} : vector<288x32xbf16> to vector<256x32xbf16>
    %c6_65 = arith.constant 6 : index
    %c0_66 = arith.constant 0 : index
    %c0_67 = arith.constant 0 : index
    %171 = vector.load %arg10[%c6_65, %c0_66, %c0_67] : memref<9x32x32xbf16, #tpu.memory_space<vmem>>, vector<1x32x32xbf16>
    %172 = vector.shape_cast %171 : vector<1x32x32xbf16> to vector<32x32xbf16>
    %cst_68 = arith.constant dense<0.000000e+00> : vector<256x32xf32>
    %173 = tpu.matmul %170, %172, %cst_68 {dimension_numbers = #tpu.dot_dimension_numbers<[1], [0], [0], [1], [0, 0, 1, 1], [], []>} : vector<256x32xbf16>, vector<32x32xbf16>, vector<256x32xf32> -> vector<256x32xf32>
    %174 = arith.addf %169, %173 : vector<256x32xf32>
    %175 = vector.extract_strided_slice %157 {offsets = [0, 0], sizes = [256, 32], strides = [1, 1]} : vector<288x32xbf16> to vector<256x32xbf16>
    %c1_69 = arith.constant 1 : index
    %c0_70 = arith.constant 0 : index
    %c0_71 = arith.constant 0 : index
    %176 = vector.load %arg10[%c1_69, %c0_70, %c0_71] : memref<9x32x32xbf16, #tpu.memory_space<vmem>>, vector<1x32x32xbf16>
    %177 = vector.shape_cast %176 : vector<1x32x32xbf16> to vector<32x32xbf16>
    %cst_72 = arith.constant dense<0.000000e+00> : vector<256x32xf32>
    %178 = tpu.matmul %175, %177, %cst_72 {dimension_numbers = #tpu.dot_dimension_numbers<[1], [0], [0], [1], [0, 0, 1, 1], [], []>} : vector<256x32xbf16>, vector<32x32xbf16>, vector<256x32xf32> -> vector<256x32xf32>
    %179 = arith.addf %174, %178 : vector<256x32xf32>
    %180 = vector.extract_strided_slice %157 {offsets = [16, 0], sizes = [256, 32], strides = [1, 1]} : vector<288x32xbf16> to vector<256x32xbf16>
    %c4_73 = arith.constant 4 : index
    %c0_74 = arith.constant 0 : index
    %c0_75 = arith.constant 0 : index
    %181 = vector.load %arg10[%c4_73, %c0_74, %c0_75] : memref<9x32x32xbf16, #tpu.memory_space<vmem>>, vector<1x32x32xbf16>
    %182 = vector.shape_cast %181 : vector<1x32x32xbf16> to vector<32x32xbf16>
    %cst_76 = arith.constant dense<0.000000e+00> : vector<256x32xf32>
    %183 = tpu.matmul %180, %182, %cst_76 {dimension_numbers = #tpu.dot_dimension_numbers<[1], [0], [0], [1], [0, 0, 1, 1], [], []>} : vector<256x32xbf16>, vector<32x32xbf16>, vector<256x32xf32> -> vector<256x32xf32>
    %184 = arith.addf %179, %183 : vector<256x32xf32>
    %185 = vector.extract_strided_slice %157 {offsets = [32, 0], sizes = [256, 32], strides = [1, 1]} : vector<288x32xbf16> to vector<256x32xbf16>
    %c7_77 = arith.constant 7 : index
    %c0_78 = arith.constant 0 : index
    %c0_79 = arith.constant 0 : index
    %186 = vector.load %arg10[%c7_77, %c0_78, %c0_79] : memref<9x32x32xbf16, #tpu.memory_space<vmem>>, vector<1x32x32xbf16>
    %187 = vector.shape_cast %186 : vector<1x32x32xbf16> to vector<32x32xbf16>
    %cst_80 = arith.constant dense<0.000000e+00> : vector<256x32xf32>
    %188 = tpu.matmul %185, %187, %cst_80 {dimension_numbers = #tpu.dot_dimension_numbers<[1], [0], [0], [1], [0, 0, 1, 1], [], []>} : vector<256x32xbf16>, vector<32x32xbf16>, vector<256x32xf32> -> vector<256x32xf32>
    %189 = arith.addf %184, %188 : vector<256x32xf32>
    %190 = vector.extract_strided_slice %158 {offsets = [0, 0], sizes = [256, 32], strides = [1, 1]} : vector<288x32xbf16> to vector<256x32xbf16>
    %c2_81 = arith.constant 2 : index
    %c0_82 = arith.constant 0 : index
    %c0_83 = arith.constant 0 : index
    %191 = vector.load %arg10[%c2_81, %c0_82, %c0_83] : memref<9x32x32xbf16, #tpu.memory_space<vmem>>, vector<1x32x32xbf16>
    %192 = vector.shape_cast %191 : vector<1x32x32xbf16> to vector<32x32xbf16>
    %cst_84 = arith.constant dense<0.000000e+00> : vector<256x32xf32>
    %193 = tpu.matmul %190, %192, %cst_84 {dimension_numbers = #tpu.dot_dimension_numbers<[1], [0], [0], [1], [0, 0, 1, 1], [], []>} : vector<256x32xbf16>, vector<32x32xbf16>, vector<256x32xf32> -> vector<256x32xf32>
    %194 = arith.addf %189, %193 : vector<256x32xf32>
    %195 = vector.extract_strided_slice %158 {offsets = [16, 0], sizes = [256, 32], strides = [1, 1]} : vector<288x32xbf16> to vector<256x32xbf16>
    %c5_85 = arith.constant 5 : index
    %c0_86 = arith.constant 0 : index
    %c0_87 = arith.constant 0 : index
    %196 = vector.load %arg10[%c5_85, %c0_86, %c0_87] : memref<9x32x32xbf16, #tpu.memory_space<vmem>>, vector<1x32x32xbf16>
    %197 = vector.shape_cast %196 : vector<1x32x32xbf16> to vector<32x32xbf16>
    %cst_88 = arith.constant dense<0.000000e+00> : vector<256x32xf32>
    %198 = tpu.matmul %195, %197, %cst_88 {dimension_numbers = #tpu.dot_dimension_numbers<[1], [0], [0], [1], [0, 0, 1, 1], [], []>} : vector<256x32xbf16>, vector<32x32xbf16>, vector<256x32xf32> -> vector<256x32xf32>
    %199 = arith.addf %194, %198 : vector<256x32xf32>
    %200 = vector.extract_strided_slice %158 {offsets = [32, 0], sizes = [256, 32], strides = [1, 1]} : vector<288x32xbf16> to vector<256x32xbf16>
    %c8_89 = arith.constant 8 : index
    %c0_90 = arith.constant 0 : index
    %c0_91 = arith.constant 0 : index
    %201 = vector.load %arg10[%c8_89, %c0_90, %c0_91] : memref<9x32x32xbf16, #tpu.memory_space<vmem>>, vector<1x32x32xbf16>
    %202 = vector.shape_cast %201 : vector<1x32x32xbf16> to vector<32x32xbf16>
    %cst_92 = arith.constant dense<0.000000e+00> : vector<256x32xf32>
    %203 = tpu.matmul %200, %202, %cst_92 {dimension_numbers = #tpu.dot_dimension_numbers<[1], [0], [0], [1], [0, 0, 1, 1], [], []>} : vector<256x32xbf16>, vector<32x32xbf16>, vector<256x32xf32> -> vector<256x32xf32>
    %204 = arith.addf %199, %203 : vector<256x32xf32>
    %c0_93 = arith.constant 0 : index
    %c0_94 = arith.constant 0 : index
    %c0_95 = arith.constant 0 : index
    %205 = vector.load %arg4[%c0_93, %c0_94, %c0_95] : memref<1x1x32xf32, #tpu.memory_space<vmem>>, vector<1x1x32xf32>
    %206 = vector.shape_cast %205 : vector<1x1x32xf32> to vector<1x32xf32>
    %c0_96 = arith.constant 0 : index
    %c0_97 = arith.constant 0 : index
    %207 = vector.load %arg7[%c0_96, %c0_97] : memref<1x32xf32, #tpu.memory_space<vmem>>, vector<1x32xf32>
    %c0_98 = arith.constant 0 : index
    %c0_99 = arith.constant 0 : index
    %208 = vector.load %arg8[%c0_98, %c0_99] : memref<1x32xf32, #tpu.memory_space<vmem>>, vector<1x32xf32>
    %cst_100 = arith.constant dense<0.000000e+00> : vector<32xf32>
    %209 = vector.multi_reduction <add>, %204, %cst_100 [0] : vector<256x32xf32> to vector<32xf32>
    %210 = vector.shape_cast %209 : vector<32xf32> to vector<1x32xf32>
    %cst_101 = arith.constant 3.906250e-03 : f32
    %211 = vector.broadcast %cst_101 : f32 to vector<1x32xf32>
    %212 = arith.mulf %210, %211 : vector<1x32xf32>
    %213 = arith.mulf %204, %204 : vector<256x32xf32>
    %cst_102 = arith.constant dense<0.000000e+00> : vector<32xf32>
    %214 = vector.multi_reduction <add>, %213, %cst_102 [0] : vector<256x32xf32> to vector<32xf32>
    %215 = vector.shape_cast %214 : vector<32xf32> to vector<1x32xf32>
    %cst_103 = arith.constant 3.906250e-03 : f32
    %216 = vector.broadcast %cst_103 : f32 to vector<1x32xf32>
    %217 = arith.mulf %215, %216 : vector<1x32xf32>
    %218 = arith.mulf %212, %212 : vector<1x32xf32>
    %219 = arith.subf %217, %218 : vector<1x32xf32>
    %220 = vector.broadcast %212 : vector<1x32xf32> to vector<256x32xf32>
    %221 = arith.subf %204, %220 : vector<256x32xf32>
    %cst_104 = arith.constant 9.99999974E-6 : f32
    %222 = vector.broadcast %cst_104 : f32 to vector<1x32xf32>
    %223 = arith.addf %219, %222 : vector<1x32xf32>
    %224 = math.rsqrt %223 : vector<1x32xf32>
    %225 = vector.broadcast %224 : vector<1x32xf32> to vector<256x32xf32>
    %226 = arith.mulf %221, %225 : vector<256x32xf32>
    %227 = vector.broadcast %206 : vector<1x32xf32> to vector<256x32xf32>
    %228 = arith.addf %226, %227 : vector<256x32xf32>
    %229 = vector.broadcast %207 : vector<1x32xf32> to vector<256x32xf32>
    %230 = arith.mulf %228, %229 : vector<256x32xf32>
    %231 = vector.broadcast %208 : vector<1x32xf32> to vector<256x32xf32>
    %232 = arith.addf %230, %231 : vector<256x32xf32>
    %c0_105 = arith.constant 0 : index
    %c0_106 = arith.constant 0 : index
    %c0_107 = arith.constant 0 : index
    %233 = vector.load %arg2[%c0_105, %c0_106, %c0_107] : memref<1x256x32xf32, #tpu.memory_space<vmem>>, vector<1x256x32xf32>
    %234 = vector.shape_cast %233 : vector<1x256x32xf32> to vector<256x32xf32>
    %235 = arith.mulf %232, %234 : vector<256x32xf32>
    %236 = arith.addf %1, %235 : vector<256x32xf32>
    %c0_108 = arith.constant 0 : index
    %c0_109 = arith.constant 0 : index
    %c0_110 = arith.constant 0 : index
    %237 = vector.load %arg11[%c0_108, %c0_109, %c0_110] : memref<1x256x32xf32, #tpu.memory_space<vmem>>, vector<1x256x32xf32>
    %238 = vector.shape_cast %237 : vector<1x256x32xf32> to vector<256x32xf32>
    %239 = vector.shape_cast %236 : vector<256x32xf32> to vector<1x256x32xf32>
    tpu.vector_store %arg11[%c0_108, %c0_109, %c0_110], %239 {strides = array<i32>} : memref<1x256x32xf32, #tpu.memory_space<vmem>>, vector<1x256x32xf32>,
    return
  }
  func.func @transform_0(%arg0: i32) -> (i32, i32, i32) {
    %c0_i32 = arith.constant 0 : i32
    %c0_i32_0 = arith.constant 0 : i32
    %c0_i32_1 = arith.constant 0 : i32
    return %arg0, %c0_i32, %c0_i32_0 : i32, i32, i32
  }
  func.func @transform_1(%arg0: i32) -> (i32, i32, i32) {
    %c0_i32 = arith.constant 0 : i32
    %c0_i32_0 = arith.constant 0 : i32
    %c0_i32_1 = arith.constant 0 : i32
    return %arg0, %c0_i32, %c0_i32_0 : i32, i32, i32
  }
  func.func @transform_2(%arg0: i32) -> (i32, i32, i32) {
    %c0_i32 = arith.constant 0 : i32
    %c0_i32_0 = arith.constant 0 : i32
    %c0_i32_1 = arith.constant 0 : i32
    return %arg0, %c0_i32, %c0_i32_0 : i32, i32, i32
  }
  func.func @transform_3(%arg0: i32) -> (i32, i32, i32) {
    %c0_i32 = arith.constant 0 : i32
    %c0_i32_0 = arith.constant 0 : i32
    %c0_i32_1 = arith.constant 0 : i32
    return %arg0, %c0_i32, %c0_i32_0 : i32, i32, i32
  }
  func.func @transform_4(%arg0: i32) -> (i32, i32) {
    %c0_i32 = arith.constant 0 : i32
    %c0_i32_0 = arith.constant 0 : i32
    %c0_i32_1 = arith.constant 0 : i32
    return %c0_i32, %c0_i32_0 : i32, i32
  }
  func.func @transform_5(%arg0: i32) -> (i32, i32) {
    %c0_i32 = arith.constant 0 : i32
    %c0_i32_0 = arith.constant 0 : i32
    %c0_i32_1 = arith.constant 0 : i32
    return %c0_i32, %c0_i32_0 : i32, i32
  }
  func.func @transform_6(%arg0: i32) -> (i32, i32) {
    %c0_i32 = arith.constant 0 : i32
    %c0_i32_0 = arith.constant 0 : i32
    %c0_i32_1 = arith.constant 0 : i32
    return %c0_i32, %c0_i32_0 : i32, i32
  }
  func.func @transform_7(%arg0: i32) -> (i32, i32) {
    %c0_i32 = arith.constant 0 : i32
    %c0_i32_0 = arith.constant 0 : i32
    %c0_i32_1 = arith.constant 0 : i32
    return %c0_i32, %c0_i32_0 : i32, i32
  }
  func.func @transform_8(%arg0: i32) -> (i32, i32, i32) {
    %c0_i32 = arith.constant 0 : i32
    %c0_i32_0 = arith.constant 0 : i32
    %c0_i32_1 = arith.constant 0 : i32
    %c0_i32_2 = arith.constant 0 : i32
    return %c0_i32, %c0_i32_0, %c0_i32_1 : i32, i32, i32
  }
  func.func @transform_9(%arg0: i32) -> (i32, i32, i32) {
    %c0_i32 = arith.constant 0 : i32
    %c0_i32_0 = arith.constant 0 : i32
    %c0_i32_1 = arith.constant 0 : i32
    %c0_i32_2 = arith.constant 0 : i32
    return %c0_i32, %c0_i32_0, %c0_i32_1 : i32, i32, i32
  }
  func.func @transform_10(%arg0: i32) -> (i32, i32, i32) {
    %c0_i32 = arith.constant 0 : i32
    %c0_i32_0 = arith.constant 0 : i32
    %c0_i32_1 = arith.constant 0 : i32
    return %arg0, %c0_i32, %c0_i32_0 : i32, i32, i32
  }
}

</mosaic_0001>

<bundles_post_ra>
// kernel: c_residual_block.1
= control target key start
LH: loop header
LB: loop body
LE: loop exit
PB: predicated region body
PF: predicated region fallthrough
CT: control target
= control target key end

     0   :  { %15 = vsyncpa [#allocation3], 0  ;;  %s12549_s0 = inlined_call_operand.hbm [shape: f32[2,256,32], index: 0, kind: input, shape index: {}]   ;;  %s12550_s1 = inlined_call_operand.vmem [shape: f32[2,256,32], index: 1, kind: input, shape index: {}]   ;;  %s12551_s2 = inlined_call_operand.vmem [shape: f32[2,1,32], index: 2, kind: input, shape index: {}]   ;;  %s12552_s3 = inlined_call_operand.vmem [shape: f32[2,1,32], index: 3, kind: input, shape index: {}]   ;;  %s12553_s4 = inlined_call_operand.vmem [shape: f32[1,32], index: 4, kind: input, shape index: {}]   ;;  %s12554_s5 = inlined_call_operand.vmem [shape: f32[1,32], index: 5, kind: input, shape index: {}]   ;;  %s12555_s6 = inlined_call_operand.vmem [shape: f32[1,32], index: 6, kind: input, shape index: {}]   ;;  %s12556_s7 = inlined_call_operand.vmem [shape: f32[1,32], index: 7, kind: input, shape index: {}]   ;;  %s12557_s8 = inlined_call_operand.vmem [shape: bf16[9,32,32], index: 8, kind: input, shape index: {}]   ;;  %s12558_s9 = inlined_call_operand.vmem [shape: bf16[9,32,32], index: 9, kind: input, shape index: {}]   ;;  %s12559_s10 = inlined_call_operand.hbm [shape: f32[2,256,32], index: 10, kind: output, shape index: {}]  }
   0x1   :  { %17 = vsyncpa [#allocation3 + $0x1], 0 }
   0x2   :  { %18 = vsyncpa [#allocation4], 0 }
   0x3   :  { %20 = vsyncpa [#allocation4 + $0x1], 0  ;;  %s9054_s13 = smov 0   ;;  %s9056_s14 = smov 0  }
   0x4   :  { %s9058_s15 = smov 0   ;;  %s9060_s16 = smov 0  }
   0x5 LB: > { %s9075_s17 = sadd.s32 4294967295, %s8991_s16   ;;  %s6876_s18 = sadd.s32 4294967294, %s8991_s16   ;;  %s8991_s16 = sphi %s9060_s16, %s13662_s16   ;;  %s8987_s15 = sphi %s9058_s15, %s13661_s15   ;;  %s8983_s14 = sphi %s9056_s14, %s13660_s14   ;;  %s8979_s13 = sphi %s9054_s13, %s13659_s13  }
   0x6   : > { %s9079_s19 = sadd.s32 1, %s8991_s16   ;;  %s33_s20 = sadd.s32 1, %s8987_s15 }
   0x7   : > { %s30_s21 = ssub.s32 %s8991_s16, %s9079_s19  ;;  %p40_p0 = scmp.ne.s32.totalorder %s8987_s15, %s8983_s14 }
   0x8   : > { %p31_p1 = scmp.eq.s32.totalorder %s30_s21, 0  ;;  %p41_p2 = scmp.eq.s32.totalorder %s8991_s16, 0 }
   0x9   : > { %p46_p3 = scmp.ne.s32.totalorder %s8983_s14, %s8979_s13  ;;  %p47_p4 = scmp.eq.s32.totalorder %s9075_s17, 0 }
   0xa   : > { %s9091_s22 = scalar_select %p31_p1, %s8987_s15, %s33_s20  }
   0xb   : > { %p9093_p5 = por %p41_p2, %p40_p0  ;;  %p9097_p6 = por %p47_p4, %p46_p3 }
   0xc   : > { %12760 = sst [smem:[#allocation8_spill]] %s9091_s22  ;;  %p274_p7 = scmp.eq.s32.totalorder %s9075_s17, 1 }
   0xd   : > { %p280_p8 = scmp.eq.s32.totalorder %s6876_s18, 1  ;;  %p8785_p10 = scmp.lt.s32.totalorder %s8991_s16, 2 }
   0xe   : > { %p9104_p11 = por %p274_p7, %p40_p0  ;;  %s318_s27 = sand.u32 1, %s8987_s15  }
   0xf   : > { %p9108_p12 = por %p280_p8, %p46_p3  ;;  %s7286_s28 = sshll.u32 %s8991_s16, 12 }
  0x10   : > { %s12763_s25 = scalar_select %p9104_p11, 1, 0 }
  0x11   : > { %s12764_s26 = scalar_select %p9108_p12, 1, 0 }
  0x12   : > { %s6879_s29 = sshll.u32 %s318_s27, 8  ;;  %s9117_s12 = scalar_lea.hbm %s12549_s0, %s7286_s28 }
  0x13   : > { %s322_s18 = scalar_lea.vmem [#allocation2], %s6879_s29  ;;  %p9121_p13 = pnand %p8785_p10, %p9093_p5 }
  0x14   : > { %s329_s20 = sshll.u32 %s322_s18, 4  ;;  %s9127_s22 = scalar_lea.sflag [#allocation3], %s318_s27  ;;  %s9125_s20 = int_to_ptr.vmem [resolvable:$true] %s329_s20 }
  0x15   : > { %s8895_s30 = scalar_lea.hbm %s9117_s12, 4096  ;;  %p8897_p1 = pneg %p9121_p13 }
  0x16   : > { %p8896_p0 = scmp.ne.s32.totalorder %s9117_s12, %s8895_s30  ;;  %s8900_s29 = scalar_lea.hbm %s12549_s0, 8192 }
  0x17   : > { %p8901_p4 = scmp.lt.u32.totalorder %s9117_s12, %s12549_s0  ;;  %p8902_p5 = scmp.lt.u32.totalorder %s8900_s29, %s8895_s30 }
  0x18   : > { %p8898_p2 = pnand %p8897_p1, %p8896_p0  ;;  %p8904_p8 = scmp.lt.u32.totalorder %s8895_s30, %s9117_s12 }
  0x19   : > { %p8903_p7 = por %p8902_p5, %p8901_p4 }
  0x1a   : > { %p8899_p3 = pneg %p8898_p2 }
  0x1b   : > { %p8905_p10 = por %p8904_p8, %p8903_p7 }
  0x1d   : > { %p8906_p9 = pnand %p8905_p10, %p8899_p3 }
  0x1f   : > { %8909 = shalt.err (!%p8906_p9)
}
  0x20   : > { %s8910_s27 = scalar_lea.vmem %s9125_s20, 4096  ;;  %s8993_s28 = smov [#allocation2]  }
  0x21   : > { %p8911_p0 = scmp.ne.s32.totalorder %s9125_s20, %s8910_s27  ;;  %s8915_s23 = sshll.u32 %s8993_s28, 4  ;;  %s8916_s23 = int_to_ptr.vmem [resolvable:$false] %s8915_s23 }
  0x22   : > { %s8917_s11 = scalar_lea.vmem %s8916_s23, 8192  ;;  %p8918_p11 = scmp.lt.s32.totalorder %s9125_s20, %s8916_s23 }
  0x23   : > { %p8913_p2 = pnand %p8911_p0, %p8897_p1  ;;  %p8919_p4 = scmp.lt.s32.totalorder %s8917_s11, %s8910_s27 }
  0x25   : > { %p8914_p12 = pneg %p8913_p2  ;;  %p8920_p5 = por %p8919_p4, %p8918_p11 }
  0x27   : > { %p8921_p7 = pnand %p8920_p5, %p8914_p12 }
  0x29   : > { %8924 = shalt.err (!%p8921_p7)
}
  0x2a   : > { %s8994_s30 = smov 128   ;;  %s8995_s29 = smov 8  }
  0x2b   : > { %8780 = dma.hbm_to_vmem [thread:$0]  (!%p9121_p13), %s9117_s12, 4096, %s9125_s20, %s9127_s22, %s8994_s30, %s8994_s30, %s8995_s29  }
  0x2c   : > { %p6882_p9 = scmp.ge.s32.totalorder %s8991_s16, 1  ;;  %p357_p1 = scmp.lt.s32.totalorder %s8991_s16, 3 }
  0x2e   : > { %p358_p3 = pnand %p6882_p9, %p357_p1 }
  0x30   : > { %361 = sbr.rel (%p358_p3) target bundleno = 1888 (0x760), region = 60 }
  0x37   : > { %s9158_s18 = sand.u32 1, %s8983_s14  }
  0x38   : > { %s6883_s27 = sshll.u32 %s9158_s18, 8  ;;  %s364_s28 = scalar_lea.sflag [#allocation3], %s9158_s18 }
  0x39   : > { %s9164_s23 = scalar_lea.vmem [#allocation2], %s6883_s27 }
  0x3a   : > { %8970 = dma.done.wait (%p9097_p6), %s364_s28, 4096  }
  0x3b   : > { %8972 = vsyncadd (%p9097_p6), %s364_s28, 4294963200  ;;  %v693_v0 = vlaneseq  ;;  %vm12638_vm0 = vcmask 1040384   ;;  %vm12607_vm1 = vcmask 1046528   ;;  %vm12602_vm2 = vcmask 261120   ;;  %v8823_v14 = vld [vmem:[%s12557_s8 + $0x30] sm:$0xff]   ;;  %v8824_v16 = vld [vmem:[%s12557_s8 + $0x38] sm:$0xff]  }
  0x3c   : > { %v12766_v17 = vmov 0  ;;  %7613 = vmatprep.subr.bf16.mxu0 %v8823_v14  ;;  %v9200_v18 = vld [vmem:[%s9164_s23] sm:$0xff]  ;;  %v9203_v19 = vld [vmem:[%s9164_s23 + $0x8] sm:$0xff]  ;;  %v9206_v20 = vld [vmem:[%s9164_s23 + $0x10] sm:$0xff]  ;;  %v12769_v21 = vmov 0  ;;  %v12772_v22 = vmov 0 }
  0x3d   : > { %v9170_v1 = vshrl.u32 %v693_v0, 7  ;;  %v12775_v23 = vmov 0  ;;  %7614 = vmatpush3.bf16.msra.mxu0 %v8823_v14  ;;  %v9221_v24 = vld [vmem:[%s9164_s23 + $0x18] sm:$0xff]  ;;  %v495_v25 = vrot.slane %v9200_v18, 7  ;;  %v497_v26 = vrot.slane %v9203_v19, 7  ;;  %v8825_v29 = vld [vmem:[%s12557_s8] sm:$0xff]  }
  0x3e   : > { %v593_v27 = vrot.slane %v9206_v20, 1  ;;  %v12571_v28 = vrot.slane %v9200_v18, 1  ;;  %7615 = vmatprep.subr.bf16.mxu0 %v8824_v16  ;;  %v493_v30 = vrot.slane %v9221_v24, 7  ;;  %v598_v31 = vrot.slane %v9203_v19, 1  ;;  %v9236_v33 = vld [vmem:[%s9164_s23 + $0x20] sm:$0xff]  ;;  %v9254_v42 = vld [vmem:[%s9164_s23 + $0x28] sm:$0xff] }
  0x3f   : > { %v696_v2 = vadd.s32 16, %v9170_v1  ;;  %v697_v3 = vadd.s32 24, %v9170_v1  ;;  %v698_v4 = vadd.s32 32, %v9170_v1  ;;  %v700_v5 = vadd.s32 48, %v9170_v1  ;;  %v9257_v43 = vld [vmem:[%s9164_s23 + $0x30] sm:$0xff]  ;;  %v9270_v48 = vld [vmem:[%s9164_s23 + $0x38] sm:$0xff] }
  0x40   : > { %v9177_v6 = vadd.s32 64, %v9170_v1  ;;  %v9180_v7 = vadd.s32 80, %v9170_v1  ;;  %v9183_v8 = vadd.s32 96, %v9170_v1  ;;  %v9186_v9 = vadd.s32 112, %v9170_v1  ;;  %v9281_v53 = vld [vmem:[%s9164_s23 + $0x40] sm:$0xff]  ;;  %v9290_v58 = vld [vmem:[%s9164_s23 + $0x48] sm:$0xff] }
  0x41   : > { %v748_v10 = vand.u32 15, %v696_v2  ;;  %v755_v11 = vand.u32 15, %v697_v3  ;;  %v762_v12 = vand.u32 15, %v698_v4  ;;  %v776_v13 = vand.u32 15, %v700_v5  ;;  %7616 = vmatpush3.bf16.msra.mxu0 %v8824_v16  ;;  %v8826_v4 = vld [vmem:[%s12557_s8 + $0x8] sm:$0xff]   ;;  %p415_p6 = scmp.lt.s32.totalorder %s9075_s17, 1 }
  0x42   : > { %v790_v15 = vand.u32 15, %v9177_v6  ;;  %v9233_v32 = vrot.slane %v9206_v20, 7  ;;  %v498_v34 = vsel %vm12638_vm0, %v495_v25, %v497_v26  ;;  %v9240_v35 = vrot.slane %v9221_v24, 1  ;;  %7649 = vmatprep.subr.bf16.mxu0 %v8825_v29  ;;  %p13655_p12 = scmp.ne.s32.totalorder %s12763_s25, 0  ;;  %s8996_s12 = smov [#allocation5]  }
  0x43   : > { %vm9195_vm3 = vcmp.eq.s32.totalorder %v748_v10, 0  ;;  %vm9208_vm4 = vcmp.eq.s32.totalorder %v755_v11, 15  ;;  %vm9212_vm5 = vcmp.eq.s32.totalorder %v762_v12, 0  ;;  %vm9216_vm6 = vcmp.eq.s32.totalorder %v776_v13, 0  ;;  %v9333_v12 = vld [vmem:[%s9164_s23 + $0x50] sm:$0xff]  ;;  %v9336_v13 = vld [vmem:[%s9164_s23 + $0x58] sm:$0xff] }
  0x44   : > { %v12767_v17 = vsel %vm9195_vm3, 4294967295, %v12766_v17  ;;  %v12770_v21 = vsel %vm9208_vm4, 4294967295, %v12769_v21  ;;  %v12773_v22 = vsel %vm9212_vm5, 4294967295, %v12772_v22  ;;  %v12776_v23 = vsel %vm9216_vm6, 4294967295, %v12775_v23  ;;  %12778 = vst [vmem:[#allocation13_spill] sm:$0xff] %v9240_v35  ;;  %s10579_s30 = scalar_select %p415_p6, %s9075_s17, 1 }
  0x45   : > { %12768 = vst [vmem:[#allocation9_spill] sm:$0xff] %v12767_v17  ;;  %12771 = vst [vmem:[#allocation10_spill] sm:$0xff] %v12770_v21  ;;  %v500_v36 = vrot.slane %v9236_v33, 7  ;;  %v12570_v37 = vrot.slane %v9236_v33, 1  ;;  %v496_v38 = vsel %vm12638_vm0, %v493_v30, %v495_v25  ;;  %v599_v39 = vsel %vm12607_vm1, %v12571_v28, %v598_v31 }
  0x46   : > { %12774 = vst [vmem:[#allocation11_spill] sm:$0xff] %v12773_v22  ;;  %12777 = vst [vmem:[#allocation12_spill] sm:$0xff] %v12776_v23  ;;  %v600_v40 = vsel %vm12607_vm1, %v598_v31, %v593_v27  ;;  %v9251_v41 = vsel %vm12638_vm0, %v9233_v32, %v493_v30  ;;  %v1272_v44 = vsel %vm9195_vm3, %v599_v39, %v496_v38  ;;  %v502_v55 = vrot.slane %v9254_v42, 7  ;;  %s422_s22 = scalar_lea.vmem %s12551_s2, %s10579_s30  ;;  %s425_s11 = scalar_lea.vmem %s12552_s3, %s10579_s30 }
  0x47   : > { %v1417_v45 = vsel %vm9208_vm4, %v498_v34, %v600_v40  ;;  %v499_v46 = vsel %vm12638_vm0, %v497_v26, %v9233_v32  ;;  %v9267_v47 = vsel %vm12607_vm1, %v593_v27, %v9240_v35  ;;  %v9272_v49 = vpack.c.bf16 %v498_v34, %v1272_v44  ;;  %v9347_v26 = vld [vmem:[%s9164_s23 + $0x60] sm:$0xff]  ;;  %v9364_v40 = vld [vmem:[%s9164_s23 + $0x68] sm:$0xff]  ;;  %s7287_s29 = sshll.u32 %s10579_s30, 8 }
  0x48   : > { %v9274_v50 = vpack.c.bf16 %v1417_v45, %v599_v39  ;;  %v1274_v51 = vsel %vm9212_vm5, %v9267_v47, %v499_v46  ;;  %v501_v52 = vsel %vm12638_vm0, %v493_v30, %v500_v36  ;;  %v12568_v56 = vrot.slane %v9254_v42, 1  ;;  %s12223_s20 = scalar_lea.vmem %s12550_s1, %s7287_s29 }
  0x49   : > { %v9284_v54 = vpack.c.bf16 %v9251_v41, %v1274_v51  ;;  %v504_v57 = vrot.slane %v9257_v43, 7  ;;  %7617 = vmatprep.mubr.msk.bf16.mxu0 %vm12602_vm2, %v9272_v49  ;;  %v506_v59 = vrot.slane %v9270_v48, 7  ;;  %v12569_v60 = vrot.slane %v9257_v43, 1  ;;  %v9380_v51 = vld [vmem:[%s9164_s23 + $0x70] sm:$0xff] }
  0x4a   : > { %12779 = vst [vmem:[#allocation14_spill] sm:$0xff] %v9274_v50  ;;  %v12564_v61 = vrot.slane %v9270_v48, 1  ;;  %vm9297_vm7 = vcmp.eq.s32.totalorder %v790_v15, 0  ;;  %v12780_v62 = vmov 0  ;;  %v9304_v63 = vsel %vm12638_vm0, %v500_v36, %v502_v55 }
  0x4b   : > { %v12781_v62 = vsel %vm9297_vm7, 4294967295, %v12780_v62  ;;  %7618 = vmatmul.mubr.msk.bf16.vlgmr.msra.gmra.mrb[0].mxu0 %vm12602_vm2, %v9284_v54  ;;  %12783 = vst [vmem:[#allocation16_spill] sm:$0xff] %v9304_v63  ;;  %v9311_v0 = vsel %vm12607_vm1, %v12570_v37, %v12568_v56  ;;  %v505_v2 = vsel %vm12638_vm0, %v502_v55, %v504_v57  ;;  %v508_v3 = vrot.slane %v9281_v53, 7 }
  0x4c   : > { %12782 = vst [vmem:[#allocation15_spill] sm:$0xff] %v12781_v62  ;;  %12784 = vst [vmem:[#allocation17_spill] sm:$0xff] %v9311_v0  ;;  %7650 = vmatpush3.bf16.msra.mxu0 %v8825_v29  ;;  %v1276_v5 = vsel %vm9216_vm6, %v9311_v0, %v501_v52  ;;  %v9322_v6 = vsel %vm12638_vm0, %v504_v57, %v506_v59  ;;  %v9329_v10 = vsel %vm12607_vm1, %v12569_v60, %v12564_v61  ;;  %v12789_v44 = vmov 0 }
  0x4d   : > { %12785 = vst [vmem:[#allocation18_spill] sm:$0xff] %v9322_v6  ;;  %12786 = vst [vmem:[#allocation19_spill] sm:$0xff] %v9329_v10  ;;  %v510_v11 = vrot.slane %v9290_v58, 7  ;;  %v9339_v14 = vpack.c.bf16 %v9304_v63, %v1276_v5  ;;  %v1278_v15 = vsel %vm9297_vm7, %v9329_v10, %v505_v2  ;;  %v509_v16 = vsel %vm12638_vm0, %v506_v59, %v508_v3  ;;  %v9638_v63 = vld [vmem:[%s9164_s23 + $0xe8] sm:$0xff] }
  0x4e   : > { %v12565_v25 = vrot.slane %v9281_v53, 1  ;;  %7651 = vmatprep.subr.bf16.mxu0 %v8826_v4  ;;  %v9350_v27 = vpack.c.bf16 %v9322_v6, %v1278_v15  ;;  %v12562_v30 = vrot.slane %v9290_v58, 1  ;;  %v804_v31 = vand.u32 15, %v9180_v7  ;;  %12845 = vst [vmem:[#allocation49_spill] sm:$0xff] %v9638_v63 }
  0x4f   : > { %v9353_v29 = vsel %vm12638_vm0, %v508_v3, %v510_v11  ;;  %7621 = vmatprep.mubr.msk.bf16.mxu0 %vm12602_vm2, %v9339_v14  ;;  %v512_v34 = vrot.slane %v9333_v12, 7  ;;  %v514_v36 = vrot.slane %v9336_v13, 7  ;;  %v12563_v38 = vrot.slane %v9333_v12, 1 }
  0x50   : > { %12787 = vst [vmem:[#allocation20_spill] sm:$0xff] %v9353_v29  ;;  %v12561_v39 = vrot.slane %v9336_v13, 1  ;;  %v9371_v7 = vsel %vm12607_vm1, %v12565_v25, %v12562_v30  ;;  %vm9373_vm8 = vcmp.eq.s32.totalorder %v804_v31, 0  ;;  %v818_v45 = vand.u32 15, %v9183_v8  ;;  %7652 = vmatpush3.bf16.msra.mxu0 %v8826_v4  ;;  %v9396_v8 = vld [vmem:[%s12557_s8 + $0x60] sm:$0xff]   ;;  %v9407_v4 = vld [vmem:[%s9164_s23 + $0x78] sm:$0xff] }
  0x51   : > { %12788 = vst [vmem:[#allocation21_spill] sm:$0xff] %v9371_v7  ;;  %v12790_v44 = vsel %vm9373_vm8, 4294967295, %v12789_v44  ;;  %v516_v46 = vrot.slane %v9347_v26, 7  ;;  %v1280_v52 = vsel %vm9373_vm8, %v9371_v7, %v509_v16  ;;  %v513_v55 = vsel %vm12638_vm0, %v510_v11, %v512_v34  ;;  %7685 = vmatprep.subr.bf16.mxu0 %v9396_v8  ;;  %v9429_v30 = vld [vmem:[%s9164_s23 + $0x80] sm:$0xff]  ;;  %v9452_v25 = vld [vmem:[%s9164_s23 + $0x90] sm:$0xff] }
  0x52   : > { %12791 = vst [vmem:[#allocation22_spill] sm:$0xff] %v12790_v44  ;;  %v9391_v57 = vsel %vm12607_vm1, %v12563_v38, %v12561_v39  ;;  %v9399_v59 = vpack.c.bf16 %v9353_v29, %v1280_v52  ;;  %vm9401_vm9 = vcmp.eq.s32.totalorder %v818_v45, 0  ;;  %v12793_v2 = vmov 0 }
  0x53   : > { %12792 = vst [vmem:[#allocation23_spill] sm:$0xff] %v9391_v57  ;;  %v12794_v2 = vsel %vm9401_vm9, 4294967295, %v12793_v2  ;;  %v518_v3 = vrot.slane %v9364_v40, 7  ;;  %7622 = vmatmul.mubr.msk.bf16.gmra.mrb[4].mxu0 %vm12602_vm2, %v9350_v27  ;;  %v517_v5 = vsel %vm12638_vm0, %v514_v36, %v516_v46  ;;  %v12567_v11 = vrot.slane %v9347_v26, 1 }
  0x54   : > { %12795 = vst [vmem:[#allocation24_spill] sm:$0xff] %v12794_v2  ;;  %v12566_v15 = vrot.slane %v9364_v40, 1  ;;  %v832_v16 = vand.u32 15, %v9186_v9  ;;  %7625 = vmatprep.mubr.msk.bf16.mxu0 %vm12602_vm2, %v9399_v59  ;;  %v9419_v31 = vsel %vm12638_vm0, %v512_v34, %v514_v36  ;;  %v1282_v45 = vsel %vm9401_vm9, %v9391_v57, %v513_v55  ;;  %v9445_v55 = vld [vmem:[%s9164_s23 + $0x88] sm:$0xff]  ;;  %v9475_v2 = vld [vmem:[%s9164_s23 + $0x98] sm:$0xff] }
  0x55   : > { %12796 = vst [vmem:[#allocation25_spill] sm:$0xff] %v9419_v31  ;;  %v9425_v52 = vsel %vm12638_vm0, %v516_v46, %v518_v3  ;;  %v520_v39 = vrot.slane %v9380_v51, 7  ;;  %v12799_v34 = vmov 0  ;;  %v12576_v46 = vrot.slane %v9407_v4, 1 }
  0x56   : > { %12797 = vst [vmem:[#allocation26_spill] sm:$0xff] %v9425_v52  ;;  %v9436_v9 = vsel %vm12607_vm1, %v12567_v11, %v12566_v15  ;;  %vm9438_vm10 = vcmp.eq.s32.totalorder %v832_v16, 0  ;;  %v710_v61 = vadd.s32 128, %v9170_v1  ;;  %v9455_v16 = vpack.c.bf16 %v9419_v31, %v1282_v45 }
  0x57   : > { %12798 = vst [vmem:[#allocation27_spill] sm:$0xff] %v9436_v9  ;;  %v12800_v34 = vsel %vm9438_vm10, 4294967295, %v12799_v34  ;;  %v1284_v38 = vsel %vm9438_vm10, %v9436_v9, %v517_v5  ;;  %v522_v11 = vrot.slane %v9407_v4, 7  ;;  %v524_v56 = vrot.slane %v9429_v30, 7 }
  0x58   : > { %12801 = vst [vmem:[#allocation28_spill] sm:$0xff] %v12800_v34  ;;  %v9458_v15 = vpack.c.bf16 %v9425_v52, %v1284_v38  ;;  %v846_v60 = vand.u32 15, %v710_v61  ;;  %v12579_v5 = vrot.slane %v9445_v55, 1  ;;  %v712_v28 = vadd.s32 144, %v9170_v1  ;;  %v9555_v52 = vld [vmem:[%s9164_s23 + $0xb8] sm:$0xff] }
  0x59   : > { %v521_v36 = vsel %vm12638_vm0, %v518_v3, %v520_v39  ;;  %v12802_v45 = vrot.slane %v9380_v51, 1  ;;  %v526_v34 = vrot.slane %v9445_v55, 7  ;;  %v12804_v61 = vmov 0 }
  0x5a   : > { %vm9477_vm11 = vcmp.eq.s32.totalorder %v846_v60, 0  ;;  %v525_v37 = vsel %vm12638_vm0, %v522_v11, %v524_v56  ;;  %v12807_v3 = vrot.slane %v9429_v30, 1  ;;  %v860_v62 = vand.u32 15, %v712_v28 }
  0x5b   : > { %v9471_v38 = vsel %vm12607_vm1, %v12802_v45, %v12576_v46  ;;  %v12805_v61 = vsel %vm9477_vm11, 4294967295, %v12804_v61  ;;  %v9490_v45 = vld [vmem:[%s9164_s23 + $0xa0] sm:$0xff]  ;;  %v9493_v46 = vld [vmem:[%s9164_s23 + $0xa8] sm:$0xff]  ;;  %7626 = vmatmul.mubr.msk.bf16.gmra.mrb[8].mxu0 %vm12602_vm2, %v9455_v16  ;;  %v9498_v60 = vsel %vm12638_vm0, %v520_v39, %v522_v11  ;;  %v528_v23 = vrot.slane %v9452_v25, 7 }
  0x5c   : > { %12803 = vst [vmem:[#allocation29_spill] sm:$0xff] %v9471_v38  ;;  %12806 = vst [vmem:[#allocation30_spill] sm:$0xff] %v12805_v61  ;;  %v9487_v44 = vsel %vm12607_vm1, %v12807_v3, %v12579_v5  ;;  %7629 = vmatprep.mubr.msk.bf16.mxu0 %vm12602_vm2, %v9458_v15  ;;  %v1286_v28 = vsel %vm9477_vm11, %v9471_v38, %v521_v36  ;;  %vm9507_vm12 = vcmp.eq.s32.totalorder %v860_v62, 0  ;;  %v12810_v3 = vmov 0 }
  0x5d   : > { %12808 = vst [vmem:[#allocation31_spill] sm:$0xff] %v9487_v44  ;;  %12809 = vst [vmem:[#allocation32_spill] sm:$0xff] %v9498_v60  ;;  %v12811_v3 = vsel %vm9507_vm12, 4294967295, %v12810_v3  ;;  %v714_v39 = vadd.s32 160, %v9170_v1  ;;  %v9514_v11 = vsel %vm12638_vm0, %v524_v56, %v526_v34  ;;  %v1288_v22 = vsel %vm9507_vm12, %v9487_v44, %v525_v37  ;;  %v9532_v44 = vld [vmem:[%s9164_s23 + $0xb0] sm:$0xff] }
  0x5e   : > { %12812 = vst [vmem:[#allocation33_spill] sm:$0xff] %v12811_v3  ;;  %12813 = vst [vmem:[#allocation34_spill] sm:$0xff] %v9514_v11  ;;  %v532_v21 = vrot.slane %v9490_v45, 7  ;;  %v9523_v17 = vpack.c.bf16 %v9498_v60, %v1286_v28  ;;  %v716_v5 = vadd.s32 176, %v9170_v1  ;;  %v9527_v56 = vpack.c.bf16 %v9514_v11, %v1288_v22 }
  0x5f   : > { %v874_v62 = vand.u32 15, %v714_v39  ;;  %v530_v37 = vrot.slane %v9475_v2, 7  ;;  %v534_v3 = vrot.slane %v9493_v46, 7  ;;  %v529_v39 = vsel %vm12638_vm0, %v526_v34, %v528_v23 }
  0x60   : > { %v12814_v36 = vrot.slane %v9475_v2, 1  ;;  %v12815_v28 = vrot.slane %v9452_v25, 1  ;;  %v12817_v38 = vmov 0  ;;  %v888_v22 = vand.u32 15, %v716_v5 }
  0x61   : > { %vm9542_vm13 = vcmp.eq.s32.totalorder %v874_v62, 0  ;;  %v533_v11 = vsel %vm12638_vm0, %v530_v37, %v532_v21  ;;  %v12820_v9 = vrot.slane %v9493_v46, 1  ;;  %v12821_v60 = vrot.slane %v9490_v45, 1  ;;  %v9566_v62 = vld [vmem:[%s9164_s23 + $0xc0] sm:$0xff] }
  0x62   : > { %v9540_v61 = vsel %vm12607_vm1, %v12815_v28, %v12814_v36  ;;  %v12818_v38 = vsel %vm9542_vm13, 4294967295, %v12817_v38  ;;  %v718_v57 = vadd.s32 192, %v9170_v1  ;;  %vm9560_vm14 = vcmp.eq.s32.totalorder %v888_v22, 0  ;;  %12826 = vst [vmem:[#allocation39_spill] sm:$0xff] %v9566_v62  ;;  %v9569_v28 = vld [vmem:[%s9164_s23 + $0xc8] sm:$0xff] }
  0x63   : > { %12816 = vst [vmem:[#allocation35_spill] sm:$0xff] %v9540_v61  ;;  %12819 = vst [vmem:[#allocation36_spill] sm:$0xff] %v12818_v38  ;;  %v9552_v34 = vsel %vm12607_vm1, %v12821_v60, %v12820_v9  ;;  %7630 = vmatmul.mubr.msk.bf16.gmra.mrb[12].mxu0 %vm12602_vm2, %v9523_v17  ;;  %v12823_v36 = vmov 0  ;;  %v536_v5 = vrot.slane %v9532_v44, 7  ;;  %v9574_v9 = vsel %vm12638_vm0, %v528_v23, %v530_v37  ;;  %v9592_v38 = vld [vmem:[%s9164_s23 + $0xd0] sm:$0xff] }
  0x64   : > { %12822 = vst [vmem:[#allocation37_spill] sm:$0xff] %v9552_v34  ;;  %v12824_v36 = vsel %vm9560_vm14, 4294967295, %v12823_v36  ;;  %12827 = vst [vmem:[#allocation40_spill] sm:$0xff] %v9569_v28  ;;  %7633 = vmatprep.mubr.msk.bf16.mxu0 %vm12602_vm2, %v9527_v56  ;;  %v1290_v60 = vsel %vm9542_vm13, %v9540_v61, %v529_v39  ;;  %v720_v7 = vadd.s32 208, %v9170_v1  ;;  %v9582_v31 = vsel %vm12638_vm0, %v532_v21, %v534_v3  ;;  %v9598_v61 = vld [vmem:[%s9164_s23 + $0xd8] sm:$0xff] }
  0x65   : > { %12825 = vst [vmem:[#allocation38_spill] sm:$0xff] %v12824_v36  ;;  %12828 = vst [vmem:[#allocation41_spill] sm:$0xff] %v9574_v9  ;;  %v1292_v29 = vsel %vm9560_vm14, %v9552_v34, %v533_v11  ;;  %v902_v0 = vand.u32 15, %v718_v57  ;;  %v540_v23 = vrot.slane %v9566_v62, 7  ;;  %v9595_v21 = vpack.c.bf16 %v9574_v9, %v1290_v60 }
  0x66   : > { %12829 = vst [vmem:[#allocation42_spill] sm:$0xff] %v9582_v31  ;;  %v916_v22 = vand.u32 15, %v720_v7  ;;  %12830 = vst [vmem:[#allocation43_spill] sm:$0xff] %v9598_v61  ;;  %v9601_v11 = vpack.c.bf16 %v9582_v31, %v1292_v29  ;;  %v538_v57 = vrot.slane %v9555_v52, 7  ;;  %v722_v10 = vadd.s32 224, %v9170_v1 }
  0x67   : > { %v537_v37 = vsel %vm12638_vm0, %v534_v3, %v536_v5  ;;  %v12831_v39 = vrot.slane %v9555_v52, 1  ;;  %v12832_v7 = vrot.slane %v9532_v44, 1  ;;  %vm9613_vm15 = vcmp.eq.s32.totalorder %v902_v0, 0 }
  0x68   : > { %v12834_v60 = vmov 0  ;;  %v542_v29 = vrot.slane %v9569_v28, 7  ;;  %v541_v34 = vsel %vm12638_vm0, %v538_v57, %v540_v23  ;;  %v12837_v31 = vrot.slane %v9569_v28, 1 }
  0x69   : > { %v9611_v36 = vsel %vm12607_vm1, %v12832_v7, %v12831_v39  ;;  %v12835_v60 = vsel %vm9613_vm15, 4294967295, %v12834_v60  ;;  %v12838_v9 = vrot.slane %v9566_v62, 1  ;;  %vm9626_vm2 = vcmp.eq.s32.totalorder %v916_v22, 0  ;;  %v9631_v39 = vld [vmem:[%s9164_s23 + $0xe0] sm:$0xff] }
  0x6a   : > { %12833 = vst [vmem:[#allocation44_spill] sm:$0xff] %v9611_v36  ;;  %12836 = vst [vmem:[#allocation45_spill] sm:$0xff] %v12835_v60  ;;  %v12840_v6 = vmov 0  ;;  %vm12844_vm14 = vcmask 261120   ;;  %v544_v0 = vrot.slane %v9592_v38, 7  ;;  %v724_v50 = vadd.s32 240, %v9170_v1 }
  0x6b   : > { %v9624_v3 = vsel %vm12607_vm1, %v12838_v9, %v12837_v31  ;;  %v12841_v6 = vsel %vm9626_vm2, 4294967295, %v12840_v6  ;;  %12843 = vst [vmem:[#allocation48_spill] sm:$0xff] %v9631_v39  ;;  %7634 = vmatmul.mubr.msk.bf16.gmra.mrb[16].mxu0 %vm12844_vm14, %v9595_v21  ;;  %vm12846_vm1 = vmmov %vm12844_vm14  ;;  %v9644_v31 = vsel %vm12638_vm0, %v536_v5, %v538_v57  ;;  %v1294_v9 = vsel %vm9613_vm15, %v9611_v36, %v537_v37  ;;  %v9669_v60 = vld [vmem:[%s9164_s23 + $0xf0] sm:$0xff] }
  0x6c   : > { %12839 = vst [vmem:[#allocation46_spill] sm:$0xff] %v9624_v3  ;;  %12842 = vst [vmem:[#allocation47_spill] sm:$0xff] %v12841_v6  ;;  %7637 = vmatprep.mubr.msk.bf16.mxu0 %vm12846_vm1, %v9601_v11  ;;  %v930_v35 = vand.u32 15, %v722_v10  ;;  %v9651_v7 = vsel %vm12638_vm0, %v540_v23, %v542_v29  ;;  %v1296_v28 = vsel %vm9626_vm2, %v9624_v3, %v541_v34  ;;  %v548_v62 = vrot.slane %v9631_v39, 7 }
  0x6d   : > { %12847 = vst [vmem:[#allocation50_spill] sm:$0xff] %v9644_v31  ;;  %12848 = vst [vmem:[#allocation51_spill] sm:$0xff] %v9651_v7  ;;  %v9658_v5 = vrot.slane %v9631_v39, 1  ;;  %v9661_v57 = vrot.slane %v9638_v63, 1  ;;  %v944_v37 = vand.u32 15, %v724_v50  ;;  %v9664_v22 = vpack.c.bf16 %v9644_v31, %v1294_v9 }
  0x6e   : > { %v546_v10 = vrot.slane %v9598_v61, 7  ;;  %v550_v23 = vrot.slane %v9638_v63, 7  ;;  %v9672_v34 = vpack.c.bf16 %v9651_v7, %v1296_v28  ;;  %vm9674_vm1 = vcmp.eq.s32.totalorder %v930_v35, 0  ;;  %v9698_v7 = vld [vmem:[%s9164_s23 + $0xf8] sm:$0xff] }
  0x6f   : > { %12849 = vst [vmem:[#allocation52_spill] sm:$0xff] %v9658_v5  ;;  %12850 = vst [vmem:[#allocation53_spill] sm:$0xff] %v9661_v57  ;;  %v12851_v6 = vmov 0  ;;  %v726_v3 = vadd.s32 256, %v9170_v1  ;;  %v545_v50 = vsel %vm12638_vm0, %v542_v29, %v544_v0  ;;  %v12854_v9 = vrot.slane %v9598_v61, 1 }
  0x70   : > { %v12852_v6 = vsel %vm9674_vm1, 4294967295, %v12851_v6  ;;  %v12855_v36 = vrot.slane %v9592_v38, 1  ;;  %vm12856_vm14 = vcmask 1046528   ;;  %v549_v63 = vsel %vm12638_vm0, %v546_v10, %v548_v62 }
  0x71   : > { %12853 = vst [vmem:[#allocation54_spill] sm:$0xff] %v12852_v6  ;;  %vm12858_vm2 = vmmov %vm12856_vm14  ;;  %vm9693_vm15 = vcmp.eq.s32.totalorder %v944_v37, 0  ;;  %v12859_v28 = vmov 0  ;;  %vm12862_vm13 = vcmask 261120   ;;  %v9711_v37 = vsel %vm12638_vm0, %v548_v62, %v550_v23 }
  0x72   : > { %v9685_v31 = vsel %vm12856_vm14, %v12855_v36, %v12854_v9  ;;  %v9691_v35 = vsel %vm12858_vm2, %v9658_v5, %v9661_v57  ;;  %v12860_v28 = vsel %vm9693_vm15, 4294967295, %v12859_v28  ;;  %vm12863_vm12 = vmmov %vm12862_vm13  ;;  %v9705_v36 = vsel %vm12638_vm0, %v544_v0, %v546_v10 }
  0x73   : > { %12857 = vst [vmem:[#allocation55_spill] sm:$0xff] %v9685_v31  ;;  %12861 = vst [vmem:[#allocation56_spill] sm:$0xff] %v12860_v28  ;;  %7638 = vmatmul.mubr.msk.bf16.gmra.mrb[20].mxu0 %vm12862_vm13, %v9664_v22  ;;  %v1298_v29 = vsel %vm9674_vm1, %v9685_v31, %v545_v50  ;;  %v552_v9 = vrot.slane %v9669_v60, 7  ;;  %v1300_v57 = vsel %vm9693_vm15, %v9691_v35, %v549_v63  ;;  %v653_v5 = vrot.slane %v9669_v60, 1 }
  0x74   : > { %7641 = vmatprep.mubr.msk.bf16.mxu0 %vm12863_vm12, %v9672_v34  ;;  %v12637_v39 = vrot.slane %v9698_v7, 1  ;;  %v958_v61 = vand.u32 15, %v726_v3  ;;  %v734_v0 = vand.u32 15, %v9170_v1  ;;  %v1464_v10 = vpack.c.bf16 %v9705_v36, %v1298_v29 }
  0x75   : > { %v1465_v50 = vpack.c.bf16 %v9711_v37, %v1300_v57  ;;  %v554_v6 = vrot.slane %v9698_v7, 7  ;;  %v553_v31 = vsel %vm12638_vm0, %v550_v23, %v552_v9  ;;  %v12864_v28 = vmov 0 }
  0x76   : > { %v9729_v63 = vsel %vm12858_vm2, %v653_v5, %v12637_v39  ;;  %vm9731_vm12 = vcmp.eq.s32.totalorder %v958_v61, 0  ;;  %v591_v3 = vsel %vm12638_vm0, %v9206_v20, %v9233_v32  ;;  %vm9738_vm13 = vcmp.eq.s32.totalorder %v734_v0, 0 }
  0x77   : > { %v12865_v28 = vsel %vm9731_vm12, 4294967295, %v12864_v28  ;;  %v12867_v57 = vmov 0  ;;  %vm12870_vm14 = vcmask 261120   ;;  %v9745_v23 = vsel %vm12638_vm0, %v552_v9, %v554_v6  ;;  %v8828_v9 = vld [vmem:[%s12557_s8 + $0x68] sm:$0xff]  }
  0x78   : > { %12866 = vst [vmem:[#allocation57_spill] sm:$0xff] %v12865_v28  ;;  %v12868_v57 = vsel %vm9738_vm13, 4294967295, %v12867_v57  ;;  %vm12871_vm15 = vmmov %vm12870_vm14  ;;  %v1302_v61 = vsel %vm9731_vm12, %v9729_v63, %v553_v31  ;;  %v556_v29 = vsel %vm12638_vm0, %v554_v6, %v548_v62  ;;  %v1270_v32 = vsel %vm9738_vm13, %v9267_v47, %v591_v3  ;;  %v8829_v6 = vld [vmem:[%s12557_s8 + $0x10] sm:$0xff]   ;;  %v12916_v3 = vld [vmem:[#allocation40_spill] sm:$0xff] }
  0x79   : > { %12869 = vst [vmem:[#allocation58_spill] sm:$0xff] %v12868_v57  ;;  %v1466_v0 = vpack.c.bf16 %v9745_v23, %v1302_v61  ;;  %v1450_v39 = vpack.c.bf16 %v9251_v41, %v1270_v32  ;;  %vm12872_vm2 = vmmov %vm12870_vm14  ;;  %v1472_v62 = vpack.c.bf16 %v9290_v58, %v9281_v53  ;;  %v1476_v31 = vpack.c.bf16 %v9445_v55, %v9429_v30 }
  0x7a   : > { %vm12875_vm0 = vmmov %vm12872_vm2 }
  0x7b   : > { %7642 = vmatmul.mubr.msk.bf16.gmra.mrb[24].mxu0 %vm12870_vm14, %v1464_v10  ;;  %vm12874_vm14 = vmmov %vm12872_vm2 }
  0x7c   : > { %7645 = vmatprep.mubr.msk.bf16.mxu0 %vm12871_vm15, %v1465_v50  ;;  %vm12873_vm15 = vmmov %vm12872_vm2 }
  0x7d   : > { %vm12879_vm12 = vmmov %vm12875_vm0 }
  0x7e   : > { %vm12880_vm13 = vmmov %vm12875_vm0 }
  0x7f   : > { %vm12881_vm1 = vmmov %vm12875_vm0 }
  0x80   : > { %vm12886_vm11 = vmmov %vm12875_vm0 }
  0x81   : > { %vm12933_vm10 = vmmov %vm12875_vm0 }
  0x82   : > { %vm12934_vm9 = vmmov %vm12875_vm0 }
  0x83   : > { %7646 = vmatmul.mubr.msk.bf16.gmra.mrb[28].mxu0 %vm12872_vm2, %v1466_v0  ;;  %vm12876_vm2 = vmmov %vm12875_vm0 }
  0x84   : > { %7653 = vmatprep.mubr.msk.bf16.mxu0 %vm12873_vm15, %v1450_v39  ;;  %vm12877_vm15 = vmmov %vm12875_vm0  ;;  %v1475_v39 = vpack.c.bf16 %v9407_v4, %v9380_v51 }
  0x85   : > { %vm12935_vm8 = vmmov %vm12875_vm0 }
  0x8b   : > { %7654 = vmatmul.mubr.msk.bf16.vlgmr.msra.gmra.mrb[0].mxu0 %vm12874_vm14, %v9272_v49  ;;  %vm12878_vm14 = vmmov %vm12875_vm0  ;;  %v8830_v49 = vld [vmem:[%s12557_s8 + $0x18] sm:$0xff]  }
  0x8c   : > { %7686 = vmatpush3.bf16.msra.mxu0 %v9396_v8  ;;  %7657 = vmatprep.mubr.msk.bf16.mxu0 %vm12875_vm0, %v9284_v54  ;;  %v8831_v8 = vld [vmem:[%s12557_s8 + $0x40] sm:$0xff]  }
  0x8d   : > { %7687 = vmatprep.subr.bf16.mxu0 %v8828_v9 }
  0x90   : > { %7688 = vmatpush3.bf16.msra.mxu0 %v8828_v9  ;;  %v12921_v9 = vld [vmem:[#allocation49_spill] sm:$0xff] }
  0x91   : > { %7721 = vmatprep.subr.bf16.mxu0 %v8829_v6 }
  0x93   : > { %7658 = vmatmul.mubr.msk.bf16.gmra.mrb[4].mxu0 %vm12876_vm2, %v9339_v14  ;;  %vm12882_vm2 = vmmov %vm12875_vm0 }
  0x94   : > { %7661 = vmatprep.mubr.msk.bf16.mxu0 %vm12877_vm15, %v9350_v27  ;;  %vm12883_vm15 = vmmov %vm12875_vm0 }
  0x9b   : > { %7662 = vmatmul.mubr.msk.bf16.gmra.mrb[8].mxu0 %vm12878_vm14, %v9399_v59  ;;  %vm12884_vm14 = vmmov %vm12875_vm0 }
  0x9c   : > { %7665 = vmatprep.mubr.msk.bf16.mxu0 %vm12879_vm12, %v9455_v16  ;;  %vm12885_vm12 = vmmov %vm12875_vm0 }
  0xa3   : > { %7666 = vmatmul.mubr.msk.bf16.gmra.mrb[12].mxu0 %vm12875_vm0, %v9458_v15 }
  0xa4   : > { %7669 = vmatprep.mubr.msk.bf16.mxu0 %vm12880_vm13, %v9523_v17  ;;  %vm12887_vm13 = vmmov %vm12875_vm0 }
  0xab   : > { %7670 = vmatmul.mubr.msk.bf16.gmra.mrb[16].mxu0 %vm12881_vm1, %v9527_v56  ;;  %vm12888_vm1 = vmmov %vm12875_vm0 }
  0xac   : > { %7673 = vmatprep.mubr.msk.bf16.mxu0 %vm12882_vm2, %v9595_v21  ;;  %vm12889_vm2 = vmmov %vm12875_vm0 }
  0xb3   : > { %7674 = vmatmul.mubr.msk.bf16.gmra.mrb[20].mxu0 %vm12883_vm15, %v9601_v11  ;;  %vm12891_vm15 = vmmov %vm12875_vm0 }
  0xb4   : > { %7677 = vmatprep.mubr.msk.bf16.mxu0 %vm12884_vm14, %v9664_v22  ;;  %vm12892_vm14 = vmmov %vm12875_vm0 }
  0xbb   : > { %7678 = vmatmul.mubr.msk.bf16.gmra.mrb[24].mxu0 %vm12885_vm12, %v9672_v34  ;;  %vm12893_vm12 = vmmov %vm12875_vm0 }
  0xbc   : > { %7681 = vmatprep.mubr.msk.bf16.mxu0 %vm12886_vm11, %v1464_v10  ;;  %vm12890_vm11 = vmmov %vm12875_vm0 }
  0xc3   : > { %7682 = vmatmul.mubr.msk.bf16.gmra.mrb[28].mxu0 %vm12875_vm0, %v1465_v50 }
  0xc4   : > { %7689 = vmatprep.mubr.msk.bf16.mxu0 %vm12887_vm13, %v9284_v54  ;;  %vm12894_vm13 = vmmov %vm12875_vm0  ;;  %v728_v54 = vadd.s32 272, %v9170_v1 }
  0xcb   : > { %7690 = vmatmul.mubr.msk.bf16.vlgmr.msra.gmra.mrb[0].mxu0 %vm12888_vm1, %v9339_v14  ;;  %vm12895_vm1 = vmmov %vm12875_vm0  ;;  %v12899_v14 = vmov 0 }
  0xcc   : > { %7722 = vmatpush3.bf16.msra.mxu0 %v8829_v6  ;;  %7693 = vmatprep.mubr.msk.bf16.mxu0 %vm12889_vm2, %v9350_v27  ;;  %vm12896_vm2 = vmmov %vm12875_vm0 }
  0xcd   : > { %7723 = vmatprep.subr.bf16.mxu0 %v8830_v49 }
  0xd0   : > { %7724 = vmatpush3.bf16.msra.mxu0 %v8830_v49  ;;  %v8834_v49 = vld [vmem:[%s12557_s8 + $0x78] sm:$0xff]  }
  0xd1   : > { %7757 = vmatprep.subr.bf16.mxu0 %v8831_v8 }
  0xd3   : > { %7694 = vmatmul.mubr.msk.bf16.gmra.mrb[4].mxu0 %vm12890_vm11, %v9399_v59  ;;  %vm12897_vm11 = vmmov %vm12875_vm0 }
  0xd4   : > { %7697 = vmatprep.mubr.msk.bf16.mxu0 %vm12891_vm15, %v9455_v16  ;;  %vm12898_vm15 = vmmov %vm12875_vm0  ;;  %v1469_v16 = vpack.c.bf16 %v9203_v19, %v9200_v18  ;;  %v1471_v19 = vpack.c.bf16 %v9270_v48, %v9257_v43 }
  0xdb   : > { %7698 = vmatmul.mubr.msk.bf16.gmra.mrb[8].mxu0 %vm12892_vm14, %v9458_v15  ;;  %v1468_v15 = vpack.c.bf16 %v9221_v24, %v9206_v20  ;;  %v8833_v20 = vld [vmem:[%s12557_s8 + $0x70] sm:$0xff]   ;;  %v1470_v24 = vpack.c.bf16 %v9254_v42, %v9236_v33 }
  0xdc   : > { %7701 = vmatprep.mubr.msk.bf16.mxu0 %vm12893_vm12, %v9523_v17  ;;  %v972_v17 = vand.u32 15, %v728_v54  ;;  %vm12902_vm12 = vmmov %vm12875_vm0  ;;  %v1483_v54 = vpack.c.bf16 %v9698_v7, %v9669_v60  ;;  %v8840_v60 = vld [vmem:[%s12557_s8 + $0x88] sm:$0xff]  }
  0xde   : > { %vm9825_vm14 = vcmp.eq.s32.totalorder %v972_v17, 0  ;;  %v8836_v17 = vld [vmem:[%s12557_s8 + $0x28] sm:$0xff]  }
  0xdf   : > { %v12900_v14 = vsel %vm9825_vm14, 4294967295, %v12899_v14  ;;  %v1304_v27 = vsel %vm9825_vm14, %v9691_v35, %v556_v29  ;;  %v12917_v29 = vld [vmem:[#allocation43_spill] sm:$0xff]  ;;  %vm12932_vm14 = vmmov %vm12875_vm0 }
  0xe0   : > { %12901 = vst [vmem:[#allocation59_spill] sm:$0xff] %v12900_v14  ;;  %v1467_v59 = vpack.c.bf16 %v9711_v37, %v1304_v27  ;;  %v1481_v32 = vpack.c.bf16 %v12917_v29, %v9592_v38  ;;  %v8837_v27 = vld [vmem:[%s12557_s8 + $0x50] sm:$0xff]  }
  0xe3   : > { %7702 = vmatmul.mubr.msk.bf16.gmra.mrb[12].mxu0 %vm12875_vm0, %v9527_v56  ;;  %v8832_v56 = vld [vmem:[%s12557_s8 + $0x48] sm:$0xff]  }
  0xe4   : > { %7705 = vmatprep.mubr.msk.bf16.mxu0 %vm12894_vm13, %v9595_v21  ;;  %vm12903_vm13 = vmmov %vm12875_vm0  ;;  %v1473_v21 = vpack.c.bf16 %v9336_v13, %v9333_v12 }
  0xeb   : > { %7706 = vmatmul.mubr.msk.bf16.gmra.mrb[16].mxu0 %vm12895_vm1, %v9601_v11  ;;  %vm12904_vm1 = vmmov %vm12875_vm0  ;;  %v1474_v11 = vpack.c.bf16 %v9364_v40, %v9347_v26 }
  0xec   : > { %7709 = vmatprep.mubr.msk.bf16.mxu0 %vm12896_vm2, %v9664_v22  ;;  %vm12905_vm2 = vmmov %vm12875_vm0  ;;  %v1477_v22 = vpack.c.bf16 %v9475_v2, %v9452_v25 }
  0xf3   : > { %7710 = vmatmul.mubr.msk.bf16.gmra.mrb[20].mxu0 %vm12897_vm11, %v9672_v34  ;;  %vm12906_vm11 = vmmov %vm12875_vm0  ;;  %v1478_v34 = vpack.c.bf16 %v9493_v46, %v9490_v45 }
  0xf4   : > { %7713 = vmatprep.mubr.msk.bf16.mxu0 %vm12898_vm15, %v1464_v10  ;;  %vm12907_vm15 = vmmov %vm12875_vm0  ;;  %v1479_v10 = vpack.c.bf16 %v9555_v52, %v9532_v44 }
  0xfb   : > { %7714 = vmatmul.mubr.msk.bf16.gmra.mrb[24].mxu0 %vm12902_vm12, %v1465_v50  ;;  %vm12908_vm12 = vmmov %vm12875_vm0  ;;  %v12915_v50 = vld [vmem:[#allocation39_spill] sm:$0xff] }
  0xfc   : > { %7717 = vmatprep.mubr.msk.bf16.mxu0 %vm12875_vm0, %v1466_v0  ;;  %v1480_v61 = vpack.c.bf16 %v12916_v3, %v12915_v50  ;;  %v12920_v0 = vld [vmem:[#allocation48_spill] sm:$0xff] }
  0xfd   : > { %v1482_v6 = vpack.c.bf16 %v12921_v9, %v12920_v0  ;;  %v12963_v0 = vrot.slane %v9257_v43, 1 }
 0x103   : > { %7718 = vmatmul.mubr.msk.bf16.gmra.mrb[28].mxu0 %vm12903_vm13, %v1467_v59  ;;  %vm12909_vm13 = vmmov %vm12875_vm0  ;;  %v695_v59 = vadd.s32 8, %v9170_v1 }
 0x104   : > { %7725 = vmatprep.mubr.msk.bf16.mxu0 %vm12904_vm1, %v1468_v15  ;;  %vm12910_vm1 = vmmov %vm12875_vm0 }
 0x10b   : > { %7726 = vmatmul.mubr.msk.bf16.vlgmr.msra.gmra.mrb[0].mxu0 %vm12905_vm2, %v1469_v16  ;;  %vm12911_vm2 = vmmov %vm12875_vm0 }
 0x10c   : > { %7758 = vmatpush3.bf16.msra.mxu0 %v8831_v8  ;;  %7729 = vmatprep.mubr.msk.bf16.mxu0 %vm12906_vm11, %v1468_v15  ;;  %vm12912_vm11 = vmmov %vm12875_vm0  ;;  %v8835_v8 = vld [vmem:[%s12557_s8 + $0x20] sm:$0xff]  }
 0x10d   : > { %7759 = vmatprep.subr.bf16.mxu0 %v8832_v56 }
 0x110   : > { %7760 = vmatpush3.bf16.msra.mxu0 %v8832_v56  ;;  %v12950_v56 = vld [vmem:[#allocation13_spill] sm:$0xff] }
 0x111   : > { %7793 = vmatprep.subr.bf16.mxu0 %v8833_v20 }
 0x113   : > { %7730 = vmatmul.mubr.msk.bf16.gmra.mrb[4].mxu0 %vm12907_vm15, %v1470_v24  ;;  %vm12913_vm15 = vmmov %vm12875_vm0 }
 0x114   : > { %7733 = vmatprep.mubr.msk.bf16.mxu0 %vm12908_vm12, %v1471_v19  ;;  %vm12914_vm12 = vmmov %vm12875_vm0 }
 0x11b   : > { %7734 = vmatmul.mubr.msk.bf16.gmra.mrb[8].mxu0 %vm12875_vm0, %v1472_v62 }
 0x11c   : > { %7737 = vmatprep.mubr.msk.bf16.mxu0 %vm12909_vm13, %v1473_v21  ;;  %vm12918_vm13 = vmmov %vm12875_vm0 }
 0x123   : > { %7738 = vmatmul.mubr.msk.bf16.gmra.mrb[12].mxu0 %vm12910_vm1, %v1474_v11  ;;  %vm12919_vm1 = vmmov %vm12875_vm0 }
 0x124   : > { %7741 = vmatprep.mubr.msk.bf16.mxu0 %vm12911_vm2, %v1475_v39  ;;  %vm12922_vm2 = vmmov %vm12875_vm0 }
 0x12b   : > { %7742 = vmatmul.mubr.msk.bf16.gmra.mrb[16].mxu0 %vm12912_vm11, %v1476_v31  ;;  %vm12923_vm11 = vmmov %vm12875_vm0 }
 0x12c   : > { %7745 = vmatprep.mubr.msk.bf16.mxu0 %vm12913_vm15, %v1477_v22  ;;  %vm12924_vm15 = vmmov %vm12875_vm0 }
 0x133   : > { %7746 = vmatmul.mubr.msk.bf16.gmra.mrb[20].mxu0 %vm12914_vm12, %v1478_v34  ;;  %vm12925_vm12 = vmmov %vm12875_vm0 }
 0x134   : > { %7749 = vmatprep.mubr.msk.bf16.mxu0 %vm12875_vm0, %v1479_v10 }
 0x13b   : > { %7750 = vmatmul.mubr.msk.bf16.gmra.mrb[24].mxu0 %vm12918_vm13, %v1480_v61  ;;  %vm12926_vm13 = vmmov %vm12875_vm0 }
 0x13c   : > { %7753 = vmatprep.mubr.msk.bf16.mxu0 %vm12919_vm1, %v1481_v32  ;;  %vm12927_vm1 = vmmov %vm12875_vm0 }
 0x143   : > { %7754 = vmatmul.mubr.msk.bf16.gmra.mrb[28].mxu0 %vm12922_vm2, %v1482_v6  ;;  %vm12928_vm2 = vmmov %vm12875_vm0 }
 0x144   : > { %7761 = vmatprep.mubr.msk.bf16.mxu0 %vm12923_vm11, %v1469_v16  ;;  %vm12929_vm11 = vmmov %vm12875_vm0  ;;  %v12949_v16 = vrot.slane %v9200_v18, 1 }
 0x14b   : > { %7762 = vmatmul.mubr.msk.bf16.vlgmr.msra.gmra.mrb[0].mxu0 %vm12924_vm15, %v1468_v15  ;;  %vm12930_vm15 = vmmov %vm12875_vm0 }
 0x14c   : > { %7794 = vmatpush3.bf16.msra.mxu0 %v8833_v20  ;;  %7765 = vmatprep.mubr.msk.bf16.mxu0 %vm12925_vm12, %v1470_v24  ;;  %vm12931_vm12 = vmmov %vm12875_vm0 }
 0x14d   : > { %7795 = vmatprep.subr.bf16.mxu0 %v8834_v49 }
 0x150   : > { %7796 = vmatpush3.bf16.msra.mxu0 %v8834_v49  ;;  %v12964_v49 = vrot.slane %v9254_v42, 1  ;;  %v12972_v42 = vmov 0 }
 0x151   : > { %7829 = vmatprep.subr.bf16.mxu0 %v8835_v8 }
 0x153   : > { %7766 = vmatmul.mubr.msk.bf16.gmra.mrb[4].mxu0 %vm12875_vm0, %v1471_v19 }
 0x154   : > { %7769 = vmatprep.mubr.msk.bf16.mxu0 %vm12926_vm13, %v1472_v62  ;;  %vm12936_vm13 = vmmov %vm12875_vm0 }
 0x15b   : > { %7770 = vmatmul.mubr.msk.bf16.gmra.mrb[8].mxu0 %vm12927_vm1, %v1473_v21  ;;  %vm12937_vm1 = vmmov %vm12875_vm0 }
 0x15c   : > { %7773 = vmatprep.mubr.msk.bf16.mxu0 %vm12928_vm2, %v1474_v11  ;;  %vm12942_vm2 = vmmov %vm12875_vm0 }
 0x163   : > { %7774 = vmatmul.mubr.msk.bf16.gmra.mrb[12].mxu0 %vm12929_vm11, %v1475_v39  ;;  %vm12943_vm11 = vmmov %vm12875_vm0 }
 0x164   : > { %7777 = vmatprep.mubr.msk.bf16.mxu0 %vm12930_vm15, %v1476_v31  ;;  %vm12944_vm15 = vmmov %vm12875_vm0 }
 0x16b   : > { %7778 = vmatmul.mubr.msk.bf16.gmra.mrb[16].mxu0 %vm12931_vm12, %v1477_v22  ;;  %vm12945_vm12 = vmmov %vm12875_vm0 }
 0x16c   : > { %7781 = vmatprep.mubr.msk.bf16.mxu0 %vm12932_vm14, %v1478_v34  ;;  %vm12938_vm14 = vmmov %vm12875_vm0 }
 0x173   : > { %7782 = vmatmul.mubr.msk.bf16.gmra.mrb[20].mxu0 %vm12933_vm10, %v1479_v10  ;;  %vm12939_vm10 = vmmov %vm12875_vm0 }
 0x174   : > { %7785 = vmatprep.mubr.msk.bf16.mxu0 %vm12934_vm9, %v1480_v61  ;;  %vm12941_vm9 = vmmov %vm12875_vm0 }
 0x17b   : > { %7786 = vmatmul.mubr.msk.bf16.gmra.mrb[24].mxu0 %vm12935_vm8, %v1481_v32  ;;  %vm12940_vm8 = vmmov %vm12875_vm0 }
 0x17c   : > { %7789 = vmatprep.mubr.msk.bf16.mxu0 %vm12875_vm0, %v1482_v6 }
 0x183   : > { %7790 = vmatmul.mubr.msk.bf16.gmra.mrb[28].mxu0 %vm12936_vm13, %v1483_v54  ;;  %vm12946_vm13 = vmmov %vm12875_vm0 }
 0x184   : > { %7797 = vmatprep.mubr.msk.bf16.mxu0 %vm12937_vm1, %v1468_v15  ;;  %vm12947_vm1 = vmmov %vm12875_vm0  ;;  %v741_v15 = vand.u32 15, %v695_v59  ;;  %v707_v59 = vadd.s32 104, %v9170_v1 }
 0x18b   : > { %7798 = vmatmul.mubr.msk.bf16.vlgmr.msra.gmra.mrb[0].mxu0 %vm12938_vm14, %v1470_v24  ;;  %vm12948_vm14 = vmmov %vm12875_vm0  ;;  %v12952_v24 = vmov 0 }
 0x18c   : > { %7830 = vmatpush3.bf16.msra.mxu0 %v8835_v8  ;;  %7801 = vmatprep.mubr.msk.bf16.mxu0 %vm12939_vm10, %v1471_v19  ;;  %vm12951_vm10 = vcmask 1046528   ;;  %v699_v19 = vadd.s32 40, %v9170_v1 }
 0x18d   : > { %7831 = vmatprep.subr.bf16.mxu0 %v8836_v17  ;;  %v597_v20 = vsel %vm12951_vm10, %v12950_v56, %v12949_v16  ;;  %v12978_v16 = vld [vmem:[#allocation16_spill] sm:$0xff] }
 0x190   : > { %7832 = vmatpush3.bf16.msra.mxu0 %v8836_v17  ;;  %v12969_v17 = vrot.slane %v9281_v53, 1 }
 0x191   : > { %7865 = vmatprep.subr.bf16.mxu0 %v8837_v27 }
 0x193   : > { %7802 = vmatmul.mubr.msk.bf16.gmra.mrb[4].mxu0 %vm12940_vm8, %v1472_v62  ;;  %vm9936_vm8 = vcmp.eq.s32.totalorder %v741_v15, 15  ;;  %v12975_v15 = vld [vmem:[#allocation14_spill] sm:$0xff] }
 0x194   : > { %7805 = vmatprep.mubr.msk.bf16.mxu0 %vm12941_vm9, %v1473_v21  ;;  %v12953_v24 = vsel %vm9936_vm8, 4294967295, %v12952_v24  ;;  %vm12955_vm9 = vmmov %vm12875_vm0  ;;  %v1415_v62 = vsel %vm9936_vm8, %v9251_v41, %v597_v20  ;;  %v769_v21 = vand.u32 15, %v699_v19  ;;  %v10001_v19 = vld [vmem:[%s12557_s8 + $0x80] sm:$0xff]  }
 0x195   : > { %12954 = vst [vmem:[#allocation39_spill] sm:$0xff] %v12953_v24  ;;  %v1484_v18 = vpack.c.bf16 %v1415_v62, %v9267_v47  ;;  %v825_v62 = vand.u32 15, %v707_v59  ;;  %v12998_v59 = vld [vmem:[#allocation23_spill] sm:$0xff] }
 0x19b   : > { %7806 = vmatmul.mubr.msk.bf16.gmra.mrb[8].mxu0 %vm12942_vm2, %v1474_v11  ;;  %vm12956_vm2 = vmmov %vm12875_vm0  ;;  %v701_v11 = vadd.s32 56, %v9170_v1 }
 0x19c   : > { %7809 = vmatprep.mubr.msk.bf16.mxu0 %vm12943_vm11, %v1475_v39  ;;  %v12957_v39 = vrot.slane %v9236_v33, 1  ;;  %vm12958_vm11 = vmmov %vm12951_vm10 }
 0x1a3   : > { %7810 = vmatmul.mubr.msk.bf16.gmra.mrb[12].mxu0 %vm12944_vm15, %v1476_v31  ;;  %v602_v31 = vsel %vm12958_vm11, %v12950_v56, %v12957_v39  ;;  %vm9952_vm15 = vcmp.eq.s32.totalorder %v769_v21, 15  ;;  %v12982_v39 = vrot.slane %v9333_v12, 1  ;;  %v12990_v12 = vmov 0 }
 0x1a4   : > { %7813 = vmatprep.mubr.msk.bf16.mxu0 %vm12945_vm12, %v1477_v22  ;;  %v12959_v22 = vmov 0  ;;  %vm12962_vm12 = vmmov %vm12875_vm0 }
 0x1a5   : > { %v12960_v22 = vsel %vm9952_vm15, 4294967295, %v12959_v22 }
 0x1a6   : > { %12961 = vst [vmem:[#allocation40_spill] sm:$0xff] %v12960_v22 }
 0x1ab   : > { %7814 = vmatmul.mubr.msk.bf16.gmra.mrb[16].mxu0 %vm12875_vm0, %v1478_v34  ;;  %v703_v34 = vadd.s32 72, %v9170_v1 }
 0x1ac   : > { %7817 = vmatprep.mubr.msk.bf16.mxu0 %vm12946_vm13, %v1479_v10  ;;  %v1419_v10 = vsel %vm9952_vm15, %v9251_v41, %v602_v31  ;;  %vm12965_vm13 = vmmov %vm12951_vm10  ;;  %v8838_v41 = vld [vmem:[%s12557_s8 + $0x58] sm:$0xff]   ;;  %v12983_v31 = vrot.slane %v9290_v58, 1  ;;  %v711_v58 = vadd.s32 136, %v9170_v1 }
 0x1ad   : > { %v9963_v33 = vpack.c.bf16 %v1419_v10, %v9267_v47  ;;  %v606_v8 = vsel %vm12965_vm13, %v12964_v49, %v12963_v0  ;;  %v12970_v47 = vrot.slane %v9270_v48, 1  ;;  %v12979_v48 = vld [vmem:[#allocation18_spill] sm:$0xff]  ;;  %v12984_v10 = vmov 0 }
 0x1ae   : > { %v12988_v0 = vrot.slane %v9336_v13, 1  ;;  %vm10025_vm13 = vcmp.eq.s32.totalorder %v825_v62, 15  ;;  %v713_v62 = vadd.s32 152, %v9170_v1 }
 0x1af   : > { %v12991_v12 = vsel %vm10025_vm13, 4294967295, %v12990_v12 }
 0x1b0   : > { %12992 = vst [vmem:[#allocation13_spill] sm:$0xff] %v12991_v12 }
 0x1b3   : > { %7818 = vmatmul.mubr.msk.bf16.gmra.mrb[20].mxu0 %vm12947_vm1, %v1480_v61  ;;  %v783_v61 = vand.u32 15, %v701_v11 }
 0x1b4   : > { %7821 = vmatprep.mubr.msk.bf16.mxu0 %vm12948_vm14, %v1481_v32  ;;  %v797_v32 = vand.u32 15, %v703_v34  ;;  %vm12971_vm14 = vmmov %vm12951_vm10  ;;  %v614_v34 = vsel %vm12958_vm11, %v12983_v31, %v12982_v39  ;;  %v13007_v31 = vmov 0 }
 0x1b5   : > { %vm9970_vm1 = vcmp.eq.s32.totalorder %v783_v61, 15  ;;  %v610_v43 = vsel %vm12971_vm14, %v12970_v47, %v12969_v17  ;;  %v709_v61 = vadd.s32 120, %v9170_v1  ;;  %v853_v17 = vand.u32 15, %v711_v58  ;;  %v12997_v47 = vld [vmem:[#allocation21_spill] sm:$0xff] }
 0x1b6   : > { %vm9983_vm10 = vcmp.eq.s32.totalorder %v797_v32, 15  ;;  %v1421_v53 = vsel %vm9970_vm1, %v12978_v16, %v606_v8  ;;  %v12987_v32 = vrot.slane %v9347_v26, 1  ;;  %v12995_v8 = vld [vmem:[#allocation20_spill] sm:$0xff]  ;;  %v13014_v58 = vld [vmem:[#allocation29_spill] sm:$0xff] }
 0x1b7   : > { %v12973_v42 = vsel %vm9983_vm10, 4294967295, %v12972_v42  ;;  %v1423_v56 = vsel %vm9983_vm10, %v12979_v48, %v610_v43  ;;  %v13000_v48 = vrot.slane %v9364_v40, 1  ;;  %v715_v40 = vadd.s32 168, %v9170_v1 }
 0x1b8   : > { %12974 = vst [vmem:[#allocation48_spill] sm:$0xff] %v12973_v42 }
 0x1bb   : > { %7822 = vmatmul.mubr.msk.bf16.gmra.mrb[24].mxu0 %vm12955_vm9, %v1482_v6  ;;  %vm12976_vm9 = vmmov %vm12875_vm0 }
 0x1bc   : > { %7825 = vmatprep.mubr.msk.bf16.mxu0 %vm12956_vm2, %v1483_v54  ;;  %v12966_v54 = vmov 0  ;;  %vm12977_vm2 = vmmov %vm12875_vm0 }
 0x1bd   : > { %v12967_v54 = vsel %vm9970_vm1, 4294967295, %v12966_v54  ;;  %vm12993_vm14 = vmmov %vm12977_vm2 }
 0x1be   : > { %12968 = vst [vmem:[#allocation43_spill] sm:$0xff] %v12967_v54 }
 0x1c3   : > { %7826 = vmatmul.mubr.msk.bf16.gmra.mrb[28].mxu0 %vm12962_vm12, %v1482_v6  ;;  %v705_v6 = vadd.s32 88, %v9170_v1 }
 0x1c4   : > { %7833 = vmatprep.mubr.msk.bf16.mxu0 %vm12875_vm0, %v1484_v18  ;;  %v12981_v18 = vld [vmem:[#allocation19_spill] sm:$0xff]  ;;  %vm12989_vm0 = vmmov %vm12958_vm11 }
 0x1c5   : > { %v811_v20 = vand.u32 15, %v705_v6  ;;  %v10007_v11 = vpack.c.bf16 %v1423_v56, %v12981_v18  ;;  %v618_v49 = vsel %vm12989_vm0, %v12988_v0, %v12987_v32  ;;  %v12996_v6 = vld [vmem:[#allocation25_spill] sm:$0xff]  ;;  %v13006_v18 = vrot.slane %v9407_v4, 1  ;;  %v13013_v0 = vld [vmem:[#allocation27_spill] sm:$0xff] }
 0x1c6   : > { %v1427_v13 = vsel %vm10025_vm13, %v12996_v6, %v618_v49  ;;  %v881_v32 = vand.u32 15, %v715_v40  ;;  %v13016_v6 = vrot.slane %v9445_v55, 1  ;;  %v13028_v55 = vld [vmem:[#allocation34_spill] sm:$0xff]  ;;  %v13031_v40 = vld [vmem:[#allocation35_spill] sm:$0xff] }
 0x1c7   : > { %vm10014_vm12 = vcmp.eq.s32.totalorder %v811_v20, 15  ;;  %v10044_v16 = vpack.c.bf16 %v1427_v13, %v12998_v59  ;;  %v13002_v20 = vmov 0  ;;  %v13021_v59 = vrot.slane %v9475_v2, 1 }
 0x1c8   : > { %v12985_v10 = vsel %vm10014_vm12, 4294967295, %v12984_v10  ;;  %v1425_v26 = vsel %vm10014_vm12, %v12995_v8, %v614_v34  ;;  %v13012_v34 = vld [vmem:[#allocation32_spill] sm:$0xff] }
 0x1c9   : > { %12986 = vst [vmem:[#allocation49_spill] sm:$0xff] %v12985_v10  ;;  %v10041_v43 = vpack.c.bf16 %v1425_v26, %v12997_v47  ;;  %v13015_v26 = vrot.slane %v9452_v25, 1  ;;  %v13020_v47 = vrot.slane %v9490_v45, 1  ;;  %v719_v25 = vadd.s32 200, %v9170_v1 }
 0x1cb   : > { %7834 = vmatmul.mubr.msk.bf16.vlgmr.msra.gmra.mrb[0].mxu0 %vm12976_vm9, %v12975_v15  ;;  %vm12994_vm9 = vmmov %vm12977_vm2  ;;  %v630_v13 = vsel %vm12989_vm0, %v13016_v6, %v13015_v26  ;;  %v13041_v6 = vmov 0 }
 0x1cc   : > { %7866 = vmatpush3.bf16.msra.mxu0 %v8837_v27  ;;  %7837 = vmatprep.mubr.msk.bf16.mxu0 %vm12977_vm2, %v9963_v33  ;;  %v12980_v27 = vld [vmem:[#allocation17_spill] sm:$0xff]  ;;  %vm13001_vm2 = vmmov %vm12989_vm0 }
 0x1cd   : > { %7867 = vmatprep.subr.bf16.mxu0 %v8838_v41  ;;  %v10004_v21 = vpack.c.bf16 %v1421_v53, %v12980_v27  ;;  %v12999_v53 = vrot.slane %v9380_v51, 1  ;;  %v13005_v27 = vrot.slane %v9429_v30, 1  ;;  %v13011_v51 = vld [vmem:[#allocation26_spill] sm:$0xff] }
 0x1cf   : > { %v622_v56 = vsel %vm13001_vm2, %v13000_v48, %v12999_v53  ;;  %v626_v39 = vsel %vm12989_vm0, %v13006_v18, %v13005_v27  ;;  %vm13010_vm2 = vmmov %vm12994_vm9  ;;  %v13023_v48 = vmov 0  ;;  %v909_v27 = vand.u32 15, %v719_v25  ;;  %v13030_v18 = vld [vmem:[#allocation31_spill] sm:$0xff]  ;;  %v13049_v25 = vld [vmem:[#allocation44_spill] sm:$0xff] }
 0x1d0   : > { %7868 = vmatpush3.bf16.msra.mxu0 %v8838_v41  ;;  %v839_v41 = vand.u32 15, %v709_v61  ;;  %v867_v61 = vand.u32 15, %v713_v62 }
 0x1d1   : > { %7901 = vmatprep.subr.bf16.mxu0 %v10001_v19 }
 0x1d2   : > { %vm10051_vm11 = vcmp.eq.s32.totalorder %v839_v41, 15  ;;  %v13017_v41 = vmov 0 }
 0x1d3   : > { %7838 = vmatmul.mubr.msk.bf16.gmra.mrb[4].mxu0 %vm12993_vm14, %v10004_v21  ;;  %v13003_v20 = vsel %vm10051_vm11, 4294967295, %v13002_v20  ;;  %vm10061_vm14 = vcmp.eq.s32.totalorder %v853_v17, 15  ;;  %v1429_v30 = vsel %vm10051_vm11, %v13011_v51, %v622_v56  ;;  %v717_v17 = vadd.s32 184, %v9170_v1  ;;  %v13029_v56 = vld [vmem:[#allocation41_spill] sm:$0xff] }
 0x1d4   : > { %7841 = vmatprep.mubr.msk.bf16.mxu0 %vm12994_vm9, %v10007_v11  ;;  %13004 = vst [vmem:[#allocation14_spill] sm:$0xff] %v13003_v20  ;;  %v13008_v31 = vsel %vm10061_vm14, 4294967295, %v13007_v31  ;;  %v1431_v4 = vsel %vm10061_vm14, %v13012_v34, %v626_v39  ;;  %v10077_v49 = vpack.c.bf16 %v1429_v30, %v13013_v0  ;;  %vm10097_vm14 = vcmp.eq.s32.totalorder %v881_v32, 15 }
 0x1d5   : > { %13009 = vst [vmem:[#allocation16_spill] sm:$0xff] %v13008_v31  ;;  %v10080_v8 = vpack.c.bf16 %v1431_v4, %v13014_v58  ;;  %v13024_v48 = vsel %vm10097_vm14, 4294967295, %v13023_v48  ;;  %v895_v62 = vand.u32 15, %v717_v17  ;;  %v13032_v30 = vrot.slane %v9532_v44, 1 }
 0x1d6   : > { %13025 = vst [vmem:[#allocation17_spill] sm:$0xff] %v13024_v48  ;;  %v13033_v34 = vrot.slane %v9493_v46, 1  ;;  %v721_v32 = vadd.s32 216, %v9170_v1  ;;  %v13038_v0 = vrot.slane %v12915_v50, 1  ;;  %v13039_v58 = vrot.slane %v9555_v52, 1  ;;  %v13046_v46 = vld [vmem:[#allocation42_spill] sm:$0xff] }
 0x1d7   : > { %v723_v44 = vadd.s32 232, %v9170_v1 }
 0x1d8   : > { %v923_v17 = vand.u32 15, %v721_v32 }
 0x1db   : > { %7842 = vmatmul.mubr.msk.bf16.gmra.mrb[8].mxu0 %vm12994_vm9, %v10041_v43  ;;  %vm10087_vm9 = vcmp.eq.s32.totalorder %v867_v61, 15  ;;  %v13035_v61 = vmov 0 }
 0x1dc   : > { %7845 = vmatprep.mubr.msk.bf16.mxu0 %vm13010_vm2, %v10044_v16  ;;  %v13018_v41 = vsel %vm10087_vm9, 4294967295, %v13017_v41  ;;  %vm13022_vm2 = vmmov %vm12989_vm0  ;;  %vm13026_vm0 = vcmask 261120   ;;  %v1433_v45 = vsel %vm10087_vm9, %v13028_v55, %v630_v13  ;;  %v13047_v13 = vld [vmem:[#allocation50_spill] sm:$0xff] }
 0x1dd   : > { %13019 = vst [vmem:[#allocation18_spill] sm:$0xff] %v13018_v41  ;;  %v634_v53 = vsel %vm13022_vm2, %v13021_v59, %v13020_v47  ;;  %vm13027_vm11 = vmmov %vm13026_vm0  ;;  %v10113_v39 = vpack.c.bf16 %v1433_v45, %v13030_v18  ;;  %v937_v47 = vand.u32 15, %v723_v44  ;;  %v13048_v59 = vld [vmem:[#allocation37_spill] sm:$0xff]  ;;  %v13050_v45 = vrot.slane %v9592_v38, 1  ;;  %v13055_v18 = vld [vmem:[#allocation52_spill] sm:$0xff] }
 0x1de   : > { %v1435_v2 = vsel %vm10097_vm14, %v13029_v56, %v634_v53  ;;  %vm10133_vm14 = vcmp.eq.s32.totalorder %v909_v27, 15  ;;  %v13051_v56 = vrot.slane %v12916_v3, 1  ;;  %v725_v27 = vadd.s32 248, %v9170_v1  ;;  %v13063_v38 = vld [vmem:[#allocation51_spill] sm:$0xff]  ;;  %v13066_v44 = vld [vmem:[#allocation53_spill] sm:$0xff] }
 0x1df   : > { %v10116_v51 = vpack.c.bf16 %v1435_v2, %v13031_v40  ;;  %v13042_v6 = vsel %vm10133_vm14, 4294967295, %v13041_v6  ;;  %v13056_v40 = vrot.slane %v12917_v29, 1  ;;  %v13064_v29 = vld [vmem:[#allocation46_spill] sm:$0xff] }
 0x1e0   : > { %13043 = vst [vmem:[#allocation20_spill] sm:$0xff] %v13042_v6  ;;  %v951_v32 = vand.u32 15, %v725_v27 }
 0x1e3   : > { %7846 = vmatmul.mubr.msk.bf16.gmra.mrb[12].mxu0 %vm13026_vm0, %v10077_v49 }
 0x1e4   : > { %7849 = vmatprep.mubr.msk.bf16.mxu0 %vm13027_vm11, %v10080_v8  ;;  %vm13034_vm11 = vmmov %vm13022_vm2  ;;  %vm10123_vm2 = vcmp.eq.s32.totalorder %v895_v62, 15  ;;  %v13052_v62 = vmov 0 }
 0x1e5   : > { %v638_v4 = vsel %vm13034_vm11, %v13033_v34, %v13032_v30  ;;  %v13036_v61 = vsel %vm10123_vm2, 4294967295, %v13035_v61  ;;  %vm13040_vm0 = vmmov %vm13034_vm11  ;;  %vm13044_vm11 = vcmask 261120   ;;  %v13058_v34 = vmov 0 }
 0x1e6   : > { %13037 = vst [vmem:[#allocation19_spill] sm:$0xff] %v13036_v61  ;;  %v642_v26 = vsel %vm13040_vm0, %v13039_v58, %v13038_v0  ;;  %vm13045_vm9 = vmmov %vm13044_vm11  ;;  %v1437_v50 = vsel %vm10123_vm2, %v13046_v46, %v638_v4  ;;  %v646_v2 = vsel %vm13040_vm0, %v13051_v56, %v13050_v45  ;;  %vm13061_vm2 = vcmask 261120   ;;  %v13065_v58 = vld [vmem:[#allocation55_spill] sm:$0xff] }
 0x1e7   : > { %v1439_v52 = vsel %vm10133_vm14, %v13047_v13, %v642_v26  ;;  %v1495_v53 = vpack.c.bf16 %v1437_v50, %v13048_v59  ;;  %vm10164_vm14 = vcmp.eq.s32.totalorder %v937_v47, 15  ;;  %vm13062_vm13 = vmmov %vm13061_vm2  ;;  %v654_v46 = vsel %vm13040_vm0, %v13066_v44, %v653_v5 }
 0x1e8   : > { %v1496_v55 = vpack.c.bf16 %v1439_v52, %v13049_v25  ;;  %v13059_v34 = vsel %vm10164_vm14, 4294967295, %v13058_v34  ;;  %v13067_v50 = vmov 0  ;;  %v727_v5 = vadd.s32 264, %v9170_v1 }
 0x1e9   : > { %13060 = vst [vmem:[#allocation21_spill] sm:$0xff] %v13059_v34 }
 0x1eb   : > { %7850 = vmatmul.mubr.msk.bf16.gmra.mrb[16].mxu0 %vm13044_vm11, %v10113_v39  ;;  %vm13057_vm11 = vmmov %vm13040_vm0 }
 0x1ec   : > { %7853 = vmatprep.mubr.msk.bf16.mxu0 %vm13045_vm9, %v10116_v51  ;;  %vm10155_vm9 = vcmp.eq.s32.totalorder %v923_v17, 15  ;;  %v650_v30 = vsel %vm13057_vm11, %v13056_v40, %v13055_v18  ;;  %vm13070_vm11 = vmmov %vm13062_vm13  ;;  %v13086_v17 = vmov 0 }
 0x1ed   : > { %v13053_v62 = vsel %vm10155_vm9, 4294967295, %v13052_v62  ;;  %v1441_v3 = vsel %vm10155_vm9, %v13063_v38, %v646_v2  ;;  %v1443_v4 = vsel %vm10164_vm14, %v9705_v36, %v650_v30  ;;  %vm13071_vm14 = vmmov %vm13070_vm11 }
 0x1ee   : > { %13054 = vst [vmem:[#allocation25_spill] sm:$0xff] %v13053_v62  ;;  %v1497_v0 = vpack.c.bf16 %v1441_v3, %v13064_v29  ;;  %v1498_v26 = vpack.c.bf16 %v1443_v4, %v13065_v58  ;;  %vm13072_vm9 = vmmov %vm13070_vm11 }
 0x1ef   : > { %vm13073_vm0 = vmmov %vm13072_vm9 }
 0x1f0   : > { %vm13079_vm12 = vmmov %vm13073_vm0 }
 0x1f1   : > { %vm13081_vm10 = vmmov %vm13073_vm0 }
 0x1f3   : > { %7854 = vmatmul.mubr.msk.bf16.gmra.mrb[20].mxu0 %vm13061_vm2, %v1495_v53  ;;  %vm10182_vm2 = vcmp.eq.s32.totalorder %v951_v32, 15 }
 0x1f4   : > { %7857 = vmatprep.mubr.msk.bf16.mxu0 %vm13062_vm13, %v1496_v55  ;;  %v13068_v50 = vsel %vm10182_vm2, 4294967295, %v13067_v50  ;;  %v1445_v36 = vsel %vm10182_vm2, %v9711_v37, %v654_v46  ;;  %vm13078_vm2 = vmmov %vm13073_vm0 }
 0x1f5   : > { %13069 = vst [vmem:[#allocation23_spill] sm:$0xff] %v13068_v50  ;;  %v1499_v13 = vpack.c.bf16 %v1445_v36, %v9691_v35 }
 0x1fb   : > { %7858 = vmatmul.mubr.msk.bf16.gmra.mrb[24].mxu0 %vm13062_vm13, %v1497_v0  ;;  %vm13074_vm13 = vmmov %vm13073_vm0 }
 0x1fc   : > { %7861 = vmatprep.mubr.msk.bf16.mxu0 %vm13070_vm11, %v1498_v26  ;;  %vm13075_vm11 = vmmov %vm13073_vm0 }
 0x203   : > { %7862 = vmatmul.mubr.msk.bf16.gmra.mrb[28].mxu0 %vm13071_vm14, %v1499_v13  ;;  %vm13076_vm14 = vmmov %vm13073_vm0 }
 0x204   : > { %7869 = vmatprep.mubr.msk.bf16.mxu0 %vm13072_vm9, %v12975_v15  ;;  %vm13077_vm9 = vmmov %vm13073_vm0  ;;  %v965_v15 = vand.u32 15, %v727_v5 }
 0x20b   : > { %7870 = vmatmul.mubr.msk.bf16.vlgmr.msra.gmra.mrb[0].mxu0 %vm13073_vm0, %v9963_v33 }
 0x20c   : > { %7902 = vmatpush3.bf16.msra.mxu0 %v10001_v19  ;;  %7873 = vmatprep.mubr.msk.bf16.mxu0 %vm13074_vm13, %v10004_v21  ;;  %vm13080_vm13 = vmmov %vm13073_vm0  ;;  %v13084_v19 = vrot.slane %v9698_v7, 1  ;;  %v729_v7 = vadd.s32 280, %v9170_v1 }
 0x20d   : > { %7903 = vmatprep.subr.bf16.mxu0 %v8840_v60 }
 0x210   : > { %7904 = vmatpush3.bf16.msra.mxu0 %v8840_v60 }
 0x213   : > { %7874 = vmatmul.mubr.msk.bf16.gmra.mrb[4].mxu0 %vm13075_vm11, %v10007_v11  ;;  %vm13082_vm11 = vmmov %vm13073_vm0 }
 0x214   : > { %7877 = vmatprep.mubr.msk.bf16.mxu0 %vm13076_vm14, %v10041_v43  ;;  %vm13083_vm14 = vmmov %vm13073_vm0 }
 0x21b   : > { %7878 = vmatmul.mubr.msk.bf16.gmra.mrb[8].mxu0 %vm13077_vm9, %v10044_v16  ;;  %vm10225_vm9 = vcmp.eq.s32.totalorder %v965_v15, 15 }
 0x21c   : > { %7881 = vmatprep.mubr.msk.bf16.mxu0 %vm13078_vm2, %v10077_v49  ;;  %vm13085_vm2 = vcmask 1046528   ;;  %v13087_v17 = vsel %vm10225_vm9, 4294967295, %v13086_v17 }
 0x21d   : > { %v657_v52 = vsel %vm13085_vm2, %v13084_v19, %v13055_v18  ;;  %13088 = vst [vmem:[#allocation26_spill] sm:$0xff] %v13087_v17  ;;  %vm13094_vm2 = vmmov %vm13073_vm0 }
 0x21e   : > { %v1447_v47 = vsel %vm10225_vm9, %v9745_v23, %v657_v52  ;;  %vm13099_vm9 = vmmov %vm13073_vm0 }
 0x21f   : > { %v1500_v59 = vpack.c.bf16 %v1447_v47, %v9729_v63  ;;  %v979_v63 = vand.u32 15, %v729_v7 }
 0x223   : > { %7882 = vmatmul.mubr.msk.bf16.gmra.mrb[12].mxu0 %vm13073_vm0, %v10080_v8 }
 0x224   : > { %7885 = vmatprep.mubr.msk.bf16.mxu0 %vm13079_vm12, %v10113_v39  ;;  %vm13089_vm12 = vmmov %vm13073_vm0 }
 0x22b   : > { %7886 = vmatmul.mubr.msk.bf16.gmra.mrb[16].mxu0 %vm13080_vm13, %v10116_v51  ;;  %vm13091_vm13 = vmmov %vm13073_vm0 }
 0x22c   : > { %7889 = vmatprep.mubr.msk.bf16.mxu0 %vm13081_vm10, %v1495_v53  ;;  %vm13090_vm10 = vmmov %vm13073_vm0 }
 0x233   : > { %7890 = vmatmul.mubr.msk.bf16.gmra.mrb[20].mxu0 %vm13082_vm11, %v1496_v55  ;;  %vm13092_vm11 = vmmov %vm13073_vm0 }
 0x234   : > { %7893 = vmatprep.mubr.msk.bf16.mxu0 %vm13083_vm14, %v1497_v0  ;;  %vm13093_vm14 = vmmov %vm13073_vm0 }
 0x23b   : > { %7894 = vmatmul.mubr.msk.bf16.gmra.mrb[24].mxu0 %vm13089_vm12, %v1498_v26  ;;  %vm13095_vm12 = vmmov %vm13073_vm0 }
 0x23c   : > { %7897 = vmatprep.mubr.msk.bf16.mxu0 %vm13073_vm0, %v1499_v13 }
 0x243   : > { %7898 = vmatmul.mubr.msk.bf16.gmra.mrb[28].mxu0 %vm13090_vm10, %v1500_v59  ;;  %vm13096_vm10 = vmmov %vm13073_vm0 }
 0x244   : > { %7905 = vmatprep.mubr.msk.bf16.mxu0 %vm13091_vm13, %v9963_v33  ;;  %vm13097_vm13 = vmmov %vm13073_vm0  ;;  %v13104_v33 = vmov 0 }
 0x24b   : > { %7906 = vmatmul.mubr.msk.bf16.vlgmr.msra.gmra.mrb[0].mxu0 %vm13092_vm11, %v10004_v21  ;;  %vm13098_vm11 = vmmov %vm13073_vm0 }
 0x24c   : > { %7909 = vmatprep.mubr.msk.bf16.mxu0 %vm13093_vm14, %v10007_v11  ;;  %vm13100_vm14 = vmmov %vm13073_vm0 }
 0x253   : > { %7910 = vmatmul.mubr.msk.bf16.gmra.mrb[4].mxu0 %vm13094_vm2, %v10041_v43  ;;  %vm13101_vm2 = vmmov %vm13073_vm0 }
 0x254   : > { %7913 = vmatprep.mubr.msk.bf16.mxu0 %vm13095_vm12, %v10044_v16  ;;  %vm13102_vm12 = vmmov %vm13073_vm0 }
 0x25b   : > { %7914 = vmatmul.mubr.msk.bf16.gmra.mrb[8].mxu0 %vm13073_vm0, %v10077_v49  ;;  %vm13103_vm0 = vcmask 1046528  }
 0x25c   : > { %7917 = vmatprep.mubr.msk.bf16.mxu0 %vm13096_vm10, %v10080_v8  ;;  %v692_v23 = vsel %vm13103_vm0, %v13066_v44, %v12921_v9  ;;  %vm10262_vm10 = vcmp.eq.s32.totalorder %v979_v63, 15  ;;  %vm13112_vm0 = vmmov %vm13101_vm2 }
 0x25d   : > { %v13105_v33 = vsel %vm10262_vm10, 4294967295, %v13104_v33  ;;  %v1449_v1 = vsel %vm10262_vm10, %v9711_v37, %v692_v23 }
 0x25e   : > { %13106 = vst [vmem:[#allocation32_spill] sm:$0xff] %v13105_v33  ;;  %v1501_v21 = vpack.c.bf16 %v1449_v1, %v9691_v35 }
 0x263   : > { %7918 = vmatmul.mubr.msk.bf16.gmra.mrb[12].mxu0 %vm13097_vm13, %v10113_v39  ;;  %vm13107_vm13 = vmmov %vm13101_vm2 }
 0x264   : > { %7921 = vmatprep.mubr.msk.bf16.mxu0 %vm13098_vm11, %v10116_v51  ;;  %vm13109_vm11 = vmmov %vm13101_vm2 }
 0x26b   : > { %7922 = vmatmul.mubr.msk.bf16.gmra.mrb[16].mxu0 %vm13099_vm9, %v1495_v53  ;;  %vm13108_vm9 = vmmov %vm13101_vm2 }
 0x26c   : > { %7925 = vmatprep.mubr.msk.bf16.mxu0 %vm13100_vm14, %v1496_v55  ;;  %vm13110_vm14 = vmmov %vm13101_vm2 }
 0x273   : > { %7926 = vmatmul.mubr.msk.bf16.gmra.mrb[20].mxu0 %vm13101_vm2, %v1497_v0 }
 0x274   : > { %7929 = vmatprep.mubr.msk.bf16.mxu0 %vm13102_vm12, %v1498_v26  ;;  %vm13111_vm12 = vmmov %vm13101_vm2 }
 0x27b   : > { %7930 = vmatmul.mubr.msk.bf16.gmra.mrb[24].mxu0 %vm13107_vm13, %v1499_v13  ;;  %vm13113_vm13 = vmmov %vm13112_vm0 }
 0x27c   : > { %7933 = vmatprep.mubr.msk.bf16.mxu0 %vm13108_vm9, %v1500_v59  ;;  %vm13114_vm9 = vmmov %vm13112_vm0 }
 0x283   : > { %7934 = vmatmul.mubr.msk.bf16.gmra.mrb[28].mxu0 %vm13109_vm11, %v1501_v21  ;;  %vm13115_vm11 = vmmov %vm13112_vm0 }
 0x31e   : > { %v10273_v11 = vpop.f32.mrb[0].mxu0 }
 0x31f   : > { %v10275_v43 = vpop.f32.mrb[1].mxu0  ;;  %v3559_v8 = vmul.f32 %v10273_v11, %v10273_v11  ;;  %v3490_v53 = vsel %vm13111_vm12, %v10273_v11, 0.0  ;;  %vm13118_vm12 = vmmov %vm13112_vm0 }
 0x320   : > { %v3557_v9 = vmul.f32 %v10275_v43, %v10275_v43  ;;  %v10279_v16 = vpop.f32.mrb[2].mxu0  ;;  %v3487_v37 = vsel %vm13110_vm14, %v10275_v43, 0.0  ;;  %vm13116_vm14 = vmmov %vm13112_vm0 }
 0x321   : > { %v10281_v49 = vpop.f32.mrb[3].mxu0  ;;  %v3560_v55 = vmul.f32 %v10279_v16, %v10279_v16  ;;  %v3592_v27 = vsel %vm13114_vm9, %v3559_v8, 0.0  ;;  %v3492_v18 = vsel %vm13115_vm11, %v10279_v16, 0.0  ;;  %vm13120_vm9 = vmmov %vm13112_vm0 }
 0x322   : > { %v3488_v35 = vsel %vm13101_vm2, %v10281_v49, 0.0  ;;  %v3558_v39 = vmul.f32 %v10281_v49, %v10281_v49  ;;  %v3589_v25 = vsel %vm13112_vm0, %v3557_v9, 0.0  ;;  %vm13117_vm2 = vmmov %vm13112_vm0 }
 0x323   : > { %v3489_v51 = vadd.f32 %v3488_v35, %v3487_v37  ;;  %v3594_v4 = vsel %vm13116_vm14, %v3560_v55, 0.0  ;;  %vm13121_vm11 = vmmov %vm13112_vm0 }
 0x324   : > { %v3590_v45 = vsel %vm13113_vm13, %v3558_v39, 0.0  ;;  %vm13119_vm13 = vmmov %vm13112_vm0 }
 0x325   : > { %v3491_v56 = vadd.f32 %v3490_v53, %v3489_v51  ;;  %v3591_v2 = vadd.f32 %v3590_v45, %v3589_v25  ;;  %vm13122_vm14 = vmmov %vm13112_vm0  ;;  %v8841_v53 = vld [vmem:[%s12558_s9 + $0x30] sm:$0xff]  }
 0x326   : > { %v10300_v40 = vpop.f32.mrb[4].mxu0  ;;  %7937 = vmatprep.subr.bf16.mxu1 %v8841_v53 }
 0x327   : > { %v3593_v30 = vadd.f32 %v3592_v27, %v3591_v2  ;;  %v10302_v38 = vpop.f32.mrb[5].mxu0  ;;  %v3493_v3 = vadd.f32 %v3492_v18, %v3491_v56  ;;  %v3563_v46 = vmul.f32 %v10300_v40, %v10300_v40  ;;  %v3498_v19 = vsel %vm13119_vm13, %v10300_v40, 0.0  ;;  %vm13125_vm13 = vmmov %vm13112_vm0  ;;  %7938 = vmatpush3.bf16.msra.mxu1 %v8841_v53 }
 0x328   : > { %v3494_v32 = vsel %vm13117_vm2, %v10302_v38, 0.0  ;;  %v3561_v29 = vmul.f32 %v10302_v38, %v10302_v38  ;;  %v10309_v0 = vpop.f32.mrb[6].mxu0  ;;  %vm13123_vm2 = vmmov %vm13112_vm0 }
 0x329   : > { %v3495_v58 = vadd.f32 %v3494_v32, %v3493_v3  ;;  %v3595_v26 = vadd.f32 %v3594_v4, %v3593_v30  ;;  %v10311_v44 = vpop.f32.mrb[7].mxu0  ;;  %v3564_v52 = vmul.f32 %v10309_v0, %v10309_v0  ;;  %v3600_v63 = vsel %vm13121_vm11, %v3563_v46, 0.0  ;;  %v8842_v30 = vld [vmem:[%s12558_s9 + $0x38] sm:$0xff]   ;;  %vm13127_vm11 = vmmov %vm13112_vm0 }
 0x32a   : > { %v3596_v36 = vsel %vm13118_vm12, %v3561_v29, 0.0  ;;  %v3496_v13 = vsel %vm13112_vm0, %v10311_v44, 0.0  ;;  %v3562_v60 = vmul.f32 %v10311_v44, %v10311_v44  ;;  %v3500_v23 = vsel %vm13122_vm14, %v10309_v0, 0.0  ;;  %vm13124_vm12 = vmmov %vm13112_vm0  ;;  %7939 = vmatprep.subr.bf16.mxu1 %v8842_v30 }
 0x32b   : > { %v3597_v5 = vadd.f32 %v3596_v36, %v3595_v26  ;;  %v3497_v15 = vadd.f32 %v3496_v13, %v3495_v58  ;;  %v3602_v37 = vsel %vm13123_vm2, %v3564_v52, 0.0  ;;  %vm13128_vm14 = vmmov %vm13112_vm0  ;;  %7940 = vmatpush3.bf16.msra.mxu1 %v8842_v30  ;;  %v10390_v30 = vld [vmem:[%s12558_s9] sm:$0xff]  }
 0x32c   : > { %v3598_v47 = vsel %vm13120_vm9, %v3562_v60, 0.0  ;;  %vm13126_vm9 = vmmov %vm13112_vm0  ;;  %7973 = vmatprep.subr.bf16.mxu1 %v10390_v30 }
 0x32d   : > { %v3499_v59 = vadd.f32 %v3498_v19, %v3497_v15  ;;  %v3599_v7 = vadd.f32 %v3598_v47, %v3597_v5  ;;  %vm13129_vm2 = vmmov %vm13112_vm0 }
 0x32e   : > { %v10328_v1 = vpop.f32.mrb[8].mxu0 }
 0x32f   : > { %v3601_v21 = vadd.f32 %v3600_v63, %v3599_v7  ;;  %v10330_v9 = vpop.f32.mrb[9].mxu0  ;;  %v3501_v8 = vadd.f32 %v3500_v23, %v3499_v59  ;;  %v3567_v56 = vmul.f32 %v10328_v1, %v10328_v1  ;;  %v3506_v32 = vsel %vm13126_vm9, %v10328_v1, 0.0  ;;  %vm13132_vm9 = vmmov %vm13112_vm0 }
 0x330   : > { %v3502_v35 = vsel %vm13124_vm12, %v10330_v9, 0.0  ;;  %v3565_v39 = vmul.f32 %v10330_v9, %v10330_v9  ;;  %v10337_v51 = vpop.f32.mrb[10].mxu0  ;;  %vm13130_vm12 = vmmov %vm13112_vm0 }
 0x331   : > { %v3503_v25 = vadd.f32 %v3502_v35, %v3501_v8  ;;  %v3603_v55 = vadd.f32 %v3602_v37, %v3601_v21  ;;  %v10342_v45 = vpop.f32.mrb[11].mxu0  ;;  %v3568_v29 = vmul.f32 %v10337_v51, %v10337_v51  ;;  %v3608_v36 = vsel %vm13128_vm14, %v3567_v56, 0.0  ;;  %vm13134_vm14 = vmmov %vm13112_vm0 }
 0x332   : > { %v3604_v2 = vsel %vm13112_vm0, %v3565_v39, 0.0  ;;  %v3504_v27 = vsel %vm13125_vm13, %v10342_v45, 0.0  ;;  %v3566_v18 = vmul.f32 %v10342_v45, %v10342_v45  ;;  %v3508_v13 = vsel %vm13129_vm2, %v10337_v51, 0.0  ;;  %vm13131_vm13 = vmmov %vm13112_vm0 }
 0x333   : > { %v3605_v3 = vadd.f32 %v3604_v2, %v3603_v55  ;;  %v3505_v4 = vadd.f32 %v3504_v27, %v3503_v25  ;;  %v3610_v52 = vsel %vm13130_vm12, %v3568_v29, 0.0  ;;  %vm13135_vm2 = vmmov %vm13112_vm0 }
 0x334   : > { %v3606_v58 = vsel %vm13127_vm11, %v3566_v18, 0.0  ;;  %vm13133_vm11 = vmmov %vm13112_vm0 }
 0x335   : > { %v3507_v26 = vadd.f32 %v3506_v32, %v3505_v4  ;;  %v3607_v46 = vadd.f32 %v3606_v58, %v3605_v3  ;;  %vm13136_vm12 = vmmov %vm13112_vm0 }
 0x336   : > { %v10362_v60 = vpop.f32.mrb[12].mxu0 }
 0x337   : > { %v3609_v5 = vadd.f32 %v3608_v36, %v3607_v46  ;;  %v10364_v15 = vpop.f32.mrb[13].mxu0  ;;  %v3509_v19 = vadd.f32 %v3508_v13, %v3507_v26  ;;  %v3571_v8 = vmul.f32 %v10362_v60, %v10362_v60  ;;  %v3514_v55 = vsel %vm13133_vm11, %v10362_v60, 0.0  ;;  %vm13139_vm11 = vmmov %vm13112_vm0 }
 0x338   : > { %v3510_v47 = vsel %vm13112_vm0, %v10364_v15, 0.0  ;;  %v3569_v59 = vmul.f32 %v10364_v15, %v10364_v15  ;;  %v10371_v7 = vpop.f32.mrb[14].mxu0 }
 0x339   : > { %v3511_v63 = vadd.f32 %v3510_v47, %v3509_v19  ;;  %v3611_v23 = vadd.f32 %v3610_v52, %v3609_v5  ;;  %v10373_v21 = vpop.f32.mrb[15].mxu0  ;;  %v3572_v56 = vmul.f32 %v10371_v7, %v10371_v7  ;;  %v3616_v3 = vsel %vm13135_vm2, %v3571_v8, 0.0  ;;  %vm13141_vm2 = vmmov %vm13112_vm0 }
 0x33a   : > { %v3612_v37 = vsel %vm13131_vm13, %v3569_v59, 0.0  ;;  %v3512_v35 = vsel %vm13132_vm9, %v10373_v21, 0.0  ;;  %v3570_v39 = vmul.f32 %v10373_v21, %v10373_v21  ;;  %v3516_v4 = vsel %vm13136_vm12, %v10371_v7, 0.0  ;;  %vm13137_vm13 = vmmov %vm13112_vm0 }
 0x33b   : > { %v3613_v53 = vadd.f32 %v3612_v37, %v3611_v23  ;;  %v3513_v25 = vadd.f32 %v3512_v35, %v3511_v63  ;;  %v3618_v46 = vsel %vm13112_vm0, %v3572_v56, 0.0  ;;  %vm13138_vm9 = vmmov %vm13112_vm0 }
 0x33c   : > { %v3614_v2 = vsel %vm13134_vm14, %v3570_v39, 0.0  ;;  %vm13140_vm14 = vmmov %vm13112_vm0 }
 0x33d   : > { %v3515_v27 = vadd.f32 %v3514_v55, %v3513_v25  ;;  %v3615_v18 = vadd.f32 %v3614_v2, %v3613_v53  ;;  %vm13142_vm12 = vmmov %vm13112_vm0 }
 0x33e   : > { %v10395_v32 = vpop.f32.mrb[16].mxu0 }
 0x33f   : > { %v3617_v29 = vadd.f32 %v3616_v3, %v3615_v18  ;;  %v10397_v58 = vpop.f32.mrb[17].mxu0  ;;  %v3517_v26 = vadd.f32 %v3516_v4, %v3515_v27  ;;  %v3575_v59 = vmul.f32 %v10395_v32, %v10395_v32  ;;  %v3522_v39 = vsel %vm13140_vm14, %v10395_v32, 0.0  ;;  %vm13146_vm14 = vmmov %vm13112_vm0 }
 0x340   : > { %v3518_v36 = vsel %vm13137_vm13, %v10397_v58, 0.0  ;;  %v3573_v13 = vmul.f32 %v10397_v58, %v10397_v58  ;;  %v10405_v5 = vpop.f32.mrb[18].mxu0  ;;  %vm13143_vm13 = vmmov %vm13112_vm0 }
 0x341   : > { %v3519_v19 = vadd.f32 %v3518_v36, %v3517_v26  ;;  %v3619_v52 = vadd.f32 %v3618_v46, %v3617_v29  ;;  %v10407_v47 = vpop.f32.mrb[19].mxu0  ;;  %v3576_v53 = vmul.f32 %v10405_v5, %v10405_v5  ;;  %v3624_v2 = vsel %vm13142_vm12, %v3575_v59, 0.0  ;;  %vm13148_vm12 = vmmov %vm13112_vm0 }
 0x342   : > { %v3620_v63 = vsel %vm13138_vm9, %v3573_v13, 0.0  ;;  %v3520_v23 = vsel %vm13139_vm11, %v10407_v47, 0.0  ;;  %v3574_v8 = vmul.f32 %v10407_v47, %v10407_v47  ;;  %v3524_v27 = vsel %vm13112_vm0, %v10405_v5, 0.0  ;;  %vm13144_vm9 = vmmov %vm13112_vm0 }
 0x343   : > { %v3621_v37 = vadd.f32 %v3620_v63, %v3619_v52  ;;  %v3521_v35 = vadd.f32 %v3520_v23, %v3519_v19  ;;  %v3626_v26 = vsel %vm13143_vm13, %v3576_v53, 0.0  ;;  %vm13145_vm11 = vmmov %vm13112_vm0 }
 0x344   : > { %v3622_v25 = vsel %vm13141_vm2, %v3574_v8, 0.0  ;;  %vm13147_vm2 = vmmov %vm13112_vm0 }
 0x345   : > { %v3523_v55 = vadd.f32 %v3522_v39, %v3521_v35  ;;  %v3623_v56 = vadd.f32 %v3622_v25, %v3621_v37  ;;  %vm13149_vm13 = vmmov %vm13112_vm0 }
 0x346   : > { %v10424_v18 = vpop.f32.mrb[20].mxu0 }
 0x347   : > { %v3625_v3 = vadd.f32 %v3624_v2, %v3623_v56  ;;  %v10426_v4 = vpop.f32.mrb[21].mxu0  ;;  %v3525_v29 = vadd.f32 %v3524_v27, %v3523_v55  ;;  %v3579_v63 = vmul.f32 %v10424_v18, %v10424_v18  ;;  %v3530_v53 = vsel %vm13147_vm2, %v10424_v18, 0.0  ;;  %vm13153_vm2 = vmmov %vm13112_vm0 }
 0x348   : > { %v3526_v46 = vsel %vm13144_vm9, %v10426_v4, 0.0  ;;  %v3577_v36 = vmul.f32 %v10426_v4, %v10426_v4  ;;  %v10433_v13 = vpop.f32.mrb[22].mxu0  ;;  %vm13150_vm9 = vmmov %vm13112_vm0 }
 0x349   : > { %v3527_v19 = vadd.f32 %v3526_v46, %v3525_v29  ;;  %v3627_v52 = vadd.f32 %v3626_v26, %v3625_v3  ;;  %v10435_v59 = vpop.f32.mrb[23].mxu0  ;;  %v3580_v25 = vmul.f32 %v10433_v13, %v10433_v13  ;;  %v3632_v27 = vsel %vm13112_vm0, %v3579_v63, 0.0 }
 0x34a   : > { %v3628_v23 = vsel %vm13145_vm11, %v3577_v36, 0.0  ;;  %v3528_v8 = vsel %vm13146_vm14, %v10435_v59, 0.0  ;;  %v3578_v37 = vmul.f32 %v10435_v59, %v10435_v59  ;;  %v3532_v3 = vsel %vm13149_vm13, %v10433_v13, 0.0  ;;  %vm13151_vm11 = vmmov %vm13112_vm0 }
 0x34b   : > { %v3629_v35 = vadd.f32 %v3628_v23, %v3627_v52  ;;  %v3529_v39 = vadd.f32 %v3528_v8, %v3527_v19  ;;  %v3634_v19 = vsel %vm13150_vm9, %v3580_v25, 0.0  ;;  %vm13152_vm14 = vmmov %vm13112_vm0 }
 0x34c   : > { %v3630_v55 = vsel %vm13148_vm12, %v3578_v37, 0.0  ;;  %vm13154_vm12 = vmmov %vm13112_vm0 }
 0x34d   : > { %v3531_v56 = vadd.f32 %v3530_v53, %v3529_v39  ;;  %v3631_v2 = vadd.f32 %v3630_v55, %v3629_v35  ;;  %vm13155_vm13 = vmmov %vm13112_vm0 }
 0x34e   : > { %v10452_v29 = vpop.f32.mrb[24].mxu0  ;;  %vm13156_vm9 = vmmov %vm13112_vm0 }
 0x34f   : > { %v3633_v26 = vadd.f32 %v3632_v27, %v3631_v2  ;;  %v10454_v46 = vpop.f32.mrb[25].mxu0  ;;  %v3533_v36 = vadd.f32 %v3532_v3, %v3531_v56  ;;  %v3583_v39 = vmul.f32 %v10452_v29, %v10452_v29  ;;  %v3538_v27 = vsel %vm13154_vm12, %v10452_v29, 0.0  ;;  %vm13160_vm12 = vmmov %vm13112_vm0 }
 0x350   : > { %v3534_v52 = vsel %vm13151_vm11, %v10454_v46, 0.0  ;;  %v3581_v23 = vmul.f32 %v10454_v46, %v10454_v46  ;;  %v10461_v8 = vpop.f32.mrb[26].mxu0  ;;  %vm13157_vm11 = vmmov %vm13112_vm0 }
 0x351   : > { %v3535_v63 = vadd.f32 %v3534_v52, %v3533_v36  ;;  %v3635_v37 = vadd.f32 %v3634_v19, %v3633_v26  ;;  %v10463_v35 = vpop.f32.mrb[27].mxu0  ;;  %v3584_v3 = vmul.f32 %v10461_v8, %v10461_v8  ;;  %v3640_v52 = vsel %vm13155_vm13, %v3583_v39, 0.0  ;;  %vm13161_vm13 = vmmov %vm13112_vm0 }
 0x352   : > { %v3636_v53 = vsel %vm13152_vm14, %v3581_v23, 0.0  ;;  %v3536_v25 = vsel %vm13153_vm2, %v10463_v35, 0.0  ;;  %v3582_v55 = vmul.f32 %v10463_v35, %v10463_v35  ;;  %v3540_v23 = vsel %vm13156_vm9, %v10461_v8, 0.0  ;;  %vm13158_vm14 = vmmov %vm13112_vm0 }
 0x353   : > { %v3637_v56 = vadd.f32 %v3636_v53, %v3635_v37  ;;  %v3537_v2 = vadd.f32 %v3536_v25, %v3535_v63  ;;  %v3642_v53 = vsel %vm13157_vm11, %v3584_v3, 0.0  ;;  %vm13159_vm2 = vmmov %vm13112_vm0 }
 0x354   : > { %v3638_v26 = vsel %vm13112_vm0, %v3582_v55, 0.0  ;;  %vm13162_vm9 = vmmov %vm13112_vm0 }
 0x355   : > { %v3539_v36 = vadd.f32 %v3538_v27, %v3537_v2  ;;  %v3639_v19 = vadd.f32 %v3638_v26, %v3637_v56  ;;  %vm13163_vm11 = vmmov %vm13112_vm0 }
 0x356   : > { %v10480_v33 = vpop.f32.mrb[28].mxu0 }
 0x357   : > { %v3641_v17 = vadd.f32 %v3640_v52, %v3639_v19  ;;  %v10482_v37 = vpop.f32.mrb[29].mxu0  ;;  %v3541_v63 = vadd.f32 %v3540_v23, %v3539_v36  ;;  %v3587_v26 = vmul.f32 %v10480_v33, %v10480_v33  ;;  %v3546_v50 = vsel %vm13112_vm0, %v10480_v33, 0.0 }
 0x358   : > { %v3542_v25 = vsel %vm13158_vm14, %v10482_v37, 0.0  ;;  %v3585_v55 = vmul.f32 %v10482_v37, %v10482_v37  ;;  %v10489_v56 = vpop.f32.mrb[30].mxu0  ;;  %vm13164_vm14 = vmmov %vm13112_vm0 }
 0x359   : > { %v3543_v39 = vadd.f32 %v3542_v25, %v3541_v63  ;;  %v3643_v2 = vadd.f32 %v3642_v53, %v3641_v17  ;;  %v10491_v27 = vpop.f32.mrb[31].mxu0  ;;  %v3588_v17 = vmul.f32 %v10489_v56, %v10489_v56  ;;  %v3548_v34 = vsel %vm13163_vm11, %v10489_v56, 0.0 }
 0x35a   : > { %v3644_v19 = vsel %vm13159_vm2, %v3585_v55, 0.0  ;;  %v3544_v3 = vsel %vm13160_vm12, %v10491_v27, 0.0  ;;  %v3586_v36 = vmul.f32 %v10491_v27, %v10491_v27  ;;  %v3648_v55 = vsel %vm13162_vm9, %v3587_v26, 0.0 }
 0x35b   : > { %v3645_v52 = vadd.f32 %v3644_v19, %v3643_v2  ;;  %v3545_v23 = vadd.f32 %v3544_v3, %v3543_v39  ;;  %v3650_v2 = vsel %vm13164_vm14, %v3588_v17, 0.0 }
 0x35c   : > { %v3646_v63 = vsel %vm13161_vm13, %v3586_v36, 0.0 }
 0x35d   : > { %v3547_v53 = vadd.f32 %v3546_v50, %v3545_v23  ;;  %v3647_v25 = vadd.f32 %v3646_v63, %v3645_v52 }
 0x35f   : > { %v3549_v62 = vadd.f32 %v3548_v34, %v3547_v53  ;;  %v3649_v6 = vadd.f32 %v3648_v55, %v3647_v25 }
 0x361   : > { %v3550_v39 = vrot.slane %v3549_v62, 4  ;;  %v3651_v19 = vadd.f32 %v3650_v2, %v3649_v6 }
 0x363   : > { %v3551_v3 = vadd.f32 %v3550_v39, %v3549_v62  ;;  %v3652_v61 = vrot.slane %v3651_v19, 4 }
 0x365   : > { %v3552_v48 = vrot.slane %v3551_v3, 2  ;;  %v3653_v41 = vadd.f32 %v3652_v61, %v3651_v19 }
 0x367   : > { %v3553_v31 = vadd.f32 %v3552_v48, %v3551_v3  ;;  %v3654_v20 = vrot.slane %v3653_v41, 2 }
 0x369   : > { %v3554_v36 = vrot.slane %v3553_v31, 1  ;;  %v3655_v50 = vadd.f32 %v3654_v20, %v3653_v41 }
 0x36b   : > { %v3555_v52 = vadd.f32 %v3554_v36, %v3553_v31  ;;  %v3656_v23 = vrot.slane %v3655_v50, 1 }
 0x36d   : > { %v10509_v26 = vmul.f32 0.00390625, %v3555_v52  ;;  %v3657_v63 = vadd.f32 %v3656_v23, %v3655_v50  ;;  %v10598_v50 = vld [vmem:[%s12554_s5] ss:$0 sm:$0xff] }
 0x36f   : > { %v3658_v12 = vmul.f32 0.00390625, %v3657_v63  ;;  %v3659_v34 = vmul.f32 %v10509_v26, %v10509_v26  ;;  %v3690_v6 = vsub.f32 %v10491_v27, %v10509_v26  ;;  %v3661_v62 = vsub.f32 %v10275_v43, %v10509_v26 }
 0x370   : > { %v3662_v48 = vsub.f32 %v10281_v49, %v10509_v26  ;;  %v3663_v20 = vsub.f32 %v10273_v11, %v10509_v26  ;;  %v3664_v31 = vsub.f32 %v10279_v16, %v10509_v26  ;;  %v3665_v41 = vsub.f32 %v10302_v38, %v10509_v26 }
 0x371   : > { %v3660_v61 = vsub.f32 %v3658_v12, %v3659_v34  ;;  %v3666_v27 = vsub.f32 %v10311_v44, %v10509_v26  ;;  %v3667_v43 = vsub.f32 %v10300_v40, %v10509_v26  ;;  %v3668_v49 = vsub.f32 %v10309_v0, %v10509_v26 }
 0x372   : > { %v3669_v17 = vsub.f32 %v10330_v9, %v10509_v26  ;;  %v3670_v11 = vsub.f32 %v10342_v45, %v10509_v26  ;;  %v3671_v16 = vsub.f32 %v10328_v1, %v10509_v26  ;;  %v3672_v12 = vsub.f32 %v10337_v51, %v10509_v26 }
 0x373   : > { %v3693_v38 = vadd.f32 1e-05, %v3660_v61  ;;  %v3673_v44 = vsub.f32 %v10364_v15, %v10509_v26  ;;  %v3674_v40 = vsub.f32 %v10373_v21, %v10509_v26  ;;  %v3675_v0 = vsub.f32 %v10362_v60, %v10509_v26 }
 0x374   : > { %v3676_v9 = vsub.f32 %v10371_v7, %v10509_v26  ;;  %v3677_v1 = vsub.f32 %v10397_v58, %v10509_v26  ;;  %v3678_v51 = vsub.f32 %v10407_v47, %v10509_v26  ;;  %v3679_v45 = vsub.f32 %v10395_v32, %v10509_v26 }
 0x375   : > { %8859 = vrsqrt.f32 %v3693_v38  ;;  %v3680_v15 = vsub.f32 %v10405_v5, %v10509_v26  ;;  %v3681_v60 = vsub.f32 %v10426_v4, %v10509_v26  ;;  %v3682_v7 = vsub.f32 %v10435_v59, %v10509_v26 }
 0x376   : > { %v3683_v21 = vsub.f32 %v10424_v18, %v10509_v26  ;;  %v3684_v58 = vsub.f32 %v10433_v13, %v10509_v26  ;;  %v3685_v47 = vsub.f32 %v10454_v46, %v10509_v26  ;;  %v3686_v32 = vsub.f32 %v10463_v35, %v10509_v26  ;;  %v10587_v46 = vld [vmem:[%s422_s22] ss:$0 sm:$0xff] }
 0x377   : > { %v3687_v5 = vsub.f32 %v10452_v29, %v10509_v26  ;;  %v3688_v4 = vsub.f32 %v10461_v8, %v10509_v26  ;;  %v3689_v59 = vsub.f32 %v10482_v37, %v10509_v26  ;;  %v3691_v18 = vsub.f32 %v10480_v33, %v10509_v26  ;;  %v10592_v33 = vld [vmem:[%s12553_s4] ss:$0 sm:$0xff] }
 0x378   : > { %v3692_v13 = vsub.f32 %v10489_v56, %v10509_v26 }
 0x37f   : > { %v8860_v29 = vpop.eup %8859 }
 0x380   : > { %v3724_v8 = vmul.f32 %v8860_v29, %v3690_v6  ;;  %v3695_v35 = vmul.f32 %v8860_v29, %v3661_v62  ;;  %v3696_v37 = vmul.f32 %v8860_v29, %v3662_v48  ;;  %v3697_v53 = vmul.f32 %v8860_v29, %v3663_v20 }
 0x381   : > { %v3698_v25 = vmul.f32 %v8860_v29, %v3664_v31  ;;  %v3699_v55 = vmul.f32 %v8860_v29, %v3665_v41  ;;  %v3700_v2 = vmul.f32 %v8860_v29, %v3666_v27  ;;  %v3701_v56 = vmul.f32 %v8860_v29, %v3667_v43 }
 0x382   : > { %v3762_v39 = vadd.f32 %v10587_v46, %v3724_v8  ;;  %v3702_v19 = vmul.f32 %v8860_v29, %v3668_v49  ;;  %v3703_v3 = vmul.f32 %v8860_v29, %v3669_v17  ;;  %v3704_v36 = vmul.f32 %v8860_v29, %v3670_v11 }
 0x383   : > { %v3705_v52 = vmul.f32 %v8860_v29, %v3671_v16  ;;  %v3706_v23 = vmul.f32 %v8860_v29, %v3672_v12  ;;  %v3707_v26 = vmul.f32 %v8860_v29, %v3673_v44  ;;  %v3708_v63 = vmul.f32 %v8860_v29, %v3674_v40 }
 0x384   : > { %v3800_v34 = vmul.f32 %v10592_v33, %v3762_v39  ;;  %v3709_v6 = vmul.f32 %v8860_v29, %v3675_v0  ;;  %v3710_v62 = vmul.f32 %v8860_v29, %v3676_v9  ;;  %v3711_v48 = vmul.f32 %v8860_v29, %v3677_v1 }
 0x385   : > { %v3712_v20 = vmul.f32 %v8860_v29, %v3678_v51  ;;  %v3713_v31 = vmul.f32 %v8860_v29, %v3679_v45  ;;  %v3714_v41 = vmul.f32 %v8860_v29, %v3680_v15  ;;  %v3715_v61 = vmul.f32 %v8860_v29, %v3681_v60 }
 0x386   : > { %v3838_v27 = vadd.f32 %v10598_v50, %v3800_v34  ;;  %v3716_v43 = vmul.f32 %v8860_v29, %v3682_v7  ;;  %v3717_v49 = vmul.f32 %v8860_v29, %v3683_v21  ;;  %v3718_v17 = vmul.f32 %v8860_v29, %v3684_v58 }
 0x387   : > { %v3719_v11 = vmul.f32 %v8860_v29, %v3685_v47  ;;  %v3720_v38 = vmul.f32 %v8860_v29, %v3686_v32  ;;  %v3721_v16 = vmul.f32 %v8860_v29, %v3687_v5  ;;  %v3722_v12 = vmul.f32 %v8860_v29, %v3688_v4 }
 0x388   : > { %v3723_v44 = vmul.f32 %v8860_v29, %v3689_v59  ;;  %v3725_v40 = vmul.f32 %v8860_v29, %v3691_v18  ;;  %v3726_v8 = vmul.f32 %v8860_v29, %v3692_v13  ;;  %v3902_v39 = vmul.f32 0.2, %v3838_v27 }
 0x389   : > { %vm3870_vm2 = vcmp.ge.f32.partialorder %v3838_v27, 0.0  ;;  %v3733_v0 = vadd.f32 %v10587_v46, %v3695_v35  ;;  %v3734_v9 = vadd.f32 %v10587_v46, %v3696_v37  ;;  %v3735_v1 = vadd.f32 %v10587_v46, %v3697_v53 }
 0x38a   : > { %v10605_v51 = vsel %vm3870_vm2, %v3838_v27, %v3902_v39  ;;  %v3736_v45 = vadd.f32 %v10587_v46, %v3698_v25  ;;  %v3737_v15 = vadd.f32 %v10587_v46, %v3699_v55  ;;  %v3738_v60 = vadd.f32 %v10587_v46, %v3700_v2 }
 0x38b   : > { %13165 = vst [vmem:[#allocation27_spill] sm:$0xff] %v10605_v51  ;;  %v3739_v7 = vadd.f32 %v10587_v46, %v3701_v56  ;;  %v3740_v21 = vadd.f32 %v10587_v46, %v3702_v19  ;;  %v3741_v58 = vadd.f32 %v10587_v46, %v3703_v3  ;;  %v3742_v47 = vadd.f32 %v10587_v46, %v3704_v36 }
 0x38c   : > { %v3743_v32 = vadd.f32 %v10587_v46, %v3705_v52  ;;  %v3744_v5 = vadd.f32 %v10587_v46, %v3706_v23  ;;  %v3745_v4 = vadd.f32 %v10587_v46, %v3707_v26  ;;  %v3746_v59 = vadd.f32 %v10587_v46, %v3708_v63 }
 0x38d   : > { %v3747_v18 = vadd.f32 %v10587_v46, %v3709_v6  ;;  %v3748_v13 = vadd.f32 %v10587_v46, %v3710_v62  ;;  %v3749_v29 = vadd.f32 %v10587_v46, %v3711_v48  ;;  %v3750_v35 = vadd.f32 %v10587_v46, %v3712_v20 }
 0x38e   : > { %v3751_v37 = vadd.f32 %v10587_v46, %v3713_v31  ;;  %v3752_v53 = vadd.f32 %v10587_v46, %v3714_v41  ;;  %v3753_v25 = vadd.f32 %v10587_v46, %v3715_v61  ;;  %v3754_v55 = vadd.f32 %v10587_v46, %v3716_v43 }
 0x38f   : > { %v3755_v2 = vadd.f32 %v10587_v46, %v3717_v49  ;;  %v3756_v56 = vadd.f32 %v10587_v46, %v3718_v17  ;;  %v3757_v19 = vadd.f32 %v10587_v46, %v3719_v11  ;;  %v3758_v3 = vadd.f32 %v10587_v46, %v3720_v38 }
 0x390   : > { %v3759_v36 = vadd.f32 %v10587_v46, %v3721_v16  ;;  %v3760_v52 = vadd.f32 %v10587_v46, %v3722_v12  ;;  %v3761_v23 = vadd.f32 %v10587_v46, %v3723_v44  ;;  %v3763_v26 = vadd.f32 %v10587_v46, %v3725_v40 }
 0x391   : > { %v3764_v63 = vadd.f32 %v10587_v46, %v3726_v8  ;;  %v3771_v34 = vmul.f32 %v10592_v33, %v3733_v0  ;;  %v3772_v6 = vmul.f32 %v10592_v33, %v3734_v9  ;;  %v3773_v62 = vmul.f32 %v10592_v33, %v3735_v1 }
 0x392   : > { %v3774_v48 = vmul.f32 %v10592_v33, %v3736_v45  ;;  %v3775_v20 = vmul.f32 %v10592_v33, %v3737_v15  ;;  %v3776_v31 = vmul.f32 %v10592_v33, %v3738_v60  ;;  %v3777_v41 = vmul.f32 %v10592_v33, %v3739_v7 }
 0x393   : > { %v3778_v61 = vmul.f32 %v10592_v33, %v3740_v21  ;;  %v3779_v27 = vmul.f32 %v10592_v33, %v3741_v58  ;;  %v3780_v46 = vmul.f32 %v10592_v33, %v3742_v47  ;;  %v3781_v43 = vmul.f32 %v10592_v33, %v3743_v32 }
 0x394   : > { %v3782_v49 = vmul.f32 %v10592_v33, %v3744_v5  ;;  %v3783_v17 = vmul.f32 %v10592_v33, %v3745_v4  ;;  %v3784_v11 = vmul.f32 %v10592_v33, %v3746_v59  ;;  %v3785_v38 = vmul.f32 %v10592_v33, %v3747_v18 }
 0x395   : > { %v3786_v16 = vmul.f32 %v10592_v33, %v3748_v13  ;;  %v3787_v12 = vmul.f32 %v10592_v33, %v3749_v29  ;;  %v3788_v44 = vmul.f32 %v10592_v33, %v3750_v35  ;;  %v3789_v40 = vmul.f32 %v10592_v33, %v3751_v37 }
 0x396   : > { %v3790_v8 = vmul.f32 %v10592_v33, %v3752_v53  ;;  %v3791_v39 = vmul.f32 %v10592_v33, %v3753_v25  ;;  %v3792_v0 = vmul.f32 %v10592_v33, %v3754_v55  ;;  %v3793_v9 = vmul.f32 %v10592_v33, %v3755_v2 }
 0x397   : > { %v3794_v1 = vmul.f32 %v10592_v33, %v3756_v56  ;;  %v3795_v45 = vmul.f32 %v10592_v33, %v3757_v19  ;;  %v3796_v15 = vmul.f32 %v10592_v33, %v3758_v3  ;;  %v3797_v60 = vmul.f32 %v10592_v33, %v3759_v36 }
 0x398   : > { %v3798_v7 = vmul.f32 %v10592_v33, %v3760_v52  ;;  %v3799_v21 = vmul.f32 %v10592_v33, %v3761_v23  ;;  %v3801_v58 = vmul.f32 %v10592_v33, %v3763_v26  ;;  %v3802_v47 = vmul.f32 %v10592_v33, %v3764_v63 }
 0x399   : > { %v10667_v32 = vadd.f32 %v10598_v50, %v3771_v34  ;;  %v10670_v5 = vadd.f32 %v10598_v50, %v3772_v6  ;;  %v3811_v4 = vadd.f32 %v10598_v50, %v3773_v62  ;;  %v10674_v59 = vadd.f32 %v10598_v50, %v3774_v48 }
 0x39a   : > { %v3813_v18 = vadd.f32 %v10598_v50, %v3775_v20  ;;  %v3814_v13 = vadd.f32 %v10598_v50, %v3776_v31  ;;  %v3815_v29 = vadd.f32 %v10598_v50, %v3777_v41  ;;  %v3816_v35 = vadd.f32 %v10598_v50, %v3778_v61 }
 0x39b   : > { %v3817_v33 = vadd.f32 %v10598_v50, %v3779_v27  ;;  %v10682_v37 = vadd.f32 %v10598_v50, %v3780_v46  ;;  %v10685_v53 = vadd.f32 %v10598_v50, %v3781_v43  ;;  %v10688_v25 = vadd.f32 %v10598_v50, %v3782_v49 }
 0x39c   : > { %v10691_v55 = vadd.f32 %v10598_v50, %v3783_v17  ;;  %v10694_v2 = vadd.f32 %v10598_v50, %v3784_v11  ;;  %v10697_v56 = vadd.f32 %v10598_v50, %v3785_v38  ;;  %v10700_v19 = vadd.f32 %v10598_v50, %v3786_v16 }
 0x39d   : > { %v10703_v3 = vadd.f32 %v10598_v50, %v3787_v12  ;;  %v10706_v36 = vadd.f32 %v10598_v50, %v3788_v44  ;;  %v10709_v52 = vadd.f32 %v10598_v50, %v3789_v40  ;;  %v10712_v23 = vadd.f32 %v10598_v50, %v3790_v8 }
 0x39e   : > { %v10715_v26 = vadd.f32 %v10598_v50, %v3791_v39  ;;  %v10718_v63 = vadd.f32 %v10598_v50, %v3792_v0  ;;  %v10721_v34 = vadd.f32 %v10598_v50, %v3793_v9  ;;  %v3837_v6 = vadd.f32 %v10598_v50, %v3799_v21 }
 0x39f   : > { %v10725_v62 = vadd.f32 %v10598_v50, %v3794_v1  ;;  %v10728_v48 = vadd.f32 %v10598_v50, %v3795_v45  ;;  %v10731_v20 = vadd.f32 %v10598_v50, %v3796_v15  ;;  %v10734_v31 = vadd.f32 %v10598_v50, %v3797_v60 }
 0x3a0   : > { %v10737_v41 = vadd.f32 %v10598_v50, %v3798_v7  ;;  %v10740_v61 = vadd.f32 %v10598_v50, %v3801_v58  ;;  %vm3843_vm12 = vcmp.ge.f32.partialorder %v3811_v4, 0.0  ;;  %vm3845_vm0 = vcmp.ge.f32.partialorder %v3813_v18, 0.0 }
 0x3a1   : > { %vm3846_vm13 = vcmp.ge.f32.partialorder %v3814_v13, 0.0  ;;  %vm3847_vm9 = vcmp.ge.f32.partialorder %v3815_v29, 0.0  ;;  %vm3848_vm11 = vcmp.ge.f32.partialorder %v3816_v35, 0.0  ;;  %vm3849_vm14 = vcmp.ge.f32.partialorder %v3817_v33, 0.0 }
 0x3a2   : > { %vm3850_vm2 = vcmp.ge.f32.partialorder %v10682_v37, 0.0  ;;  %vm3851_vm10 = vcmp.ge.f32.partialorder %v10685_v53, 0.0  ;;  %vm3869_vm1 = vcmp.ge.f32.partialorder %v3837_v6, 0.0  ;;  %v3875_v27 = vmul.f32 0.2, %v3811_v4 }
 0x3a3   : > { %v10745_v46 = vadd.f32 %v10598_v50, %v3802_v47  ;;  %v3877_v43 = vmul.f32 0.2, %v3813_v18  ;;  %v3878_v49 = vmul.f32 0.2, %v3814_v13  ;;  %v3879_v17 = vmul.f32 0.2, %v3815_v29 }
 0x3a4   : > { %v3880_v11 = vmul.f32 0.2, %v3816_v35  ;;  %v3881_v38 = vmul.f32 0.2, %v3817_v33  ;;  %v3882_v16 = vmul.f32 0.2, %v10682_v37  ;;  %v10749_v12 = vsel %vm3843_vm12, %v3811_v4, %v3875_v27 }
 0x3a5   : > { %13166 = vst [vmem:[#allocation29_spill] sm:$0xff] %v10749_v12  ;;  %v3883_v44 = vmul.f32 0.2, %v10685_v53  ;;  %v10753_v40 = vmul.f32 0.2, %v10688_v25  ;;  %v10759_v50 = vsel %vm3845_vm0, %v3813_v18, %v3877_v43  ;;  %v10771_v1 = vsel %vm3846_vm13, %v3814_v13, %v3878_v49 }
 0x3a6   : > { %v10756_v8 = vmul.f32 0.2, %v10691_v55  ;;  %v10762_v39 = vmul.f32 0.2, %v10694_v2  ;;  %v10765_v0 = vmul.f32 0.2, %v10697_v56  ;;  %v10783_v7 = vsel %vm3847_vm9, %v3815_v29, %v3879_v17 }
 0x3a7   : > { %v10768_v9 = vmul.f32 0.2, %v10700_v19  ;;  %v10774_v45 = vmul.f32 0.2, %v10703_v3  ;;  %v10777_v15 = vmul.f32 0.2, %v10706_v36  ;;  %v10795_v4 = vsel %vm3848_vm11, %v3816_v35, %v3880_v11 }
 0x3a8   : > { %v10780_v60 = vmul.f32 0.2, %v10709_v52  ;;  %v10786_v21 = vmul.f32 0.2, %v10712_v23  ;;  %v10789_v58 = vmul.f32 0.2, %v10715_v26  ;;  %v10807_v27 = vsel %vm3849_vm14, %v3817_v33, %v3881_v38 }
 0x3a9   : > { %v10792_v47 = vmul.f32 0.2, %v10718_v63  ;;  %v10798_v18 = vmul.f32 0.2, %v10721_v34  ;;  %v10801_v13 = vmul.f32 0.2, %v10725_v62  ;;  %v10821_v17 = vsel %vm3850_vm2, %v10682_v37, %v3882_v16 }
 0x3aa   : > { %v10804_v29 = vmul.f32 0.2, %v10728_v48  ;;  %v10810_v43 = vmul.f32 0.2, %v10731_v20  ;;  %v10813_v49 = vmul.f32 0.2, %v10734_v31  ;;  %v10832_v38 = vsel %vm3851_vm10, %v10685_v53, %v3883_v44 }
 0x3ab   : > { %v10816_v35 = vmul.f32 0.2, %v10737_v41  ;;  %v3901_v11 = vmul.f32 0.2, %v3837_v6  ;;  %v10824_v10 = vmul.f32 0.2, %v10740_v61 }
 0x3ac   : > { %13167 = vst [vmem:[#allocation34_spill] sm:$0xff] %v10813_v49  ;;  %v10827_v33 = vmul.f32 0.2, %v10745_v46  ;;  %vm3841_vm12 = vcmp.ge.f32.partialorder %v10667_v32, 0.0  ;;  %vm3842_vm0 = vcmp.ge.f32.partialorder %v10670_v5, 0.0  ;;  %vm3844_vm13 = vcmp.ge.f32.partialorder %v10674_v59, 0.0 }
 0x3ad   : > { %13168 = vst [vmem:[#allocation41_spill] sm:$0xff] %v10816_v35  ;;  %13169 = vst [vmem:[#allocation31_spill] sm:$0xff] %v10824_v10  ;;  %v3873_v37 = vmul.f32 0.2, %v10667_v32  ;;  %v10839_v16 = vsel %vm3869_vm1, %v3837_v6, %v3901_v11  ;;  %v3874_v42 = vmul.f32 0.2, %v10670_v5 }
 0x3ae   : > { %13170 = vst [vmem:[#allocation35_spill] sm:$0xff] %v10827_v33  ;;  %13171 = vst [vmem:[#allocation42_spill] sm:$0xff] %v10839_v16  ;;  %v3876_v54 = vmul.f32 0.2, %v10674_v59  ;;  %v4069_v22 = vrot.slane %v10749_v12, 1  ;;  %vm3852_vm10 = vcmp.ge.f32.partialorder %v10688_v25, 0.0 }
 0x3af   : > { %v10846_v53 = vsel %vm3841_vm12, %v10667_v32, %v3873_v37  ;;  %v10849_v44 = vrot.slane %v10749_v12, 7  ;;  %v3977_v24 = vrot.slane %v10759_v50, 7  ;;  %v3979_v14 = vrot.slane %v10771_v1, 7 }
 0x3b0   : > { %13172 = vst [vmem:[#allocation50_spill] sm:$0xff] %v10846_v53  ;;  %v3906_v6 = vsel %vm3842_vm0, %v10670_v5, %v3874_v42  ;;  %v10855_v11 = vsel %vm3844_vm13, %v10674_v59, %v3876_v54  ;;  %v3972_v28 = vrot.slane %v10846_v53, 7  ;;  %vm3853_vm1 = vcmp.ge.f32.partialorder %v10691_v55, 0.0 }
 0x3b1   : > { %13173 = vst [vmem:[#allocation37_spill] sm:$0xff] %v10855_v11  ;;  %v3970_v33 = vrot.slane %v10855_v11, 7  ;;  %v3974_v32 = vrot.slane %v3906_v6, 7  ;;  %v10861_v37 = vrot.slane %v10855_v11, 1  ;;  %v4074_v12 = vrot.slane %v3906_v6, 1 }
 0x3b2   : > { %v10866_v42 = vpack.c.bf16 %v3906_v6, %v10846_v53  ;;  %vm13175_vm11 = vcmask 1040384   ;;  %v13178_v10 = vrot.slane %v10846_v53, 1  ;;  %vm13179_vm12 = vcmask 1046528  }
 0x3b3   : > { %v10869_v54 = vsel %vm13175_vm11, %v3977_v24, %v3979_v14  ;;  %vm13176_vm14 = vmmov %vm13175_vm11  ;;  %vm3855_vm13 = vcmp.ge.f32.partialorder %v10697_v56, 0.0  ;;  %vm3856_vm9 = vcmp.ge.f32.partialorder %v10700_v19, 0.0  ;;  %v13190_v6 = vrot.slane %v10771_v1, 1 }
 0x3b4   : > { %13174 = vst [vmem:[#allocation44_spill] sm:$0xff] %v10866_v42  ;;  %v3973_v57 = vsel %vm13176_vm14, %v3970_v33, %v3972_v28  ;;  %vm13177_vm2 = vmmov %vm13175_vm11  ;;  %v4075_v51 = vsel %vm13179_vm12, %v13178_v10, %v4074_v12  ;;  %v13191_v49 = vrot.slane %v10759_v50, 1 }
 0x3b5   : > { %v3975_v11 = vsel %vm13177_vm2, %v3972_v28, %v3974_v32  ;;  %vm13180_vm0 = vmmov %vm13179_vm12  ;;  %v4171_v42 = vsel %vm9195_vm3, %v4075_v51, %v3973_v57 }
 0x3b6   : > { %v4076_v16 = vsel %vm13180_vm0, %v4074_v12, %v4069_v22  ;;  %vm13183_vm11 = vmmov %vm13177_vm2  ;;  %v10891_v10 = vpack.c.bf16 %v3975_v11, %v4171_v42  ;;  %v12689_v42 = vrot.slane %v10795_v4, 1 }
 0x3b7   : > { %v4208_v59 = vsel %vm9208_vm4, %v3975_v11, %v4076_v16  ;;  %v10887_v35 = vsel %vm13183_vm11, %v10849_v44, %v3970_v33  ;;  %vm13184_vm14 = vmmov %vm13177_vm2  ;;  %v3983_v11 = vrot.slane %v10795_v4, 7  ;;  %vm3857_vm4 = vcmp.ge.f32.partialorder %v10703_v3, 0.0 }
 0x3b8   : > { %v3976_v28 = vsel %vm13184_vm14, %v3974_v32, %v10849_v44  ;;  %13185 = vst [vmem:[#allocation52_spill] sm:$0xff] %v10891_v10  ;;  %v10893_v12 = vpack.c.bf16 %v4208_v59, %v4075_v51  ;;  %vm13187_vm2 = vmmov %vm13180_vm0  ;;  %v3981_v51 = vrot.slane %v10783_v7, 7  ;;  %v8844_v59 = vld [vmem:[%s12558_s9 + $0x8] sm:$0xff]  }
 0x3b9   : > { %v10897_v53 = vsel %vm13187_vm2, %v4069_v22, %v10861_v37  ;;  %vm13188_vm12 = vmmov %vm13183_vm11  ;;  %vm13193_vm11 = vcmask 261120   ;;  %v3987_v22 = vrot.slane %v10821_v17, 7 }
 0x3ba   : > { %13186 = vst [vmem:[#allocation51_spill] sm:$0xff] %v10893_v12  ;;  %v3978_v57 = vsel %vm13188_vm12, %v3970_v33, %v3977_v24  ;;  %v4173_v16 = vsel %vm9212_vm5, %v10897_v53, %v3976_v28  ;;  %vm13192_vm3 = vmmov %vm13180_vm0  ;;  %vm3858_vm0 = vcmp.ge.f32.partialorder %v10706_v36, 0.0  ;;  %7941 = vmatprep.mubr.msk.bf16.mxu1 %vm13193_vm11, %v10891_v10 }
 0x3bb   : > { %v10908_v32 = vsel %vm13192_vm3, %v13191_v49, %v13190_v6  ;;  %v10917_v24 = vpack.c.bf16 %v10887_v35, %v4173_v16  ;;  %v12690_v49 = vrot.slane %v10783_v7, 1  ;;  %vm13197_vm5 = vmmov %vm13188_vm12  ;;  %v3985_v6 = vrot.slane %v10807_v27, 7 }
 0x3bc   : > { %v4175_v33 = vsel %vm9216_vm6, %v10908_v32, %v3978_v57  ;;  %v3982_v5 = vsel %vm13197_vm5, %v3979_v14, %v3981_v51  ;;  %vm13198_vm14 = vmmov %vm13197_vm5  ;;  %vm3859_vm12 = vcmp.ge.f32.partialorder %v10709_v52, 0.0  ;;  %vm3860_vm3 = vcmp.ge.f32.partialorder %v10712_v23, 0.0 }
 0x3bd   : > { %13194 = vst [vmem:[#allocation46_spill] sm:$0xff] %v10917_v24  ;;  %v10928_v28 = vpack.c.bf16 %v10869_v54, %v4175_v33  ;;  %v10932_v16 = vsel %vm13198_vm14, %v3981_v51, %v3983_v11  ;;  %vm13199_vm6 = vmmov %vm13193_vm11  ;;  %v10942_v57 = vsel %vm13187_vm2, %v12690_v49, %v12689_v42  ;;  %v3986_v49 = vsel %vm13197_vm5, %v3983_v11, %v3985_v6 }
 0x3be   : > { %7942 = vmatmul.mubr.msk.bf16.vlgmr.msra.gmra.mrb[0].mxu1 %vm13199_vm6, %v10917_v24  ;;  %vm13200_vm11 = vmmov %vm13199_vm6  ;;  %v4177_v42 = vsel %vm9297_vm7, %v10942_v57, %v3982_v5  ;;  %v10960_v33 = vsel %vm3852_vm10, %v10688_v25, %v10753_v40  ;;  %v3989_v14 = vrot.slane %v10832_v38, 7  ;;  %v13205_v5 = vrot.slane %v10807_v27, 1  ;;  %v10980_v25 = vld [vmem:[%s12558_s9 + $0x60] sm:$0xff]   ;;  %v13208_v40 = vld [vmem:[#allocation22_spill] sm:$0xff] }
 0x3bf   : > { %13196 = vst [vmem:[#allocation55_spill] sm:$0xff] %v10928_v28  ;;  %7945 = vmatprep.mubr.msk.bf16.mxu1 %vm13200_vm11, %v10928_v28  ;;  %7974 = vmatpush3.bf16.msra.mxu1 %v10390_v30  ;;  %v10964_v12 = vpack.c.bf16 %v10932_v16, %v4177_v42  ;;  %vm13203_vm14 = vmmov %vm13197_vm5  ;;  %v13204_v30 = vrot.slane %v10821_v17, 1  ;;  %v3991_v51 = vrot.slane %v10960_v33, 7  ;;  %vm3861_vm10 = vcmp.ge.f32.partialorder %v10715_v26, 0.0 }
 0x3c0   : > { %v10967_v28 = vsel %vm13203_vm14, %v3985_v6, %v3987_v22  ;;  %vm13206_vm7 = vmmov %vm13187_vm2  ;;  %7975 = vmatprep.subr.bf16.mxu1 %v8844_v59  ;;  %13207 = vst [vmem:[#allocation9_spill] sm:$0xff] %v10980_v25  ;;  %vm13209_vm6 = vnez %v13208_v40  ;;  %v12698_v24 = vrot.slane %v10832_v38, 1  ;;  %vm3862_vm11 = vcmp.ge.f32.partialorder %v10718_v63, 0.0 }
 0x3c1   : > { %13202 = vst [vmem:[#allocation53_spill] sm:$0xff] %v10964_v12  ;;  %v10974_v11 = vsel %vm13206_vm7, %v13205_v5, %v13204_v30  ;;  %vm13210_vm2 = vmmov %vm13197_vm5  ;;  %v12697_v30 = vrot.slane %v10960_v33, 1  ;;  %v11000_v40 = vsel %vm3853_vm1, %v10691_v55, %v10756_v8  ;;  %vm13213_vm14 = vcmp.ge.f32.partialorder %v10694_v2, 0.0 }
 0x3c2   : > { %v4179_v42 = vsel %vm13209_vm6, %v10974_v11, %v3986_v49  ;;  %v3990_v6 = vsel %vm13210_vm2, %v3987_v22, %v3989_v14  ;;  %vm13212_vm5 = vmmov %vm13210_vm2  ;;  %v11006_v49 = vsel %vm13213_vm14, %v10694_v2, %v10762_v39  ;;  %vm3863_vm1 = vcmp.ge.f32.partialorder %v10721_v34, 0.0  ;;  %v13214_v2 = vld [vmem:[#allocation24_spill] sm:$0xff] }
 0x3c3   : > { %v10991_v5 = vpack.c.bf16 %v10967_v28, %v4179_v42  ;;  %v10994_v10 = vsel %vm13212_vm5, %v3989_v14, %v3991_v51  ;;  %v11013_v22 = vsel %vm13206_vm7, %v12698_v24, %v12697_v30  ;;  %v3993_v14 = vrot.slane %v11000_v40, 7  ;;  %7976 = vmatpush3.bf16.msra.mxu1 %v8844_v59  ;;  %vm13217_vm14 = vmmov %vm13212_vm5 }
 0x3c4   : > { %v3995_v42 = vrot.slane %v11006_v49, 7  ;;  %vm3864_vm6 = vcmp.ge.f32.partialorder %v10725_v62, 0.0  ;;  %vm13215_vm2 = vnez %v13214_v2  ;;  %v12699_v39 = vrot.slane %v11006_v49, 1  ;;  %8009 = vmatprep.subr.bf16.mxu1 %v10980_v25 }
 0x3c5   : > { %13211 = vst [vmem:[#allocation10_spill] sm:$0xff] %v10991_v5  ;;  %v4181_v8 = vsel %vm13215_vm2, %v11013_v22, %v3990_v6  ;;  %v11028_v30 = vsel %vm3855_vm13, %v10697_v56, %v10765_v0  ;;  %v11034_v59 = vsel %vm3856_vm9, %v10700_v19, %v10768_v9  ;;  %v3994_v6 = vsel %vm13212_vm5, %v3991_v51, %v3993_v14  ;;  %vm13220_vm9 = vmmov %vm13206_vm7 }
 0x3c6   : > { %v11038_v24 = vpack.c.bf16 %v10994_v10, %v4181_v8  ;;  %v11042_v2 = vsel %vm13217_vm14, %v3993_v14, %v3995_v42  ;;  %v3997_v55 = vrot.slane %v11028_v30, 7  ;;  %vm13218_vm13 = vcmask 261120   ;;  %v13222_v14 = vld [vmem:[#allocation28_spill] sm:$0xff] }
 0x3c7   : > { %7946 = vmatmul.mubr.msk.bf16.gmra.mrb[4].mxu1 %vm13218_vm13, %v10964_v12  ;;  %v13219_v56 = vrot.slane %v11000_v40, 1  ;;  %v3999_v0 = vrot.slane %v11034_v59, 7  ;;  %vm3865_vm7 = vcmp.ge.f32.partialorder %v10728_v48, 0.0  ;;  %vm3866_vm2 = vcmp.ge.f32.partialorder %v10731_v20, 0.0  ;;  %vm13221_vm5 = vmmov %vm13218_vm13 }
 0x3c8   : > { %13216 = vst [vmem:[#allocation11_spill] sm:$0xff] %v11038_v24  ;;  %7949 = vmatprep.mubr.msk.bf16.mxu1 %vm13221_vm5, %v10991_v5  ;;  %vm13223_vm14 = vnez %v13222_v14  ;;  %vm13224_vm13 = vcmask 1040384   ;;  %v11075_v9 = vsel %vm3858_vm0, %v10706_v36, %v10777_v15  ;;  %vm13229_vm5 = vcmask 1046528  }
 0x3c9   : > { %v11052_v19 = vsel %vm13220_vm9, %v13219_v56, %v12699_v39  ;;  %v3998_v56 = vsel %vm13224_vm13, %v3995_v42, %v3997_v55  ;;  %v11069_v39 = vsel %vm3857_vm4, %v10703_v3, %v10774_v45  ;;  %vm13226_vm9 = vmmov %vm13224_vm13  ;;  %v13227_v42 = vrot.slane %v11034_v59, 1  ;;  %v13231_v45 = vld [vmem:[#allocation30_spill] sm:$0xff] }
 0x3ca   : > { %v4183_v8 = vsel %vm13223_vm14, %v11052_v19, %v3994_v6  ;;  %v11081_v14 = vsel %vm13226_vm9, %v3997_v55, %v3999_v0  ;;  %v13228_v6 = vrot.slane %v11028_v30, 1  ;;  %v4001_v3 = vrot.slane %v11069_v39, 7  ;;  %vm13234_vm13 = vmmov %vm13226_vm9 }
 0x3cb   : > { %v11078_v51 = vpack.c.bf16 %v11042_v2, %v4183_v8  ;;  %vm13232_vm4 = vnez %v13231_v45  ;;  %v4003_v15 = vrot.slane %v11075_v9, 7  ;;  %v12706_v8 = vrot.slane %v11069_v39, 1 }
 0x3cc   : > { %v11088_v5 = vsel %vm13229_vm5, %v13228_v6, %v13227_v42  ;;  %v12705_v55 = vrot.slane %v11075_v9, 1  ;;  %vm3867_vm0 = vcmp.ge.f32.partialorder %v10734_v31, 0.0  ;;  %vm3868_vm14 = vcmp.ge.f32.partialorder %v10737_v41, 0.0 }
 0x3cd   : > { %13225 = vst [vmem:[#allocation12_spill] sm:$0xff] %v11078_v51  ;;  %13230 = vst [vmem:[#allocation15_spill] sm:$0xff] %v11088_v5  ;;  %v4185_v36 = vsel %vm13232_vm4, %v11088_v5, %v3998_v56  ;;  %v4002_v42 = vsel %vm13234_vm13, %v3999_v0, %v4001_v3  ;;  %v11107_v56 = vsel %vm3859_vm12, %v10709_v52, %v10780_v60  ;;  %v13237_v60 = vld [vmem:[#allocation33_spill] sm:$0xff]  ;;  %vm13243_vm13 = vcmask 261120  }
 0x3ce   : > { %v11100_v12 = vpack.c.bf16 %v11081_v14, %v4185_v36  ;;  %v11113_v6 = vsel %vm3860_vm3, %v10712_v23, %v10786_v21  ;;  %v11116_v45 = vsel %vm13226_vm9, %v4001_v3, %v4003_v15  ;;  %v11123_v0 = vsel %vm13229_vm5, %v12706_v8, %v12705_v55  ;;  %vm13240_vm3 = vmmov %vm13226_vm9 }
 0x3cf   : > { %13235 = vst [vmem:[#allocation24_spill] sm:$0xff] %v11116_v45  ;;  %13236 = vst [vmem:[#allocation28_spill] sm:$0xff] %v11123_v0  ;;  %v4005_v36 = vrot.slane %v11107_v56, 7  ;;  %v4007_v52 = vrot.slane %v11113_v6, 7  ;;  %vm13238_vm12 = vnez %v13237_v60  ;;  %v12709_v23 = vrot.slane %v11107_v56, 1  ;;  %7950 = vmatmul.mubr.msk.bf16.gmra.mrb[8].mxu1 %vm13243_vm13, %v11038_v24 }
 0x3d0   : > { %13233 = vst [vmem:[#allocation22_spill] sm:$0xff] %v11100_v12  ;;  %v4187_v25 = vsel %vm13238_vm12, %v11123_v0, %v4002_v42  ;;  %v12708_v21 = vrot.slane %v11113_v6, 1  ;;  %v11136_v3 = vsel %vm3861_vm10, %v10715_v26, %v10789_v58  ;;  %vm13241_vm4 = vmmov %vm13240_vm3  ;;  %v11149_v42 = vsel %vm3862_vm11, %v10718_v63, %v10792_v47  ;;  %v13247_v63 = vld [vmem:[#allocation36_spill] sm:$0xff]  ;;  %v13288_v0 = vld [vmem:[#allocation31_spill] sm:$0xff] }
 0x3d1   : > { %v11139_v55 = vpack.c.bf16 %v11116_v45, %v4187_v25  ;;  %v4006_v8 = vsel %vm13240_vm3, %v4003_v15, %v4005_v36  ;;  %v11143_v5 = vsel %vm13241_vm4, %v4005_v36, %v4007_v52  ;;  %vm13244_vm10 = vmmov %vm13229_vm5  ;;  %v4009_v58 = vrot.slane %v11136_v3, 7 }
 0x3d2   : > { %13242 = vst [vmem:[#allocation33_spill] sm:$0xff] %v11143_v5  ;;  %v11158_v26 = vsel %vm13244_vm10, %v12709_v23, %v12708_v21  ;;  %v4011_v25 = vrot.slane %v11149_v42, 7  ;;  %vm3871_vm9 = vcmp.ge.f32.partialorder %v10740_v61, 0.0  ;;  %vm3872_vm11 = vcmp.ge.f32.partialorder %v10745_v46, 0.0  ;;  %vm13246_vm5 = vmmov %vm13243_vm13 }
 0x3d3   : > { %13239 = vst [vmem:[#allocation30_spill] sm:$0xff] %v11139_v55  ;;  %13245 = vst [vmem:[#allocation60_spill] sm:$0xff] %v11158_v26  ;;  %7953 = vmatprep.mubr.msk.bf16.mxu1 %vm13246_vm5, %v11078_v51  ;;  %vm13248_vm12 = vnez %v13247_v63  ;;  %v12714_v36 = vrot.slane %v11149_v42, 1  ;;  %v11175_v60 = vsel %vm3863_vm1, %v10721_v34, %v10798_v18  ;;  %v11181_v21 = vsel %vm3864_vm6, %v10725_v62, %v10801_v13 }
 0x3d4   : > { %v4189_v47 = vsel %vm13248_vm12, %v11158_v26, %v4006_v8  ;;  %v4010_v63 = vsel %vm13240_vm3, %v4007_v52, %v4009_v58  ;;  %vm13250_vm4 = vmmov %vm13240_vm3  ;;  %v4013_v15 = vrot.slane %v11175_v60, 7  ;;  %v13252_v34 = vrot.slane %v11136_v3, 1  ;;  %v13255_v52 = vld [vmem:[#allocation38_spill] sm:$0xff]  ;;  %v13279_v26 = vld [vmem:[#allocation27_spill] sm:$0xff] }
 0x3d5   : > { %v11184_v23 = vpack.c.bf16 %v11143_v5, %v4189_v47  ;;  %v11188_v8 = vsel %vm13250_vm4, %v4009_v58, %v4011_v25  ;;  %vm13253_vm1 = vmmov %vm13244_vm10  ;;  %v4015_v62 = vrot.slane %v11181_v21, 7  ;;  %v12718_v13 = vrot.slane %v11175_v60, 1 }
 0x3d6   : > { %13251 = vst [vmem:[#allocation61_spill] sm:$0xff] %v11188_v8  ;;  %v11196_v18 = vsel %vm13253_vm1, %v13252_v34, %v12714_v36  ;;  %v12717_v47 = vrot.slane %v11181_v21, 1  ;;  %vm13256_vm6 = vnez %v13255_v52  ;;  %vm13257_vm13 = vmmov %vm13240_vm3  ;;  %v11209_v24 = vsel %vm3865_vm7, %v10728_v48, %v10804_v29  ;;  %v13262_v29 = vld [vmem:[#allocation45_spill] sm:$0xff] }
 0x3d7   : > { %13249 = vst [vmem:[#allocation36_spill] sm:$0xff] %v11184_v23  ;;  %13254 = vst [vmem:[#allocation62_spill] sm:$0xff] %v11196_v18  ;;  %v4191_v58 = vsel %vm13256_vm6, %v11196_v18, %v4010_v63  ;;  %v4014_v51 = vsel %vm13257_vm13, %v4011_v25, %v4013_v15  ;;  %v11215_v34 = vsel %vm3866_vm2, %v10731_v20, %v10810_v43  ;;  %v4017_v48 = vrot.slane %v11209_v24, 7 }
 0x3d8   : > { %v11218_v36 = vpack.c.bf16 %v11188_v8, %v4191_v58  ;;  %vm13258_vm10 = vmmov %vm13240_vm3  ;;  %vm13263_vm7 = vnez %v13262_v29  ;;  %v4019_v43 = vrot.slane %v11215_v34, 7  ;;  %v12723_v63 = vrot.slane %v11209_v24, 1  ;;  %v13265_v8 = vld [vmem:[#allocation34_spill] sm:$0xff] }
 0x3d9   : > { %v11221_v52 = vsel %vm13258_vm10, %v4013_v15, %v4015_v62  ;;  %vm13260_vm5 = vmmov %vm13253_vm1  ;;  %v12722_v15 = vrot.slane %v11215_v34, 1  ;;  %vm13267_vm12 = vcmask 261120  }
 0x3da   : > { %13259 = vst [vmem:[#allocation38_spill] sm:$0xff] %v11221_v52  ;;  %v11228_v25 = vsel %vm13260_vm5, %v12718_v13, %v12717_v47  ;;  %vm13264_vm2 = vmmov %vm13240_vm3  ;;  %v11245_v47 = vsel %vm3867_vm0, %v10734_v31, %v13265_v8  ;;  %v13266_v13 = vld [vmem:[#allocation41_spill] sm:$0xff]  ;;  %7954 = vmatmul.mubr.msk.bf16.gmra.mrb[12].mxu1 %vm13267_vm12, %v11100_v12  ;;  %v13275_v12 = vld [vmem:[#allocation42_spill] sm:$0xff] }
 0x3db   : > { %13261 = vst [vmem:[#allocation63_spill] sm:$0xff] %v11228_v25  ;;  %v4193_v20 = vsel %vm13263_vm7, %v11228_v25, %v4014_v51  ;;  %v4018_v18 = vsel %vm13264_vm2, %v4015_v62, %v4017_v48  ;;  %v11251_v51 = vsel %vm3868_vm14, %v10737_v41, %v13266_v13  ;;  %vm13268_vm3 = vmmov %vm13264_vm2  ;;  %v4021_v31 = vrot.slane %v11245_v47, 7  ;;  %v13273_v41 = vld [vmem:[#allocation47_spill] sm:$0xff] }
 0x3dc   : > { %v11238_v58 = vpack.c.bf16 %v11221_v52, %v4193_v20  ;;  %v11256_v29 = vsel %vm13268_vm3, %v4017_v48, %v4019_v43  ;;  %vm13270_vm4 = vmmov %vm13253_vm1  ;;  %v4023_v8 = vrot.slane %v11251_v51, 7  ;;  %vm13274_vm14 = vnez %v13273_v41 }
 0x3dd   : > { %13269 = vst [vmem:[#allocation45_spill] sm:$0xff] %v11256_v29  ;;  %v11263_v62 = vsel %vm13270_vm4, %v12723_v63, %v12722_v15  ;;  %vm13272_vm0 = vmmov %vm13267_vm12  ;;  %v12732_v48 = vrot.slane %v11245_v47, 1  ;;  %v12731_v20 = vrot.slane %v11251_v51, 1  ;;  %v4025_v25 = vrot.slane %v13275_v12, 7 }
 0x3de   : > { %13271 = vst [vmem:[#allocation34_spill] sm:$0xff] %v11263_v62  ;;  %7957 = vmatprep.mubr.msk.bf16.mxu1 %vm13272_vm0, %v11139_v55  ;;  %v4195_v13 = vsel %vm13274_vm14, %v11263_v62, %v4018_v18  ;;  %vm13276_vm1 = vmmov %vm13264_vm2  ;;  %v4027_v55 = vrot.slane %v13279_v26, 7  ;;  %v11292_v62 = vrot.slane %v13275_v12, 1 }
 0x3df   : > { %v11276_v15 = vpack.c.bf16 %v11256_v29, %v4195_v13  ;;  %v4022_v63 = vsel %vm13276_vm1, %v4019_v43, %v4021_v31  ;;  %vm13277_vm6 = vmmov %vm13276_vm1  ;;  %v11295_v13 = vrot.slane %v13279_v26, 1  ;;  %v13285_v43 = vld [vmem:[#allocation54_spill] sm:$0xff] }
 0x3e0   : > { %v11280_v52 = vsel %vm13277_vm6, %v4021_v31, %v4023_v8  ;;  %vm13280_vm13 = vmmov %vm13270_vm4  ;;  %13283 = vst [vmem:[#allocation42_spill] sm:$0xff] %v11292_v62  ;;  %vm13286_vm5 = vnez %v13285_v43 }
 0x3e1   : > { %13278 = vst [vmem:[#allocation41_spill] sm:$0xff] %v11280_v52  ;;  %v11288_v18 = vsel %vm13280_vm13, %v12732_v48, %v12731_v20  ;;  %vm13282_vm10 = vmmov %vm13276_vm1  ;;  %v11307_v20 = vsel %vm3871_vm9, %v10740_v61, %v13288_v0  ;;  %v13292_v61 = vld [vmem:[#allocation56_spill] sm:$0xff] }
 0x3e2   : > { %13281 = vst [vmem:[#allocation47_spill] sm:$0xff] %v11288_v18  ;;  %v4026_v41 = vsel %vm13282_vm10, %v4023_v8, %v4025_v25  ;;  %13284 = vst [vmem:[#allocation27_spill] sm:$0xff] %v11295_v13  ;;  %v4197_v31 = vsel %vm13286_vm5, %v11288_v18, %v4022_v63  ;;  %v13289_v8 = vld [vmem:[#allocation35_spill] sm:$0xff]  ;;  %v4029_v43 = vrot.slane %v11307_v20, 7  ;;  %vm13293_vm9 = vnez %v13292_v61  ;;  %7958 = vmatmul.mubr.msk.bf16.gmra.mrb[16].mxu1 %vm13272_vm0, %v11184_v23 }
 0x3e3   : > { %vm13287_vm7 = vmmov %vm13276_vm1  ;;  %v11313_v48 = vsel %vm3872_vm11, %v10745_v46, %v13289_v8  ;;  %v11316_v5 = vpack.c.bf16 %v11280_v52, %v4197_v31  ;;  %v12745_v45 = vrot.slane %v11307_v20, 1  ;;  %v13294_v31 = vld [vmem:[#allocation29_spill] sm:$0xff]  ;;  %v13305_v23 = vld [vmem:[#allocation59_spill] sm:$0xff] }
 0x3e4   : > { %v11301_v29 = vsel %vm13287_vm7, %v4025_v25, %v4027_v55  ;;  %vm13291_vm2 = vmmov %vm13270_vm4  ;;  %v4031_v18 = vrot.slane %v11313_v48, 7  ;;  %v12744_v46 = vrot.slane %v11313_v48, 1  ;;  %vm13306_vm10 = vnez %v13305_v23 }
 0x3e5   : > { %13290 = vst [vmem:[#allocation54_spill] sm:$0xff] %v11316_v5  ;;  %v11321_v63 = vsel %vm13291_vm2, %v11292_v62, %v11295_v13  ;;  %vm13295_vm11 = vmmov %vm13276_vm1  ;;  %v13298_v62 = vld [vmem:[#allocation58_spill] sm:$0xff]  ;;  %v11388_v23 = vpack.c.bf16 %v10960_v33, %v10832_v38 }
 0x3e6   : > { %v4199_v0 = vsel %vm13293_vm9, %v11321_v63, %v4026_v41  ;;  %v4068_v8 = vsel %vm13295_vm11, %v13294_v31, %v10849_v44  ;;  %vm13296_vm12 = vmmov %vm13276_vm1  ;;  %vm13299_vm4 = vnez %v13298_v62  ;;  %v13303_v62 = vld [vmem:[#allocation57_spill] sm:$0xff] }
 0x3e7   : > { %v11334_v5 = vpack.c.bf16 %v11301_v29, %v4199_v0  ;;  %v4030_v13 = vsel %vm13296_vm12, %v4027_v55, %v4029_v43  ;;  %vm13297_vm3 = vmmov %vm13276_vm1  ;;  %v4169_v41 = vsel %vm13299_vm4, %v10897_v53, %v4068_v8  ;;  %v4033_v55 = vsel %vm13276_vm1, %v4031_v18, %v4025_v25  ;;  %13310 = vst [vmem:[#allocation29_spill] sm:$0xff] %v11388_v23 }
 0x3e8   : > { %v11338_v52 = vsel %vm13297_vm3, %v4029_v43, %v4031_v18  ;;  %vm13300_vm14 = vmmov %vm13291_vm2  ;;  %v11353_v61 = vpack.c.bf16 %v10887_v35, %v4169_v41  ;;  %v13301_v43 = vld [vmem:[#allocation37_spill] sm:$0xff]  ;;  %vm13304_vm13 = vnez %v13303_v62  ;;  %v11370_v41 = vpack.c.bf16 %v10771_v1, %v10759_v50 }
 0x3e9   : > { %v11350_v44 = vsel %vm13300_vm14, %v12745_v45, %v12744_v46  ;;  %v11358_v0 = vpack.c.bf16 %v13301_v43, %v13294_v31  ;;  %vm13302_vm6 = vmmov %vm13272_vm0  ;;  %v4203_v46 = vsel %vm13306_vm10, %v11321_v63, %v4033_v55  ;;  %v11374_v25 = vpack.c.bf16 %v10795_v4, %v10783_v7 }
 0x3ea   : > { %7961 = vmatprep.mubr.msk.bf16.mxu1 %vm13302_vm6, %v11218_v36  ;;  %v4201_v8 = vsel %vm13304_vm13, %v11350_v44, %v4030_v13  ;;  %13307 = vst [vmem:[#allocation31_spill] sm:$0xff] %v11370_v41  ;;  %v11380_v31 = vpack.c.bf16 %v11301_v29, %v4203_v46  ;;  %v11384_v13 = vpack.c.bf16 %v10821_v17, %v10807_v27  ;;  %vm13323_vm5 = vmmov %vm13291_vm2 }
 0x3eb   : > { %13308 = vst [vmem:[#allocation35_spill] sm:$0xff] %v11374_v25  ;;  %v11377_v18 = vpack.c.bf16 %v11338_v52, %v4201_v8  ;;  %v11392_v55 = vpack.c.bf16 %v11006_v49, %v11000_v40  ;;  %v11396_v43 = vpack.c.bf16 %v11034_v59, %v11028_v30  ;;  %v11400_v46 = vpack.c.bf16 %v11075_v9, %v11069_v39  ;;  %vm13325_vm7 = vmmov %vm13291_vm2 }
 0x3ec   : > { %13309 = vst [vmem:[#allocation56_spill] sm:$0xff] %v11384_v13  ;;  %v11404_v62 = vpack.c.bf16 %v11113_v6, %v11107_v56  ;;  %v11408_v8 = vpack.c.bf16 %v11149_v42, %v11136_v3  ;;  %v11412_v45 = vpack.c.bf16 %v11181_v21, %v11175_v60  ;;  %v13324_v13 = vrot.slane %v10759_v50, 1  ;;  %vm13332_vm9 = vmmov %vm13291_vm2 }
 0x3ed   : > { %13311 = vst [vmem:[#allocation58_spill] sm:$0xff] %v11392_v55  ;;  %13312 = vst [vmem:[#allocation37_spill] sm:$0xff] %v11396_v43  ;;  %v11416_v55 = vpack.c.bf16 %v11215_v34, %v11209_v24  ;;  %v11420_v43 = vpack.c.bf16 %v11251_v51, %v11245_v47  ;;  %v13331_v50 = vrot.slane %v10795_v4, 1 }
 0x3ee   : > { %13313 = vst [vmem:[#allocation57_spill] sm:$0xff] %v11400_v46  ;;  %13314 = vst [vmem:[#allocation59_spill] sm:$0xff] %v11404_v62  ;;  %v11424_v46 = vpack.c.bf16 %v13279_v26, %v13275_v12  ;;  %v11428_v62 = vpack.c.bf16 %v11313_v48, %v11307_v20  ;;  %v13353_v12 = vrot.slane %v11034_v59, 1  ;;  %v13359_v59 = vld [vmem:[#allocation15_spill] sm:$0xff] }
 0x3ef   : > { %13315 = vst [vmem:[#allocation64_spill] sm:$0xff] %v11408_v8  ;;  %13316 = vst [vmem:[#allocation65_spill] sm:$0xff] %v11412_v45  ;;  %v13321_v8 = vld [vmem:[#allocation50_spill] sm:$0xff] }
 0x3f0   : > { %13317 = vst [vmem:[#allocation66_spill] sm:$0xff] %v11416_v55  ;;  %13318 = vst [vmem:[#allocation67_spill] sm:$0xff] %v11420_v43  ;;  %v13322_v23 = vrot.slane %v13321_v8, 1  ;;  %v4078_v55 = vsel %vm13325_vm7, %v10861_v37, %v13324_v13  ;;  %v13329_v8 = vrot.slane %v10771_v1, 1  ;;  %v13335_v1 = vld [vmem:[#allocation48_spill] sm:$0xff] }
 0x3f1   : > { %13319 = vst [vmem:[#allocation68_spill] sm:$0xff] %v11424_v46  ;;  %13320 = vst [vmem:[#allocation69_spill] sm:$0xff] %v11428_v62  ;;  %v4210_v46 = vsel %vm9952_vm15, %v10887_v35, %v4078_v55  ;;  %v13328_v62 = vrot.slane %v10783_v7, 1  ;;  %vm13336_vm15 = vnez %v13335_v1 }
 0x3f2   : > { %v4073_v45 = vsel %vm13323_vm5, %v10861_v37, %v13322_v23  ;;  %v13330_v23 = vrot.slane %v10807_v27, 1  ;;  %vm13337_vm11 = vmmov %vm13272_vm0 }
 0x3f3   : > { %v4206_v25 = vsel %vm9936_vm8, %v10887_v35, %v4073_v45  ;;  %v4082_v41 = vsel %vm13291_vm2, %v13329_v8, %v13328_v62  ;;  %v11458_v45 = vpack.c.bf16 %v4210_v46, %v10897_v53  ;;  %v13333_v35 = vld [vmem:[#allocation43_spill] sm:$0xff]  ;;  %7962 = vmatmul.mubr.msk.bf16.gmra.mrb[20].mxu1 %vm13337_vm11, %v11238_v58  ;;  %vm13340_vm12 = vmmov %vm13291_vm2  ;;  %v13347_v46 = vld [vmem:[#allocation13_spill] sm:$0xff]  ;;  %v13350_v62 = vrot.slane %v11006_v49, 1 }
 0x3f4   : > { %v4086_v37 = vsel %vm13332_vm9, %v13331_v50, %v13330_v23  ;;  %v11455_v13 = vpack.c.bf16 %v4206_v25, %v10897_v53  ;;  %vm13334_vm8 = vnez %v13333_v35  ;;  %v13338_v53 = vrot.slane %v10832_v38, 1  ;;  %vm13343_vm3 = vmmov %vm13291_vm2  ;;  %v13357_v49 = vld [vmem:[#allocation16_spill] sm:$0xff] }
 0x3f5   : > { %v4212_v7 = vsel %vm13334_vm8, %v10869_v54, %v4082_v41  ;;  %v4214_v55 = vsel %vm13336_vm15, %v10932_v16, %v4086_v37  ;;  %v13339_v25 = vrot.slane %v10821_v17, 1  ;;  %v13341_v54 = vrot.slane %v11000_v40, 1  ;;  %vm13344_vm4 = vmmov %vm13272_vm0 }
 0x3f6   : > { %v11469_v4 = vpack.c.bf16 %v4212_v7, %v10908_v32  ;;  %v11472_v27 = vpack.c.bf16 %v4214_v55, %v10942_v57  ;;  %v13342_v41 = vrot.slane %v10960_v33, 1  ;;  %7965 = vmatprep.mubr.msk.bf16.mxu1 %vm13344_vm4, %v11276_v15  ;;  %v13345_v32 = vld [vmem:[#allocation49_spill] sm:$0xff]  ;;  %vm13348_vm14 = vnez %v13347_v46  ;;  %vm13351_vm1 = vmmov %vm13291_vm2  ;;  %v13366_v55 = vld [vmem:[#allocation24_spill] sm:$0xff] }
 0x3f7   : > { %v4090_v43 = vsel %vm13340_vm12, %v13339_v25, %v13338_v53  ;;  %vm13346_vm0 = vnez %v13345_v32  ;;  %v13349_v17 = vrot.slane %v11028_v30, 1  ;;  %v13352_v33 = vrot.slane %v11069_v39, 1  ;;  %vm13354_vm6 = vmmov %vm13351_vm1  ;;  %v13369_v53 = vld [vmem:[#allocation33_spill] sm:$0xff] }
 0x3f8   : > { %v4094_v16 = vsel %vm13343_vm3, %v13342_v41, %v13341_v54  ;;  %v4216_v57 = vsel %vm13346_vm0, %v10967_v28, %v4090_v43  ;;  %vm13358_vm10 = vnez %v13357_v49  ;;  %v13361_v35 = vrot.slane %v11075_v9, 1  ;;  %vm13362_vm5 = vmmov %vm13351_vm1  ;;  %v13370_v25 = vld [vmem:[#allocation17_spill] sm:$0xff]  ;;  %v13391_v49 = vld [vmem:[#allocation42_spill] sm:$0xff] }
 0x3f9   : > { %v4218_v38 = vsel %vm13348_vm14, %v10994_v10, %v4094_v16  ;;  %v4098_v40 = vsel %vm13351_vm1, %v13350_v62, %v13349_v17  ;;  %v4102_v8 = vsel %vm13354_vm6, %v13353_v12, %v13352_v33  ;;  %v11503_v23 = vpack.c.bf16 %v4216_v57, %v10974_v11  ;;  %v13355_v10 = vld [vmem:[#allocation14_spill] sm:$0xff]  ;;  %vm13365_vm7 = vmmov %vm13351_vm1  ;;  %v13378_v16 = vld [vmem:[#allocation28_spill] sm:$0xff] }
 0x3fa   : > { %v11506_v28 = vpack.c.bf16 %v4218_v38, %v11013_v22  ;;  %vm13356_vm13 = vnez %v13355_v10  ;;  %v4222_v50 = vsel %vm13358_vm10, %v11081_v14, %v4102_v8  ;;  %v13360_v11 = vrot.slane %v11107_v56, 1  ;;  %v13367_v14 = vld [vmem:[#allocation18_spill] sm:$0xff]  ;;  %vm13374_vm8 = vmmov %vm13351_vm1  ;;  %v13379_v57 = vld [vmem:[#allocation60_spill] sm:$0xff] }
 0x3fb   : > { %v4220_v30 = vsel %vm13356_vm13, %v11042_v2, %v4098_v40  ;;  %v11518_v37 = vpack.c.bf16 %v4222_v50, %v13359_v59  ;;  %v13363_v7 = vrot.slane %v11136_v3, 1  ;;  %v13364_v2 = vrot.slane %v11113_v6, 1  ;;  %vm13377_vm15 = vmmov %vm13351_vm1  ;;  %v13380_v38 = vld [vmem:[#allocation61_spill] sm:$0xff]  ;;  %v13381_v17 = vld [vmem:[#allocation19_spill] sm:$0xff] }
 0x3fc   : > { %v11515_v39 = vpack.c.bf16 %v4220_v30, %v11052_v19  ;;  %v4106_v22 = vsel %vm13362_vm5, %v13361_v35, %v13360_v11  ;;  %vm13368_vm2 = vnez %v13367_v14  ;;  %vm13371_vm9 = vnez %v13370_v25  ;;  %v13383_v62 = vld [vmem:[#allocation38_spill] sm:$0xff]  ;;  %vm13390_vm3 = vmmov %vm13351_vm1  ;;  %v13394_v11 = vld [vmem:[#allocation45_spill] sm:$0xff] }
 0x3fd   : > { %v4110_v1 = vsel %vm13365_vm7, %v13364_v2, %v13363_v7  ;;  %v4224_v19 = vsel %vm13368_vm2, %v13366_v55, %v4106_v22  ;;  %v13372_v56 = vrot.slane %v11175_v60, 1  ;;  %v13373_v9 = vrot.slane %v11149_v42, 1  ;;  %v13384_v42 = vld [vmem:[#allocation20_spill] sm:$0xff]  ;;  %v13386_v33 = vld [vmem:[#allocation62_spill] sm:$0xff]  ;;  %vm13393_vm4 = vmmov %vm13351_vm1 }
 0x3fe   : > { %v4226_v43 = vsel %vm13371_vm9, %v13369_v53, %v4110_v1  ;;  %v13375_v3 = vrot.slane %v11209_v24, 1  ;;  %v13376_v6 = vrot.slane %v11181_v21, 1  ;;  %v11547_v32 = vpack.c.bf16 %v4224_v19, %v13378_v16  ;;  %v13387_v21 = vld [vmem:[#allocation63_spill] sm:$0xff]  ;;  %v13395_v35 = vld [vmem:[#allocation25_spill] sm:$0xff]  ;;  %vm13403_vm6 = vmmov %vm13351_vm1 }
 0x3ff   : > { %v4114_v54 = vsel %vm13374_vm8, %v13373_v9, %v13372_v56  ;;  %v11550_v46 = vpack.c.bf16 %v4226_v43, %v13379_v57  ;;  %vm13382_vm11 = vnez %v13381_v17  ;;  %vm13385_vm12 = vnez %v13384_v42  ;;  %v13397_v7 = vld [vmem:[#allocation41_spill] sm:$0xff]  ;;  %v13404_v19 = vld [vmem:[#allocation54_spill] sm:$0xff]  ;;  %v13407_v43 = vld [vmem:[#allocation47_spill] sm:$0xff] }
 0x400   : > { %v4118_v41 = vsel %vm13377_vm15, %v13376_v6, %v13375_v3  ;;  %v4228_v60 = vsel %vm13382_vm11, %v13380_v38, %v4114_v54  ;;  %v13388_v8 = vrot.slane %v11245_v47, 1  ;;  %v13389_v10 = vrot.slane %v11215_v34, 1  ;;  %v13398_v2 = vld [vmem:[#allocation21_spill] sm:$0xff]  ;;  %v13401_v47 = vld [vmem:[#allocation27_spill] sm:$0xff]  ;;  %v13406_v53 = vld [vmem:[#allocation34_spill] sm:$0xff] }
 0x401   : > { %v4230_v40 = vsel %vm13385_vm12, %v13383_v62, %v4118_v41  ;;  %v11559_v24 = vpack.c.bf16 %v4228_v60, %v13386_v33  ;;  %v13392_v50 = vrot.slane %v11251_v51, 1  ;;  %vm13396_vm0 = vnez %v13395_v35  ;;  %v13408_v9 = vld [vmem:[#allocation23_spill] sm:$0xff]  ;;  %v13410_v54 = vld [vmem:[#allocation26_spill] sm:$0xff]  ;;  %vm13413_vm2 = vmmov %vm13351_vm1 }
 0x402   : > { %v11562_v12 = vpack.c.bf16 %v4230_v40, %v13387_v21  ;;  %v4122_v30 = vsel %vm13390_vm3, %v13389_v10, %v13388_v8  ;;  %vm13399_vm14 = vnez %v13398_v2  ;;  %v13400_v55 = vrot.slane %v11307_v20, 1  ;;  %v13414_v16 = vld [vmem:[#allocation32_spill] sm:$0xff]  ;;  %v13425_v17 = vld [vmem:[#allocation53_spill] sm:$0xff]  ;;  %v13427_v60 = vld [vmem:[#allocation10_spill] sm:$0xff] }
 0x403   : > { %v4126_v59 = vsel %vm13393_vm4, %v13392_v50, %v13391_v49  ;;  %v4232_v22 = vsel %vm13396_vm0, %v13394_v11, %v4122_v30  ;;  %v13402_v14 = vrot.slane %v11313_v48, 1  ;;  %vm13405_vm13 = vcmask 261120   ;;  %v13429_v62 = vld [vmem:[#allocation11_spill] sm:$0xff]  ;;  %v13431_v42 = vld [vmem:[#allocation12_spill] sm:$0xff]  ;;  %v13433_v40 = vld [vmem:[#allocation22_spill] sm:$0xff] }
 0x404   : > { %v4234_v1 = vsel %vm13399_vm14, %v13397_v7, %v4126_v59  ;;  %v4130_v34 = vsel %vm13351_vm1, %v13401_v47, %v13400_v55  ;;  %7966 = vmatmul.mubr.msk.bf16.gmra.mrb[24].mxu1 %vm13405_vm13, %v13404_v19  ;;  %v11590_v25 = vpack.c.bf16 %v4232_v22, %v13406_v53  ;;  %vm13409_vm10 = vnez %v13408_v9  ;;  %vm13412_vm7 = vmmov %vm13405_vm13  ;;  %v13435_v33 = vld [vmem:[#allocation30_spill] sm:$0xff]  ;;  %v13437_v21 = vld [vmem:[#allocation36_spill] sm:$0xff] }
 0x405   : > { %v4133_v51 = vsel %vm13403_vm6, %v13402_v14, %v13391_v49  ;;  %v11593_v56 = vpack.c.bf16 %v4234_v1, %v13407_v43  ;;  %v4236_v20 = vsel %vm13409_vm10, %v11301_v29, %v4130_v34  ;;  %vm13411_vm5 = vnez %v13410_v54  ;;  %7969 = vmatprep.mubr.msk.bf16.mxu1 %vm13412_vm7, %v11334_v5  ;;  %vm13416_vm8 = vmmov %vm13412_vm7  ;;  %v8848_v8 = vld [vmem:[%s12558_s9 + $0x18] sm:$0xff]   ;;  %v8849_v10 = vld [vmem:[%s12558_s9 + $0x40] sm:$0xff]  }
 0x406   : > { %v4238_v3 = vsel %vm13411_vm5, %v11338_v52, %v4133_v51  ;;  %v11604_v48 = vpack.c.bf16 %v4236_v20, %v11321_v63  ;;  %v4168_v41 = vsel %vm13413_vm2, %v13401_v47, %v13279_v26  ;;  %vm13415_vm9 = vnez %v13414_v16  ;;  %vm13417_vm15 = vmmov %vm13412_vm7  ;;  %v8846_v52 = vld [vmem:[%s12558_s9 + $0x68] sm:$0xff]   ;;  %v13468_v30 = vld [vmem:[#allocation29_spill] sm:$0xff] }
 0x407   : > { %v11607_v6 = vpack.c.bf16 %v4238_v3, %v11350_v44  ;;  %v4240_v57 = vsel %vm13415_vm9, %v11301_v29, %v4168_v41  ;;  %v13418_v44 = vld [vmem:[#allocation52_spill] sm:$0xff]  ;;  %vm13419_vm11 = vmmov %vm13412_vm7  ;;  %v13420_v26 = vld [vmem:[#allocation46_spill] sm:$0xff] }
 0x408   : > { %v11616_v38 = vpack.c.bf16 %v4240_v57, %v11321_v63  ;;  %vm13421_vm12 = vmmov %vm13412_vm7  ;;  %v13422_v29 = vld [vmem:[#allocation9_spill] sm:$0xff]  ;;  %v8847_v63 = vld [vmem:[%s12558_s9 + $0x10] sm:$0xff]  }
 0x409   : > { %vm13424_vm3 = vmmov %vm13412_vm7  ;;  %v13470_v49 = vld [vmem:[#allocation58_spill] sm:$0xff]  ;;  %v13472_v50 = vld [vmem:[#allocation37_spill] sm:$0xff] }
 0x40a   : > { %vm13426_vm4 = vmmov %vm13424_vm3  ;;  %v13474_v59 = vld [vmem:[#allocation57_spill] sm:$0xff]  ;;  %v13476_v11 = vld [vmem:[#allocation59_spill] sm:$0xff] }
 0x40b   : > { %vm13428_vm0 = vmmov %vm13424_vm3  ;;  %v13478_v35 = vld [vmem:[#allocation64_spill] sm:$0xff]  ;;  %v13480_v22 = vld [vmem:[#allocation65_spill] sm:$0xff] }
 0x40c   : > { %7970 = vmatmul.mubr.msk.bf16.gmra.mrb[28].mxu1 %vm13416_vm8, %v11377_v18  ;;  %vm13430_vm14 = vmmov %vm13428_vm0  ;;  %v13482_v7 = vld [vmem:[#allocation66_spill] sm:$0xff]  ;;  %v13484_v2 = vld [vmem:[#allocation67_spill] sm:$0xff] }
 0x40d   : > { %7977 = vmatprep.mubr.msk.bf16.mxu1 %vm13417_vm15, %v11353_v61  ;;  %v13423_v61 = vld [vmem:[#allocation55_spill] sm:$0xff]  ;;  %vm13432_vm1 = vmmov %vm13428_vm0  ;;  %v13486_v1 = vld [vmem:[#allocation68_spill] sm:$0xff] }
 0x40e   : > { %vm13434_vm6 = vmmov %vm13428_vm0  ;;  %v8852_v55 = vld [vmem:[%s12558_s9 + $0x78] sm:$0xff]   ;;  %v8853_v47 = vld [vmem:[%s12558_s9 + $0x20] sm:$0xff]  }
 0x40f   : > { %vm13436_vm13 = vmmov %vm13428_vm0  ;;  %v13502_v34 = vld [vmem:[#allocation69_spill] sm:$0xff]  ;;  %v8854_v14 = vld [vmem:[%s12558_s9 + $0x28] sm:$0xff]  }
 0x410   : > { %vm13438_vm10 = vmmov %vm13428_vm0  ;;  %v8855_v51 = vld [vmem:[%s12558_s9 + $0x50] sm:$0xff]   ;;  %v8857_v53 = vld [vmem:[%s12558_s9 + $0x80] sm:$0xff]  }
 0x411   : > { %vm13439_vm5 = vmmov %vm13428_vm0 }
 0x412   : > { %vm13440_vm7 = vmmov %vm13428_vm0 }
 0x413   : > { %vm13441_vm2 = vmmov %vm13428_vm0 }
 0x414   : > { %7978 = vmatmul.mubr.msk.bf16.vlgmr.msra.gmra.mrb[0].mxu1 %vm13419_vm11, %v13418_v44  ;;  %vm13442_vm9 = vmmov %vm13428_vm0 }
 0x415   : > { %7981 = vmatprep.mubr.msk.bf16.mxu1 %vm13421_vm12, %v13420_v26  ;;  %8010 = vmatpush3.bf16.msra.mxu1 %v13422_v29  ;;  %vm13443_vm8 = vmmov %vm13428_vm0 }
 0x416   : > { %8011 = vmatprep.subr.bf16.mxu1 %v8846_v52  ;;  %vm13444_vm15 = vmmov %vm13428_vm0 }
 0x417   : > { %vm13445_vm11 = vmmov %vm13428_vm0 }
 0x418   : > { %vm13446_vm12 = vmmov %vm13428_vm0 }
 0x419   : > { %8012 = vmatpush3.bf16.msra.mxu1 %v8846_v52 }
 0x41a   : > { %8045 = vmatprep.subr.bf16.mxu1 %v8847_v63 }
 0x41c   : > { %7982 = vmatmul.mubr.msk.bf16.gmra.mrb[4].mxu1 %vm13424_vm3, %v13423_v61  ;;  %vm13447_vm3 = vmmov %vm13428_vm0 }
 0x41d   : > { %7985 = vmatprep.mubr.msk.bf16.mxu1 %vm13426_vm4, %v13425_v17  ;;  %vm13448_vm4 = vmmov %vm13428_vm0 }
 0x424   : > { %7986 = vmatmul.mubr.msk.bf16.gmra.mrb[8].mxu1 %vm13428_vm0, %v13427_v60 }
 0x425   : > { %7989 = vmatprep.mubr.msk.bf16.mxu1 %vm13430_vm14, %v13429_v62  ;;  %vm13449_vm14 = vmmov %vm13428_vm0 }
 0x42c   : > { %7990 = vmatmul.mubr.msk.bf16.gmra.mrb[12].mxu1 %vm13432_vm1, %v13431_v42  ;;  %vm13450_vm1 = vmmov %vm13428_vm0 }
 0x42d   : > { %7993 = vmatprep.mubr.msk.bf16.mxu1 %vm13434_vm6, %v13433_v40  ;;  %vm13451_vm6 = vmmov %vm13428_vm0 }
 0x434   : > { %7994 = vmatmul.mubr.msk.bf16.gmra.mrb[16].mxu1 %vm13436_vm13, %v13435_v33  ;;  %vm13452_vm13 = vmmov %vm13428_vm0 }
 0x435   : > { %7997 = vmatprep.mubr.msk.bf16.mxu1 %vm13438_vm10, %v13437_v21  ;;  %vm13453_vm10 = vmmov %vm13428_vm0 }
 0x43c   : > { %7998 = vmatmul.mubr.msk.bf16.gmra.mrb[20].mxu1 %vm13439_vm5, %v11218_v36  ;;  %vm13454_vm5 = vmmov %vm13428_vm0 }
 0x43d   : > { %8001 = vmatprep.mubr.msk.bf16.mxu1 %vm13440_vm7, %v11238_v58  ;;  %vm13455_vm7 = vmmov %vm13428_vm0 }
 0x444   : > { %8002 = vmatmul.mubr.msk.bf16.gmra.mrb[24].mxu1 %vm13441_vm2, %v11276_v15  ;;  %vm13456_vm2 = vmmov %vm13428_vm0 }
 0x445   : > { %8005 = vmatprep.mubr.msk.bf16.mxu1 %vm13442_vm9, %v13404_v19  ;;  %vm13457_vm9 = vmmov %vm13428_vm0 }
 0x44c   : > { %8006 = vmatmul.mubr.msk.bf16.gmra.mrb[28].mxu1 %vm13443_vm8, %v11334_v5  ;;  %vm13458_vm8 = vmmov %vm13428_vm0 }
 0x44d   : > { %8013 = vmatprep.mubr.msk.bf16.mxu1 %vm13444_vm15, %v13420_v26  ;;  %vm13459_vm15 = vmmov %vm13428_vm0 }
 0x454   : > { %8014 = vmatmul.mubr.msk.bf16.vlgmr.msra.gmra.mrb[0].mxu1 %vm13445_vm11, %v13423_v61  ;;  %vm13461_vm11 = vmmov %vm13428_vm0 }
 0x455   : > { %8017 = vmatprep.mubr.msk.bf16.mxu1 %vm13446_vm12, %v13425_v17  ;;  %8046 = vmatpush3.bf16.msra.mxu1 %v8847_v63  ;;  %vm13462_vm12 = vmmov %vm13428_vm0 }
 0x456   : > { %8047 = vmatprep.subr.bf16.mxu1 %v8848_v8 }
 0x459   : > { %8048 = vmatpush3.bf16.msra.mxu1 %v8848_v8 }
 0x45a   : > { %8081 = vmatprep.subr.bf16.mxu1 %v8849_v10 }
 0x45c   : > { %8018 = vmatmul.mubr.msk.bf16.gmra.mrb[4].mxu1 %vm13447_vm3, %v13427_v60  ;;  %vm13464_vm3 = vmmov %vm13428_vm0 }
 0x45d   : > { %8021 = vmatprep.mubr.msk.bf16.mxu1 %vm13448_vm4, %v13429_v62  ;;  %vm13466_vm4 = vmmov %vm13428_vm0 }
 0x464   : > { %8022 = vmatmul.mubr.msk.bf16.gmra.mrb[8].mxu1 %vm13428_vm0, %v13431_v42 }
 0x465   : > { %8025 = vmatprep.mubr.msk.bf16.mxu1 %vm13449_vm14, %v13433_v40  ;;  %vm13469_vm14 = vmmov %vm13428_vm0 }
 0x46c   : > { %8026 = vmatmul.mubr.msk.bf16.gmra.mrb[12].mxu1 %vm13450_vm1, %v13435_v33  ;;  %vm13471_vm1 = vmmov %vm13428_vm0 }
 0x46d   : > { %8029 = vmatprep.mubr.msk.bf16.mxu1 %vm13451_vm6, %v13437_v21  ;;  %vm13473_vm6 = vmmov %vm13428_vm0 }
 0x474   : > { %8030 = vmatmul.mubr.msk.bf16.gmra.mrb[16].mxu1 %vm13452_vm13, %v11218_v36  ;;  %v8850_v36 = vld [vmem:[%s12558_s9 + $0x48] sm:$0xff]   ;;  %vm13475_vm13 = vmmov %vm13428_vm0 }
 0x475   : > { %8033 = vmatprep.mubr.msk.bf16.mxu1 %vm13453_vm10, %v11238_v58  ;;  %v13463_v58 = vld [vmem:[#allocation31_spill] sm:$0xff]  ;;  %vm13477_vm10 = vmmov %vm13428_vm0 }
 0x47c   : > { %8034 = vmatmul.mubr.msk.bf16.gmra.mrb[20].mxu1 %vm13454_vm5, %v11276_v15  ;;  %v13460_v15 = vld [vmem:[#allocation44_spill] sm:$0xff]  ;;  %vm13479_vm5 = vmmov %vm13428_vm0 }
 0x47d   : > { %8037 = vmatprep.mubr.msk.bf16.mxu1 %vm13455_vm7, %v13404_v19  ;;  %vm13481_vm7 = vmmov %vm13428_vm0  ;;  %v13520_v19 = vld [vmem:[#allocation51_spill] sm:$0xff] }
 0x484   : > { %8038 = vmatmul.mubr.msk.bf16.gmra.mrb[24].mxu1 %vm13456_vm2, %v11334_v5  ;;  %v8851_v5 = vld [vmem:[%s12558_s9 + $0x70] sm:$0xff]   ;;  %vm13483_vm2 = vmmov %vm13428_vm0 }
 0x485   : > { %8041 = vmatprep.mubr.msk.bf16.mxu1 %vm13457_vm9, %v11377_v18  ;;  %v13465_v18 = vld [vmem:[#allocation35_spill] sm:$0xff]  ;;  %vm13485_vm9 = vmmov %vm13428_vm0 }
 0x48c   : > { %8042 = vmatmul.mubr.msk.bf16.gmra.mrb[28].mxu1 %vm13458_vm8, %v11380_v31  ;;  %v13467_v31 = vld [vmem:[#allocation56_spill] sm:$0xff]  ;;  %vm13487_vm8 = vmmov %vm13428_vm0 }
 0x48d   : > { %8049 = vmatprep.mubr.msk.bf16.mxu1 %vm13459_vm15, %v11358_v0  ;;  %vm13488_vm15 = vmmov %vm13428_vm0 }
 0x494   : > { %8050 = vmatmul.mubr.msk.bf16.vlgmr.msra.gmra.mrb[0].mxu1 %vm13461_vm11, %v13460_v15  ;;  %vm13489_vm11 = vmmov %vm13428_vm0 }
 0x495   : > { %8053 = vmatprep.mubr.msk.bf16.mxu1 %vm13462_vm12, %v11358_v0  ;;  %8082 = vmatpush3.bf16.msra.mxu1 %v8849_v10  ;;  %vm13490_vm12 = vmmov %vm13428_vm0 }
 0x496   : > { %8083 = vmatprep.subr.bf16.mxu1 %v8850_v36 }
 0x499   : > { %8084 = vmatpush3.bf16.msra.mxu1 %v8850_v36 }
 0x49a   : > { %8117 = vmatprep.subr.bf16.mxu1 %v8851_v5 }
 0x49c   : > { %8054 = vmatmul.mubr.msk.bf16.gmra.mrb[4].mxu1 %vm13464_vm3, %v13463_v58  ;;  %vm13491_vm3 = vmmov %vm13428_vm0 }
 0x49d   : > { %8057 = vmatprep.mubr.msk.bf16.mxu1 %vm13466_vm4, %v13465_v18  ;;  %vm13492_vm4 = vmmov %vm13428_vm0 }
 0x4a4   : > { %8058 = vmatmul.mubr.msk.bf16.gmra.mrb[8].mxu1 %vm13428_vm0, %v13467_v31 }
 0x4a5   : > { %8061 = vmatprep.mubr.msk.bf16.mxu1 %vm13469_vm14, %v13468_v30  ;;  %vm13493_vm14 = vmmov %vm13428_vm0 }
 0x4ac   : > { %8062 = vmatmul.mubr.msk.bf16.gmra.mrb[12].mxu1 %vm13471_vm1, %v13470_v49  ;;  %vm13494_vm1 = vmmov %vm13428_vm0 }
 0x4ad   : > { %8065 = vmatprep.mubr.msk.bf16.mxu1 %vm13473_vm6, %v13472_v50  ;;  %vm13495_vm6 = vmmov %vm13428_vm0 }
 0x4b4   : > { %8066 = vmatmul.mubr.msk.bf16.gmra.mrb[16].mxu1 %vm13475_vm13, %v13474_v59  ;;  %vm13496_vm13 = vmmov %vm13428_vm0 }
 0x4b5   : > { %8069 = vmatprep.mubr.msk.bf16.mxu1 %vm13477_vm10, %v13476_v11  ;;  %vm13497_vm10 = vmmov %vm13428_vm0 }
 0x4bc   : > { %8070 = vmatmul.mubr.msk.bf16.gmra.mrb[20].mxu1 %vm13479_vm5, %v13478_v35  ;;  %vm13498_vm5 = vmmov %vm13428_vm0 }
 0x4bd   : > { %8073 = vmatprep.mubr.msk.bf16.mxu1 %vm13481_vm7, %v13480_v22  ;;  %vm13499_vm7 = vmmov %vm13428_vm0 }
 0x4c4   : > { %8074 = vmatmul.mubr.msk.bf16.gmra.mrb[24].mxu1 %vm13483_vm2, %v13482_v7  ;;  %vm13500_vm2 = vmmov %vm13428_vm0 }
 0x4c5   : > { %8077 = vmatprep.mubr.msk.bf16.mxu1 %vm13485_vm9, %v13484_v2  ;;  %vm13501_vm9 = vmmov %vm13428_vm0 }
 0x4cc   : > { %8078 = vmatmul.mubr.msk.bf16.gmra.mrb[28].mxu1 %vm13487_vm8, %v13486_v1  ;;  %vm13503_vm8 = vmmov %vm13428_vm0 }
 0x4cd   : > { %8085 = vmatprep.mubr.msk.bf16.mxu1 %vm13488_vm15, %v13460_v15  ;;  %vm13504_vm15 = vmmov %vm13428_vm0 }
 0x4d4   : > { %8086 = vmatmul.mubr.msk.bf16.vlgmr.msra.gmra.mrb[0].mxu1 %vm13489_vm11, %v11358_v0  ;;  %vm13505_vm11 = vmmov %vm13428_vm0 }
 0x4d5   : > { %8089 = vmatprep.mubr.msk.bf16.mxu1 %vm13490_vm12, %v13463_v58  ;;  %8118 = vmatpush3.bf16.msra.mxu1 %v8851_v5  ;;  %vm13506_vm12 = vmmov %vm13428_vm0 }
 0x4d6   : > { %8119 = vmatprep.subr.bf16.mxu1 %v8852_v55 }
 0x4d9   : > { %8120 = vmatpush3.bf16.msra.mxu1 %v8852_v55 }
 0x4da   : > { %8153 = vmatprep.subr.bf16.mxu1 %v8853_v47 }
 0x4dc   : > { %8090 = vmatmul.mubr.msk.bf16.gmra.mrb[4].mxu1 %vm13491_vm3, %v13465_v18  ;;  %vm13507_vm3 = vmmov %vm13428_vm0 }
 0x4dd   : > { %8093 = vmatprep.mubr.msk.bf16.mxu1 %vm13492_vm4, %v13467_v31  ;;  %vm13508_vm4 = vmmov %vm13428_vm0 }
 0x4e4   : > { %8094 = vmatmul.mubr.msk.bf16.gmra.mrb[8].mxu1 %vm13428_vm0, %v13468_v30 }
 0x4e5   : > { %8097 = vmatprep.mubr.msk.bf16.mxu1 %vm13493_vm14, %v13470_v49  ;;  %vm13509_vm14 = vmmov %vm13428_vm0 }
 0x4ec   : > { %8098 = vmatmul.mubr.msk.bf16.gmra.mrb[12].mxu1 %vm13494_vm1, %v13472_v50  ;;  %vm13510_vm1 = vmmov %vm13428_vm0 }
 0x4ed   : > { %8101 = vmatprep.mubr.msk.bf16.mxu1 %vm13495_vm6, %v13474_v59  ;;  %vm13511_vm6 = vmmov %vm13428_vm0 }
 0x4f4   : > { %8102 = vmatmul.mubr.msk.bf16.gmra.mrb[16].mxu1 %vm13496_vm13, %v13476_v11  ;;  %vm13512_vm13 = vmmov %vm13428_vm0 }
 0x4f5   : > { %8105 = vmatprep.mubr.msk.bf16.mxu1 %vm13497_vm10, %v13478_v35  ;;  %vm13513_vm10 = vmmov %vm13428_vm0 }
 0x4fc   : > { %8106 = vmatmul.mubr.msk.bf16.gmra.mrb[20].mxu1 %vm13498_vm5, %v13480_v22  ;;  %vm13514_vm5 = vmmov %vm13428_vm0 }
 0x4fd   : > { %8109 = vmatprep.mubr.msk.bf16.mxu1 %vm13499_vm7, %v13482_v7  ;;  %vm13515_vm7 = vmmov %vm13428_vm0 }
 0x504   : > { %8110 = vmatmul.mubr.msk.bf16.gmra.mrb[24].mxu1 %vm13500_vm2, %v13484_v2  ;;  %vm13516_vm2 = vmmov %vm13428_vm0 }
 0x505   : > { %8113 = vmatprep.mubr.msk.bf16.mxu1 %vm13501_vm9, %v13486_v1  ;;  %vm13517_vm9 = vmmov %vm13428_vm0 }
 0x50c   : > { %8114 = vmatmul.mubr.msk.bf16.gmra.mrb[28].mxu1 %vm13503_vm8, %v13502_v34  ;;  %vm13518_vm8 = vmmov %vm13428_vm0 }
 0x50d   : > { %8121 = vmatprep.mubr.msk.bf16.mxu1 %vm13504_vm15, %v11358_v0  ;;  %vm13519_vm15 = vmmov %vm13428_vm0  ;;  %v8856_v0 = vld [vmem:[%s12558_s9 + $0x58] sm:$0xff]  }
 0x514   : > { %8122 = vmatmul.mubr.msk.bf16.vlgmr.msra.gmra.mrb[0].mxu1 %vm13505_vm11, %v13463_v58  ;;  %vm13521_vm11 = vmmov %vm13428_vm0 }
 0x515   : > { %8125 = vmatprep.mubr.msk.bf16.mxu1 %vm13506_vm12, %v13465_v18  ;;  %8154 = vmatpush3.bf16.msra.mxu1 %v8853_v47  ;;  %vm13522_vm12 = vmmov %vm13428_vm0 }
 0x516   : > { %8155 = vmatprep.subr.bf16.mxu1 %v8854_v14 }
 0x519   : > { %8156 = vmatpush3.bf16.msra.mxu1 %v8854_v14 }
 0x51a   : > { %8189 = vmatprep.subr.bf16.mxu1 %v8855_v51 }
 0x51c   : > { %8126 = vmatmul.mubr.msk.bf16.gmra.mrb[4].mxu1 %vm13507_vm3, %v13467_v31  ;;  %vm13523_vm3 = vmmov %vm13428_vm0 }
 0x51d   : > { %8129 = vmatprep.mubr.msk.bf16.mxu1 %vm13508_vm4, %v13468_v30  ;;  %vm13524_vm4 = vmmov %vm13428_vm0 }
 0x524   : > { %8130 = vmatmul.mubr.msk.bf16.gmra.mrb[8].mxu1 %vm13428_vm0, %v13470_v49 }
 0x525   : > { %8133 = vmatprep.mubr.msk.bf16.mxu1 %vm13509_vm14, %v13472_v50  ;;  %vm13525_vm14 = vmmov %vm13428_vm0 }
 0x52c   : > { %8134 = vmatmul.mubr.msk.bf16.gmra.mrb[12].mxu1 %vm13510_vm1, %v13474_v59  ;;  %vm13526_vm1 = vmmov %vm13428_vm0 }
 0x52d   : > { %8137 = vmatprep.mubr.msk.bf16.mxu1 %vm13511_vm6, %v13476_v11  ;;  %vm13527_vm6 = vmmov %vm13428_vm0 }
 0x534   : > { %8138 = vmatmul.mubr.msk.bf16.gmra.mrb[16].mxu1 %vm13512_vm13, %v13478_v35  ;;  %vm13528_vm13 = vmmov %vm13428_vm0 }
 0x535   : > { %8141 = vmatprep.mubr.msk.bf16.mxu1 %vm13513_vm10, %v13480_v22  ;;  %vm13529_vm10 = vmmov %vm13428_vm0 }
 0x53c   : > { %8142 = vmatmul.mubr.msk.bf16.gmra.mrb[20].mxu1 %vm13514_vm5, %v13482_v7  ;;  %vm13530_vm5 = vmmov %vm13428_vm0 }
 0x53d   : > { %8145 = vmatprep.mubr.msk.bf16.mxu1 %vm13515_vm7, %v13484_v2  ;;  %vm13531_vm7 = vmmov %vm13428_vm0 }
 0x544   : > { %8146 = vmatmul.mubr.msk.bf16.gmra.mrb[24].mxu1 %vm13516_vm2, %v13486_v1  ;;  %vm13532_vm2 = vmmov %vm13428_vm0 }
 0x545   : > { %8149 = vmatprep.mubr.msk.bf16.mxu1 %vm13517_vm9, %v13502_v34  ;;  %vm13533_vm9 = vmmov %vm13428_vm0 }
 0x54c   : > { %8150 = vmatmul.mubr.msk.bf16.gmra.mrb[28].mxu1 %vm13518_vm8, %v13486_v1  ;;  %vm13534_vm8 = vmmov %vm13428_vm0 }
 0x54d   : > { %8157 = vmatprep.mubr.msk.bf16.mxu1 %vm13519_vm15, %v11455_v13  ;;  %vm13535_vm15 = vmmov %vm13428_vm0  ;;  %v8858_v13 = vld [vmem:[%s12558_s9 + $0x88] sm:$0xff]  }
 0x554   : > { %8158 = vmatmul.mubr.msk.bf16.vlgmr.msra.gmra.mrb[0].mxu1 %vm13521_vm11, %v13520_v19  ;;  %vm13536_vm11 = vmmov %vm13428_vm0 }
 0x555   : > { %8161 = vmatprep.mubr.msk.bf16.mxu1 %vm13522_vm12, %v11458_v45  ;;  %8190 = vmatpush3.bf16.msra.mxu1 %v8855_v51  ;;  %vm13537_vm12 = vmmov %vm13428_vm0 }
 0x556   : > { %8191 = vmatprep.subr.bf16.mxu1 %v8856_v0 }
 0x559   : > { %8192 = vmatpush3.bf16.msra.mxu1 %v8856_v0 }
 0x55a   : > { %8225 = vmatprep.subr.bf16.mxu1 %v8857_v53 }
 0x55c   : > { %8162 = vmatmul.mubr.msk.bf16.gmra.mrb[4].mxu1 %vm13523_vm3, %v11469_v4  ;;  %vm13538_vm3 = vmmov %vm13428_vm0 }
 0x55d   : > { %8165 = vmatprep.mubr.msk.bf16.mxu1 %vm13524_vm4, %v11472_v27  ;;  %vm13539_vm4 = vmmov %vm13428_vm0 }
 0x564   : > { %8166 = vmatmul.mubr.msk.bf16.gmra.mrb[8].mxu1 %vm13428_vm0, %v11503_v23 }
 0x565   : > { %8169 = vmatprep.mubr.msk.bf16.mxu1 %vm13525_vm14, %v11506_v28  ;;  %vm13540_vm14 = vmmov %vm13428_vm0 }
 0x56c   : > { %8170 = vmatmul.mubr.msk.bf16.gmra.mrb[12].mxu1 %vm13526_vm1, %v11515_v39  ;;  %vm13541_vm1 = vmmov %vm13428_vm0 }
 0x56d   : > { %8173 = vmatprep.mubr.msk.bf16.mxu1 %vm13527_vm6, %v11518_v37  ;;  %vm13542_vm6 = vmmov %vm13428_vm0 }
 0x574   : > { %8174 = vmatmul.mubr.msk.bf16.gmra.mrb[16].mxu1 %vm13528_vm13, %v11547_v32  ;;  %vm13543_vm13 = vmmov %vm13428_vm0 }
 0x575   : > { %8177 = vmatprep.mubr.msk.bf16.mxu1 %vm13529_vm10, %v11550_v46  ;;  %vm13544_vm10 = vmmov %vm13428_vm0 }
 0x57c   : > { %8178 = vmatmul.mubr.msk.bf16.gmra.mrb[20].mxu1 %vm13530_vm5, %v11559_v24  ;;  %vm13545_vm5 = vmmov %vm13428_vm0 }
 0x57d   : > { %8181 = vmatprep.mubr.msk.bf16.mxu1 %vm13531_vm7, %v11562_v12  ;;  %vm13546_vm7 = vmmov %vm13428_vm0 }
 0x584   : > { %8182 = vmatmul.mubr.msk.bf16.gmra.mrb[24].mxu1 %vm13532_vm2, %v11590_v25  ;;  %vm13547_vm2 = vmmov %vm13428_vm0 }
 0x585   : > { %8185 = vmatprep.mubr.msk.bf16.mxu1 %vm13533_vm9, %v11593_v56  ;;  %vm13548_vm9 = vmmov %vm13428_vm0 }
 0x58c   : > { %8186 = vmatmul.mubr.msk.bf16.gmra.mrb[28].mxu1 %vm13534_vm8, %v11604_v48  ;;  %vm13549_vm8 = vmmov %vm13428_vm0 }
 0x58d   : > { %8193 = vmatprep.mubr.msk.bf16.mxu1 %vm13535_vm15, %v13520_v19  ;;  %vm13550_vm15 = vmmov %vm13428_vm0 }
 0x594   : > { %8194 = vmatmul.mubr.msk.bf16.vlgmr.msra.gmra.mrb[0].mxu1 %vm13536_vm11, %v11458_v45  ;;  %vm13551_vm11 = vmmov %vm13428_vm0 }
 0x595   : > { %8197 = vmatprep.mubr.msk.bf16.mxu1 %vm13537_vm12, %v11469_v4  ;;  %8226 = vmatpush3.bf16.msra.mxu1 %v8857_v53  ;;  %vm13552_vm12 = vmmov %vm13428_vm0 }
 0x596   : > { %8227 = vmatprep.subr.bf16.mxu1 %v8858_v13 }
 0x599   : > { %8228 = vmatpush3.bf16.msra.mxu1 %v8858_v13 }
 0x59c   : > { %8198 = vmatmul.mubr.msk.bf16.gmra.mrb[4].mxu1 %vm13538_vm3, %v11472_v27  ;;  %vm13553_vm3 = vmmov %vm13428_vm0 }
 0x59d   : > { %8201 = vmatprep.mubr.msk.bf16.mxu1 %vm13539_vm4, %v11503_v23  ;;  %vm13554_vm4 = vmmov %vm13428_vm0 }
 0x5a4   : > { %8202 = vmatmul.mubr.msk.bf16.gmra.mrb[8].mxu1 %vm13428_vm0, %v11506_v28 }
 0x5a5   : > { %8205 = vmatprep.mubr.msk.bf16.mxu1 %vm13540_vm14, %v11515_v39  ;;  %vm13555_vm14 = vmmov %vm13428_vm0 }
 0x5ac   : > { %8206 = vmatmul.mubr.msk.bf16.gmra.mrb[12].mxu1 %vm13541_vm1, %v11518_v37  ;;  %vm13556_vm1 = vmmov %vm13428_vm0 }
 0x5ad   : > { %8209 = vmatprep.mubr.msk.bf16.mxu1 %vm13542_vm6, %v11547_v32  ;;  %vm13557_vm6 = vmmov %vm13428_vm0 }
 0x5b4   : > { %8210 = vmatmul.mubr.msk.bf16.gmra.mrb[16].mxu1 %vm13543_vm13, %v11550_v46  ;;  %vm13558_vm13 = vmmov %vm13428_vm0 }
 0x5b5   : > { %8213 = vmatprep.mubr.msk.bf16.mxu1 %vm13544_vm10, %v11559_v24  ;;  %vm13559_vm10 = vmmov %vm13428_vm0 }
 0x5bc   : > { %8214 = vmatmul.mubr.msk.bf16.gmra.mrb[20].mxu1 %vm13545_vm5, %v11562_v12  ;;  %vm13560_vm5 = vmmov %vm13428_vm0 }
 0x5bd   : > { %8217 = vmatprep.mubr.msk.bf16.mxu1 %vm13546_vm7, %v11590_v25  ;;  %vm13561_vm7 = vmmov %vm13428_vm0 }
 0x5c4   : > { %8218 = vmatmul.mubr.msk.bf16.gmra.mrb[24].mxu1 %vm13547_vm2, %v11593_v56  ;;  %vm13562_vm2 = vmmov %vm13428_vm0 }
 0x5c5   : > { %8221 = vmatprep.mubr.msk.bf16.mxu1 %vm13548_vm9, %v11604_v48  ;;  %vm13563_vm9 = vmmov %vm13428_vm0 }
 0x5cc   : > { %8222 = vmatmul.mubr.msk.bf16.gmra.mrb[28].mxu1 %vm13549_vm8, %v11607_v6  ;;  %vm13564_vm8 = vmmov %vm13428_vm0 }
 0x5cd   : > { %8229 = vmatprep.mubr.msk.bf16.mxu1 %vm13550_vm15, %v11458_v45  ;;  %vm13565_vm15 = vmmov %vm13428_vm0 }
 0x5d4   : > { %8230 = vmatmul.mubr.msk.bf16.vlgmr.msra.gmra.mrb[0].mxu1 %vm13551_vm11, %v11469_v4  ;;  %vm13566_vm11 = vmmov %vm13428_vm0 }
 0x5d5   : > { %8233 = vmatprep.mubr.msk.bf16.mxu1 %vm13552_vm12, %v11472_v27  ;;  %vm13567_vm12 = vmmov %vm13428_vm0 }
 0x5dc   : > { %8234 = vmatmul.mubr.msk.bf16.gmra.mrb[4].mxu1 %vm13553_vm3, %v11503_v23  ;;  %vm13568_vm3 = vmmov %vm13428_vm0 }
 0x5dd   : > { %8237 = vmatprep.mubr.msk.bf16.mxu1 %vm13554_vm4, %v11506_v28  ;;  %vm13569_vm4 = vmmov %vm13428_vm0 }
 0x5e4   : > { %8238 = vmatmul.mubr.msk.bf16.gmra.mrb[8].mxu1 %vm13428_vm0, %v11515_v39 }
 0x5e5   : > { %8241 = vmatprep.mubr.msk.bf16.mxu1 %vm13555_vm14, %v11518_v37  ;;  %vm13570_vm14 = vmmov %vm13428_vm0 }
 0x5ec   : > { %8242 = vmatmul.mubr.msk.bf16.gmra.mrb[12].mxu1 %vm13556_vm1, %v11547_v32  ;;  %vm13571_vm1 = vmmov %vm13428_vm0 }
 0x5ed   : > { %8245 = vmatprep.mubr.msk.bf16.mxu1 %vm13557_vm6, %v11550_v46  ;;  %vm13572_vm6 = vmmov %vm13428_vm0 }
 0x5f4   : > { %8246 = vmatmul.mubr.msk.bf16.gmra.mrb[16].mxu1 %vm13558_vm13, %v11559_v24  ;;  %vm13573_vm13 = vmmov %vm13428_vm0 }
 0x5f5   : > { %8249 = vmatprep.mubr.msk.bf16.mxu1 %vm13559_vm10, %v11562_v12  ;;  %vm13574_vm10 = vmmov %vm13428_vm0 }
 0x5fc   : > { %8250 = vmatmul.mubr.msk.bf16.gmra.mrb[20].mxu1 %vm13560_vm5, %v11590_v25  ;;  %vm13575_vm5 = vmmov %vm13428_vm0 }
 0x5fd   : > { %8253 = vmatprep.mubr.msk.bf16.mxu1 %vm13561_vm7, %v11593_v56  ;;  %vm13576_vm7 = vmmov %vm13428_vm0 }
 0x604   : > { %8254 = vmatmul.mubr.msk.bf16.gmra.mrb[24].mxu1 %vm13562_vm2, %v11604_v48  ;;  %vm13577_vm2 = vmmov %vm13428_vm0 }
 0x605   : > { %8257 = vmatprep.mubr.msk.bf16.mxu1 %vm13563_vm9, %v11607_v6  ;;  %vm13578_vm9 = vmmov %vm13428_vm0 }
 0x60c   : > { %8258 = vmatmul.mubr.msk.bf16.gmra.mrb[28].mxu1 %vm13564_vm8, %v11616_v38  ;;  %vm13579_vm8 = vmmov %vm13428_vm0 }
 0x6a7   : > { %v11916_v45 = vpop.f32.mrb[0].mxu1 }
 0x6a8   : > { %v11918_v4 = vpop.f32.mrb[1].mxu1  ;;  %v6349_v39 = vmul.f32 %v11916_v45, %v11916_v45  ;;  %v6280_v12 = vsel %vm13567_vm12, %v11916_v45, 0.0  ;;  %vm13582_vm12 = vmmov %vm13428_vm0 }
 0x6a9   : > { %v6347_v27 = vmul.f32 %v11918_v4, %v11918_v4  ;;  %v11922_v23 = vpop.f32.mrb[2].mxu1  ;;  %v6277_v37 = vsel %vm13565_vm15, %v11918_v4, 0.0  ;;  %vm13580_vm15 = vmmov %vm13428_vm0 }
 0x6aa   : > { %v11924_v28 = vpop.f32.mrb[3].mxu1  ;;  %v6350_v43 = vmul.f32 %v11922_v23, %v11922_v23  ;;  %v6382_v54 = vsel %vm13428_vm0, %v6349_v39, 0.0  ;;  %v6282_v3 = vsel %vm13570_vm14, %v11922_v23, 0.0  ;;  %vm13585_vm14 = vmmov %vm13428_vm0 }
 0x6ab   : > { %v6278_v32 = vsel %vm13566_vm11, %v11924_v28, 0.0  ;;  %v6348_v46 = vmul.f32 %v11924_v28, %v11924_v28  ;;  %v6379_v25 = vsel %vm13568_vm3, %v6347_v27, 0.0  ;;  %vm13581_vm11 = vmmov %vm13428_vm0 }
 0x6ac   : > { %v6279_v24 = vadd.f32 %v6278_v32, %v6277_v37  ;;  %v6384_v57 = vsel %vm13571_vm1, %v6350_v43, 0.0  ;;  %vm13583_vm3 = vmmov %vm13428_vm0 }
 0x6ad   : > { %v6380_v56 = vsel %vm13569_vm4, %v6348_v46, 0.0  ;;  %vm13584_vm4 = vmmov %vm13428_vm0 }
 0x6ae   : > { %v6281_v9 = vadd.f32 %v6280_v12, %v6279_v24  ;;  %v6381_v20 = vadd.f32 %v6380_v56, %v6379_v25  ;;  %vm13586_vm1 = vmmov %vm13428_vm0 }
 0x6af   : > { %v11943_v48 = vpop.f32.mrb[4].mxu1 }
 0x6b0   : > { %v6383_v6 = vadd.f32 %v6382_v54, %v6381_v20  ;;  %v11945_v41 = vpop.f32.mrb[5].mxu1  ;;  %v6283_v16 = vadd.f32 %v6282_v3, %v6281_v9  ;;  %v6353_v61 = vmul.f32 %v11943_v48, %v11943_v48  ;;  %v6288_v33 = vsel %vm13575_vm5, %v11943_v48, 0.0  ;;  %vm13590_vm5 = vmmov %vm13428_vm0 }
 0x6b1   : > { %v6284_v38 = vsel %vm13572_vm6, %v11945_v41, 0.0  ;;  %v6351_v52 = vmul.f32 %v11945_v41, %v11945_v41  ;;  %v11952_v44 = vpop.f32.mrb[6].mxu1  ;;  %vm13587_vm6 = vmmov %vm13428_vm0 }
 0x6b2   : > { %v6285_v26 = vadd.f32 %v6284_v38, %v6283_v16  ;;  %v6385_v29 = vadd.f32 %v6384_v57, %v6383_v6  ;;  %v11954_v63 = vpop.f32.mrb[7].mxu1  ;;  %v6354_v21 = vmul.f32 %v11952_v44, %v11952_v44  ;;  %v6390_v15 = vsel %vm13577_vm2, %v6353_v61, 0.0  ;;  %vm13592_vm2 = vmmov %vm13428_vm0 }
 0x6b3   : > { %v6386_v17 = vsel %vm13573_vm13, %v6351_v52, 0.0  ;;  %v6286_v60 = vsel %vm13574_vm10, %v11954_v63, 0.0  ;;  %v6352_v62 = vmul.f32 %v11954_v63, %v11954_v63  ;;  %v6290_v5 = vsel %vm13578_vm9, %v11952_v44, 0.0  ;;  %vm13588_vm13 = vmmov %vm13428_vm0 }
 0x6b4   : > { %v6387_v42 = vadd.f32 %v6386_v17, %v6385_v29  ;;  %v6287_v40 = vadd.f32 %v6286_v60, %v6285_v26  ;;  %v6392_v49 = vsel %vm13579_vm8, %v6354_v21, 0.0  ;;  %vm13589_vm10 = vmmov %vm13428_vm0 }
 0x6b5   : > { %v6388_v8 = vsel %vm13576_vm7, %v6352_v62, 0.0  ;;  %vm13591_vm7 = vmmov %vm13428_vm0 }
 0x6b6   : > { %v6289_v10 = vadd.f32 %v6288_v33, %v6287_v40  ;;  %v6389_v36 = vadd.f32 %v6388_v8, %v6387_v42  ;;  %vm13593_vm9 = vmmov %vm13428_vm0 }
 0x6b7   : > { %v11971_v58 = vpop.f32.mrb[8].mxu1  ;;  %vm13594_vm8 = vmmov %vm13428_vm0 }
 0x6b8   : > { %v6391_v18 = vadd.f32 %v6390_v15, %v6389_v36  ;;  %v11973_v31 = vpop.f32.mrb[9].mxu1  ;;  %v6291_v30 = vadd.f32 %v6290_v5, %v6289_v10  ;;  %v6357_v2 = vmul.f32 %v11971_v58, %v11971_v58  ;;  %v6296_v51 = vsel %vm13583_vm3, %v11971_v58, 0.0  ;;  %vm13598_vm3 = vmmov %vm13428_vm0 }
 0x6b9   : > { %v6292_v50 = vsel %vm13580_vm15, %v11973_v31, 0.0  ;;  %v6355_v59 = vmul.f32 %v11973_v31, %v11973_v31  ;;  %v11980_v11 = vpop.f32.mrb[10].mxu1  ;;  %vm13595_vm15 = vmmov %vm13428_vm0 }
 0x6ba   : > { %v6293_v35 = vadd.f32 %v6292_v50, %v6291_v30  ;;  %v6393_v22 = vadd.f32 %v6392_v49, %v6391_v18  ;;  %v11982_v7 = vpop.f32.mrb[11].mxu1  ;;  %v6358_v0 = vmul.f32 %v11980_v11, %v11980_v11  ;;  %v6398_v27 = vsel %vm13428_vm0, %v6357_v2, 0.0 }
 0x6bb   : > { %v6394_v1 = vsel %vm13581_vm11, %v6355_v59, 0.0  ;;  %v6294_v55 = vsel %vm13582_vm12, %v11982_v7, 0.0  ;;  %v6356_v47 = vmul.f32 %v11982_v7, %v11982_v7  ;;  %v6298_v39 = vsel %vm13585_vm14, %v11980_v11, 0.0  ;;  %vm13596_vm11 = vmmov %vm13428_vm0 }
 0x6bc   : > { %v6395_v34 = vadd.f32 %v6394_v1, %v6393_v22  ;;  %v6295_v14 = vadd.f32 %v6294_v55, %v6293_v35  ;;  %v6400_v12 = vsel %vm13586_vm1, %v6358_v0, 0.0  ;;  %vm13597_vm12 = vmmov %vm13428_vm0 }
 0x6bd   : > { %v6396_v19 = vsel %vm13584_vm4, %v6356_v47, 0.0  ;;  %vm13599_vm4 = vmmov %vm13428_vm0 }
 0x6be   : > { %v6297_v53 = vadd.f32 %v6296_v51, %v6295_v14  ;;  %v6397_v13 = vadd.f32 %v6396_v19, %v6395_v34  ;;  %vm13600_vm14 = vmmov %vm13428_vm0 }
 0x6bf   : > { %v11999_v37 = vpop.f32.mrb[12].mxu1  ;;  %vm13601_vm1 = vmmov %vm13428_vm0 }
 0x6c0   : > { %v6399_v32 = vadd.f32 %v6398_v27, %v6397_v13  ;;  %v12001_v46 = vpop.f32.mrb[13].mxu1  ;;  %v6299_v24 = vadd.f32 %v6298_v39, %v6297_v53  ;;  %v6361_v3 = vmul.f32 %v11999_v37, %v11999_v37  ;;  %v6304_v26 = vsel %vm13590_vm5, %v11999_v37, 0.0  ;;  %vm13605_vm5 = vmmov %vm13428_vm0 }
 0x6c1   : > { %v6300_v25 = vsel %vm13587_vm6, %v12001_v46, 0.0  ;;  %v6359_v43 = vmul.f32 %v12001_v46, %v12001_v46  ;;  %v12008_v56 = vpop.f32.mrb[14].mxu1  ;;  %vm13602_vm6 = vmmov %vm13428_vm0 }
 0x6c2   : > { %v6301_v9 = vadd.f32 %v6300_v25, %v6299_v24  ;;  %v6401_v20 = vadd.f32 %v6400_v12, %v6399_v32  ;;  %v12010_v54 = vpop.f32.mrb[15].mxu1  ;;  %v6362_v29 = vmul.f32 %v12008_v56, %v12008_v56  ;;  %v6406_v62 = vsel %vm13592_vm2, %v6361_v3, 0.0  ;;  %vm13607_vm2 = vmmov %vm13428_vm0 }
 0x6c3   : > { %v6402_v6 = vsel %vm13588_vm13, %v6359_v43, 0.0  ;;  %v6302_v16 = vsel %vm13589_vm10, %v12010_v54, 0.0  ;;  %v6360_v57 = vmul.f32 %v12010_v54, %v12010_v54  ;;  %v6306_v42 = vsel %vm13593_vm9, %v12008_v56, 0.0  ;;  %vm13603_vm13 = vmmov %vm13428_vm0 }
 0x6c4   : > { %v6403_v38 = vadd.f32 %v6402_v6, %v6401_v20  ;;  %v6303_v52 = vadd.f32 %v6302_v16, %v6301_v9  ;;  %v6408_v10 = vsel %vm13594_vm8, %v6362_v29, 0.0  ;;  %vm13604_vm10 = vmmov %vm13428_vm0 }
 0x6c5   : > { %v6404_v61 = vsel %vm13591_vm7, %v6360_v57, 0.0  ;;  %vm13606_vm7 = vmmov %vm13428_vm0 }
 0x6c6   : > { %v6305_v17 = vadd.f32 %v6304_v26, %v6303_v52  ;;  %v6405_v60 = vadd.f32 %v6404_v61, %v6403_v38  ;;  %vm13608_vm9 = vmmov %vm13428_vm0 }
 0x6c7   : > { %v12027_v40 = vpop.f32.mrb[16].mxu1  ;;  %vm13609_vm8 = vmmov %vm13428_vm0 }
 0x6c8   : > { %v6407_v33 = vadd.f32 %v6406_v62, %v6405_v60  ;;  %v12029_v21 = vpop.f32.mrb[17].mxu1  ;;  %v6307_v8 = vadd.f32 %v6306_v42, %v6305_v17  ;;  %v6365_v50 = vmul.f32 %v12027_v40, %v12027_v40  ;;  %v6312_v55 = vsel %vm13598_vm3, %v12027_v40, 0.0  ;;  %vm13613_vm3 = vmmov %vm13428_vm0 }
 0x6c9   : > { %v6308_v36 = vsel %vm13595_vm15, %v12029_v21, 0.0  ;;  %v6363_v15 = vmul.f32 %v12029_v21, %v12029_v21  ;;  %v12036_v5 = vpop.f32.mrb[18].mxu1  ;;  %vm13610_vm15 = vmmov %vm13428_vm0 }
 0x6ca   : > { %v6309_v18 = vadd.f32 %v6308_v36, %v6307_v8  ;;  %v6409_v30 = vadd.f32 %v6408_v10, %v6407_v33  ;;  %v12038_v49 = vpop.f32.mrb[19].mxu1  ;;  %v6366_v47 = vmul.f32 %v12036_v5, %v12036_v5  ;;  %v6414_v0 = vsel %vm13428_vm0, %v6365_v50, 0.0 }
 0x6cb   : > { %v6410_v59 = vsel %vm13596_vm11, %v6363_v15, 0.0  ;;  %v6310_v35 = vsel %vm13597_vm12, %v12038_v49, 0.0  ;;  %v6364_v22 = vmul.f32 %v12038_v49, %v12038_v49  ;;  %v6314_v19 = vsel %vm13600_vm14, %v12036_v5, 0.0  ;;  %vm13611_vm11 = vmmov %vm13428_vm0 }
 0x6cc   : > { %v6411_v2 = vadd.f32 %v6410_v59, %v6409_v30  ;;  %v6311_v1 = vadd.f32 %v6310_v35, %v6309_v18  ;;  %v6416_v32 = vsel %vm13601_vm1, %v6366_v47, 0.0  ;;  %vm13612_vm12 = vmmov %vm13428_vm0 }
 0x6cd   : > { %v6412_v34 = vsel %vm13599_vm4, %v6364_v22, 0.0  ;;  %vm13614_vm4 = vmmov %vm13428_vm0 }
 0x6ce   : > { %v6313_v14 = vadd.f32 %v6312_v55, %v6311_v1  ;;  %v6413_v51 = vadd.f32 %v6412_v34, %v6411_v2  ;;  %vm13615_vm14 = vmmov %vm13428_vm0 }
 0x6cf   : > { %v12055_v53 = vpop.f32.mrb[20].mxu1  ;;  %vm13616_vm1 = vmmov %vm13428_vm0 }
 0x6d0   : > { %v6415_v13 = vadd.f32 %v6414_v0, %v6413_v51  ;;  %v12057_v27 = vpop.f32.mrb[21].mxu1  ;;  %v6315_v39 = vadd.f32 %v6314_v19, %v6313_v14  ;;  %v6369_v3 = vmul.f32 %v12055_v53, %v12055_v53  ;;  %v6320_v26 = vsel %vm13605_vm5, %v12055_v53, 0.0  ;;  %vm13620_vm5 = vmmov %vm13428_vm0 }
 0x6d1   : > { %v6316_v24 = vsel %vm13602_vm6, %v12057_v27, 0.0  ;;  %v6367_v12 = vmul.f32 %v12057_v27, %v12057_v27  ;;  %v12064_v25 = vpop.f32.mrb[22].mxu1  ;;  %vm13617_vm6 = vmmov %vm13428_vm0 }
 0x6d2   : > { %v6317_v43 = vadd.f32 %v6316_v24, %v6315_v39  ;;  %v6417_v9 = vadd.f32 %v6416_v32, %v6415_v13  ;;  %v12066_v20 = vpop.f32.mrb[23].mxu1  ;;  %v6370_v29 = vmul.f32 %v12064_v25, %v12064_v25  ;;  %v6422_v62 = vsel %vm13607_vm2, %v6369_v3, 0.0  ;;  %vm13622_vm2 = vmmov %vm13428_vm0 }
 0x6d3   : > { %v6418_v6 = vsel %vm13603_vm13, %v6367_v12, 0.0  ;;  %v6318_v16 = vsel %vm13604_vm10, %v12066_v20, 0.0  ;;  %v6368_v57 = vmul.f32 %v12066_v20, %v12066_v20  ;;  %v6322_v42 = vsel %vm13608_vm9, %v12064_v25, 0.0  ;;  %vm13618_vm13 = vmmov %vm13428_vm0 }
 0x6d4   : > { %v6419_v38 = vadd.f32 %v6418_v6, %v6417_v9  ;;  %v6319_v52 = vadd.f32 %v6318_v16, %v6317_v43  ;;  %v6424_v15 = vsel %vm13609_vm8, %v6370_v29, 0.0  ;;  %vm13619_vm10 = vmmov %vm13428_vm0 }
 0x6d5   : > { %v6420_v61 = vsel %vm13606_vm7, %v6368_v57, 0.0  ;;  %vm13621_vm7 = vmmov %vm13428_vm0 }
 0x6d6   : > { %v6321_v17 = vadd.f32 %v6320_v26, %v6319_v52  ;;  %v6421_v60 = vadd.f32 %v6420_v61, %v6419_v38  ;;  %vm13623_vm9 = vmmov %vm13428_vm0 }
 0x6d7   : > { %v12083_v33 = vpop.f32.mrb[24].mxu1  ;;  %vm13624_vm8 = vmmov %vm13428_vm0 }
 0x6d8   : > { %v6423_v8 = vadd.f32 %v6422_v62, %v6421_v60  ;;  %v12085_v10 = vpop.f32.mrb[25].mxu1  ;;  %v6323_v36 = vadd.f32 %v6322_v42, %v6321_v17  ;;  %v6373_v2 = vmul.f32 %v12083_v33, %v12083_v33  ;;  %v6328_v51 = vsel %vm13613_vm3, %v12083_v33, 0.0  ;;  %vm13628_vm3 = vmmov %vm13428_vm0 }
 0x6d9   : > { %v6324_v18 = vsel %vm13610_vm15, %v12085_v10, 0.0  ;;  %v6371_v30 = vmul.f32 %v12085_v10, %v12085_v10  ;;  %v12092_v50 = vpop.f32.mrb[26].mxu1  ;;  %vm13625_vm15 = vmmov %vm13428_vm0 }
 0x6da   : > { %v6325_v59 = vadd.f32 %v6324_v18, %v6323_v36  ;;  %v6425_v35 = vadd.f32 %v6424_v15, %v6423_v8  ;;  %v12094_v22 = vpop.f32.mrb[27].mxu1  ;;  %v6374_v0 = vmul.f32 %v12092_v50, %v12092_v50  ;;  %v6430_v32 = vsel %vm13428_vm0, %v6373_v2, 0.0 }
 0x6db   : > { %v6426_v1 = vsel %vm13611_vm11, %v6371_v30, 0.0  ;;  %v6326_v55 = vsel %vm13612_vm12, %v12094_v22, 0.0  ;;  %v6372_v47 = vmul.f32 %v12094_v22, %v12094_v22  ;;  %v6330_v24 = vsel %vm13615_vm14, %v12092_v50, 0.0  ;;  %vm13626_vm11 = vmmov %vm13428_vm0 }
 0x6dc   : > { %v6427_v34 = vadd.f32 %v6426_v1, %v6425_v35  ;;  %v6327_v14 = vadd.f32 %v6326_v55, %v6325_v59  ;;  %v6432_v6 = vsel %vm13616_vm1, %v6374_v0, 0.0  ;;  %vm13627_vm12 = vmmov %vm13428_vm0 }
 0x6dd   : > { %v6428_v19 = vsel %vm13614_vm4, %v6372_v47, 0.0  ;;  %vm13629_vm4 = vmmov %vm13428_vm0 }
 0x6de   : > { %v6329_v13 = vadd.f32 %v6328_v51, %v6327_v14  ;;  %v6429_v39 = vadd.f32 %v6428_v19, %v6427_v34  ;;  %vm13630_vm14 = vmmov %vm13428_vm0 }
 0x6df   : > { %v12111_v12 = vpop.f32.mrb[28].mxu1  ;;  %vm13631_vm1 = vmmov %vm13428_vm0 }
 0x6e0   : > { %v6431_v43 = vadd.f32 %v6430_v32, %v6429_v39  ;;  %v12113_v9 = vpop.f32.mrb[29].mxu1  ;;  %v6331_v3 = vadd.f32 %v6330_v24, %v6329_v13  ;;  %v6377_v61 = vmul.f32 %v12111_v12, %v12111_v12  ;;  %v6336_v36 = vsel %vm13620_vm5, %v12111_v12, 0.0  ;;  %vm13635_vm5 = vmmov %vm13428_vm0 }
 0x6e1   : > { %v6332_v16 = vsel %vm13617_vm6, %v12113_v9, 0.0  ;;  %v6375_v57 = vmul.f32 %v12113_v9, %v12113_v9  ;;  %v12120_v38 = vpop.f32.mrb[30].mxu1  ;;  %vm13632_vm6 = vmmov %vm13428_vm0 }
 0x6e2   : > { %v6333_v52 = vadd.f32 %v6332_v16, %v6331_v3  ;;  %v6433_v26 = vadd.f32 %v6432_v6, %v6431_v43  ;;  %v12122_v29 = vpop.f32.mrb[31].mxu1  ;;  %v6378_v15 = vmul.f32 %v12120_v38, %v12120_v38  ;;  %v6438_v35 = vsel %vm13622_vm2, %v6377_v61, 0.0  ;;  %vm13637_vm2 = vmmov %vm13428_vm0 }
 0x6e3   : > { %v6434_v17 = vsel %vm13618_vm13, %v6375_v57, 0.0  ;;  %v6334_v60 = vsel %vm13619_vm10, %v12122_v29, 0.0  ;;  %v6376_v62 = vmul.f32 %v12122_v29, %v12122_v29  ;;  %v6338_v2 = vsel %vm13623_vm9, %v12120_v38, 0.0  ;;  %vm13633_vm13 = vmmov %vm13428_vm0 }
 0x6e4   : > { %v6435_v42 = vadd.f32 %v6434_v17, %v6433_v26  ;;  %v6335_v8 = vadd.f32 %v6334_v60, %v6333_v52  ;;  %v6440_v47 = vsel %vm13624_vm8, %v6378_v15, 0.0  ;;  %vm13634_vm10 = vmmov %vm13428_vm0 }
 0x6e5   : > { %v6436_v18 = vsel %vm13621_vm7, %v6376_v62, 0.0  ;;  %vm13636_vm7 = vmmov %vm13428_vm0 }
 0x6e6   : > { %v6337_v30 = vadd.f32 %v6336_v36, %v6335_v8  ;;  %v6437_v59 = vadd.f32 %v6436_v18, %v6435_v42  ;;  %vm13638_vm9 = vmmov %vm13428_vm0 }
 0x6e7   : > { %vm13639_vm8 = vmmov %vm13428_vm0 }
 0x6e8   : > { %v6339_v1 = vadd.f32 %v6338_v2, %v6337_v30  ;;  %v6439_v55 = vadd.f32 %v6438_v35, %v6437_v59 }
 0x6ea   : > { %v6340_v34 = vrot.slane %v6339_v1, 4  ;;  %v6441_v14 = vadd.f32 %v6440_v47, %v6439_v55 }
 0x6ec   : > { %v6341_v51 = vadd.f32 %v6340_v34, %v6339_v1  ;;  %v6442_v0 = vrot.slane %v6441_v14, 4 }
 0x6ee   : > { %v6342_v19 = vrot.slane %v6341_v51, 2  ;;  %v6443_v13 = vadd.f32 %v6442_v0, %v6441_v14  ;;  %v12229_v14 = vld [vmem:[%s12556_s7] ss:$0 sm:$0xff] }
 0x6f0   : > { %v6343_v39 = vadd.f32 %v6342_v19, %v6341_v51  ;;  %v6444_v32 = vrot.slane %v6443_v13, 2 }
 0x6f2   : > { %v6344_v24 = vrot.slane %v6343_v39, 1  ;;  %v6445_v43 = vadd.f32 %v6444_v32, %v6443_v13 }
 0x6f4   : > { %v6345_v3 = vadd.f32 %v6344_v24, %v6343_v39  ;;  %v6446_v6 = vrot.slane %v6445_v43, 1 }
 0x6f6   : > { %v12140_v16 = vmul.f32 0.00390625, %v6345_v3  ;;  %v6447_v57 = vadd.f32 %v6446_v6, %v6445_v43  ;;  %v6660_v3 = vld [vmem:[%s12223_s20 + $0xe8] sm:$0xff] }
 0x6f8   : > { %v6448_v52 = vmul.f32 0.00390625, %v6447_v57  ;;  %v6449_v26 = vmul.f32 %v12140_v16, %v12140_v16  ;;  %v6480_v61 = vsub.f32 %v12122_v29, %v12140_v16  ;;  %v6451_v17 = vsub.f32 %v11918_v4, %v12140_v16 }
 0x6f9   : > { %v6452_v60 = vsub.f32 %v11924_v28, %v12140_v16  ;;  %v6453_v62 = vsub.f32 %v11916_v45, %v12140_v16  ;;  %v6454_v42 = vsub.f32 %v11922_v23, %v12140_v16  ;;  %v6455_v8 = vsub.f32 %v11945_v41, %v12140_v16 }
 0x6fa   : > { %v6450_v36 = vsub.f32 %v6448_v52, %v6449_v26  ;;  %v6456_v15 = vsub.f32 %v11954_v63, %v12140_v16  ;;  %v6457_v29 = vsub.f32 %v11943_v48, %v12140_v16  ;;  %v6458_v4 = vsub.f32 %v11952_v44, %v12140_v16 }
 0x6fb   : > { %v6459_v28 = vsub.f32 %v11973_v31, %v12140_v16  ;;  %v6460_v45 = vsub.f32 %v11982_v7, %v12140_v16  ;;  %v6461_v23 = vsub.f32 %v11971_v58, %v12140_v16  ;;  %v6462_v41 = vsub.f32 %v11980_v11, %v12140_v16 }
 0x6fc   : > { %v6483_v18 = vadd.f32 1e-05, %v6450_v36  ;;  %v6463_v63 = vsub.f32 %v12001_v46, %v12140_v16  ;;  %v6464_v48 = vsub.f32 %v12010_v54, %v12140_v16  ;;  %v6465_v44 = vsub.f32 %v11999_v37, %v12140_v16 }
 0x6fd   : > { %v6466_v31 = vsub.f32 %v12008_v56, %v12140_v16  ;;  %v6467_v7 = vsub.f32 %v12029_v21, %v12140_v16  ;;  %v6468_v58 = vsub.f32 %v12038_v49, %v12140_v16  ;;  %v6469_v11 = vsub.f32 %v12027_v40, %v12140_v16 }
 0x6fe   : > { %8861 = vrsqrt.f32 %v6483_v18  ;;  %v6470_v46 = vsub.f32 %v12036_v5, %v12140_v16  ;;  %v6471_v37 = vsub.f32 %v12057_v27, %v12140_v16  ;;  %v6472_v56 = vsub.f32 %v12066_v20, %v12140_v16 }
 0x6ff   : > { %v6473_v54 = vsub.f32 %v12055_v53, %v12140_v16  ;;  %v6474_v21 = vsub.f32 %v12064_v25, %v12140_v16  ;;  %v6475_v40 = vsub.f32 %v12085_v10, %v12140_v16  ;;  %v6476_v49 = vsub.f32 %v12094_v22, %v12140_v16  ;;  %v12213_v22 = vld [vmem:[%s425_s11] ss:$0 sm:$0xff]  ;;  %s12248_s11 = scalar_lea.vmem [#allocation5], %s6883_s27  ;;  %s7288_s27 = sshll.u32 %s9075_s17, 12 }
 0x700   : > { %v6477_v5 = vsub.f32 %v12083_v33, %v12140_v16  ;;  %v6478_v27 = vsub.f32 %v12092_v50, %v12140_v16  ;;  %v6479_v20 = vsub.f32 %v12113_v9, %v12140_v16  ;;  %v6481_v53 = vsub.f32 %v12111_v12, %v12140_v16  ;;  %v12218_v9 = vld [vmem:[%s12555_s6] ss:$0 sm:$0xff]  ;;  %s6773_s29 = sshll.u32 %s12248_s11, 4  ;;  %s12469_s24 = scalar_lea.hbm %s12559_s10, %s7288_s27  ;;  %s12473_s29 = int_to_ptr.vmem [resolvable:$true] %s6773_s29 }
 0x701   : > { %v6482_v25 = vsub.f32 %v12120_v38, %v12140_v16  ;;  %s6760_s17 = scalar_lea.sflag [#allocation4], %s9158_s18 }
 0x708   : > { %v8862_v10 = vpop.eup %8861 }
 0x709   : > { %v6514_v33 = vmul.f32 %v8862_v10, %v6480_v61  ;;  %v6485_v30 = vmul.f32 %v8862_v10, %v6451_v17  ;;  %v6486_v50 = vmul.f32 %v8862_v10, %v6452_v60  ;;  %v6487_v59 = vmul.f32 %v8862_v10, %v6453_v62 }
 0x70a   : > { %v6488_v12 = vmul.f32 %v8862_v10, %v6454_v42  ;;  %v6489_v35 = vmul.f32 %v8862_v10, %v6455_v8  ;;  %v6490_v38 = vmul.f32 %v8862_v10, %v6456_v15  ;;  %v6491_v2 = vmul.f32 %v8862_v10, %v6457_v29 }
 0x70b   : > { %v6552_v1 = vadd.f32 %v12213_v22, %v6514_v33  ;;  %v6492_v55 = vmul.f32 %v8862_v10, %v6458_v4  ;;  %v6493_v47 = vmul.f32 %v8862_v10, %v6459_v28  ;;  %v6494_v34 = vmul.f32 %v8862_v10, %v6460_v45 }
 0x70c   : > { %v6495_v51 = vmul.f32 %v8862_v10, %v6461_v23  ;;  %v6496_v0 = vmul.f32 %v8862_v10, %v6462_v41  ;;  %v6497_v19 = vmul.f32 %v8862_v10, %v6463_v63  ;;  %v6498_v13 = vmul.f32 %v8862_v10, %v6464_v48  ;;  %v8863_v63 = vld [vmem:[%s9164_s23 + $0xe8] sm:$0xff] }
 0x70d   : > { %v6590_v39 = vmul.f32 %v12218_v9, %v6552_v1  ;;  %v6499_v32 = vmul.f32 %v8862_v10, %v6465_v44  ;;  %v6500_v24 = vmul.f32 %v8862_v10, %v6466_v31  ;;  %v6501_v43 = vmul.f32 %v8862_v10, %v6467_v7 }
 0x70e   : > { %v6502_v6 = vmul.f32 %v8862_v10, %v6468_v58  ;;  %v6503_v16 = vmul.f32 %v8862_v10, %v6469_v11  ;;  %v6504_v57 = vmul.f32 %v8862_v10, %v6470_v46  ;;  %v6505_v52 = vmul.f32 %v8862_v10, %v6471_v37 }
 0x70f   : > { %v6628_v26 = vadd.f32 %v12229_v14, %v6590_v39  ;;  %v6506_v61 = vmul.f32 %v8862_v10, %v6472_v56  ;;  %v6507_v17 = vmul.f32 %v8862_v10, %v6473_v54  ;;  %v6508_v60 = vmul.f32 %v8862_v10, %v6474_v21 }
 0x710   : > { %v6509_v62 = vmul.f32 %v8862_v10, %v6475_v40  ;;  %v6510_v42 = vmul.f32 %v8862_v10, %v6476_v49  ;;  %v6511_v8 = vmul.f32 %v8862_v10, %v6477_v5  ;;  %v6512_v36 = vmul.f32 %v8862_v10, %v6478_v27 }
 0x711   : > { %v6692_v15 = vmul.f32 %v6660_v3, %v6628_v26  ;;  %v6513_v29 = vmul.f32 %v8862_v10, %v6479_v20  ;;  %v6515_v4 = vmul.f32 %v8862_v10, %v6481_v53  ;;  %v6516_v28 = vmul.f32 %v8862_v10, %v6482_v25 }
 0x712   : > { %v6523_v45 = vadd.f32 %v12213_v22, %v6485_v30  ;;  %v6524_v23 = vadd.f32 %v12213_v22, %v6486_v50  ;;  %v6525_v41 = vadd.f32 %v12213_v22, %v6487_v59  ;;  %v6526_v18 = vadd.f32 %v12213_v22, %v6488_v12 }
 0x713   : > { %v6724_v48 = vadd.f32 %v8863_v63, %v6692_v15  ;;  %v6527_v44 = vadd.f32 %v12213_v22, %v6489_v35  ;;  %v6528_v31 = vadd.f32 %v12213_v22, %v6490_v38  ;;  %v6529_v7 = vadd.f32 %v12213_v22, %v6491_v2 }
 0x714   : > { %v6530_v58 = vadd.f32 %v12213_v22, %v6492_v55  ;;  %v6531_v11 = vadd.f32 %v12213_v22, %v6493_v47  ;;  %v6532_v46 = vadd.f32 %v12213_v22, %v6494_v34  ;;  %v6533_v37 = vadd.f32 %v12213_v22, %v6495_v51 }
 0x715   : > { %6756 = vst.msk [vmem:[%s12248_s11 + $0xe8] sm:$0xff] %vm13625_vm15, %v6724_v48  ;;  %v6534_v56 = vadd.f32 %v12213_v22, %v6496_v0  ;;  %v6535_v54 = vadd.f32 %v12213_v22, %v6497_v19  ;;  %v6536_v21 = vadd.f32 %v12213_v22, %v6498_v13  ;;  %v6537_v40 = vadd.f32 %v12213_v22, %v6499_v32  ;;  %vm13640_vm15 = vmmov %vm13428_vm0 }
 0x716   : > { %v6538_v49 = vadd.f32 %v12213_v22, %v6500_v24  ;;  %v6539_v5 = vadd.f32 %v12213_v22, %v6501_v43  ;;  %v6540_v27 = vadd.f32 %v12213_v22, %v6502_v6  ;;  %v6541_v20 = vadd.f32 %v12213_v22, %v6503_v16 }
 0x717   : > { %v6542_v53 = vadd.f32 %v12213_v22, %v6504_v57  ;;  %v6543_v25 = vadd.f32 %v12213_v22, %v6505_v52  ;;  %v6544_v10 = vadd.f32 %v12213_v22, %v6506_v61  ;;  %v6545_v33 = vadd.f32 %v12213_v22, %v6507_v17 }
 0x718   : > { %v6546_v30 = vadd.f32 %v12213_v22, %v6508_v60  ;;  %v6547_v50 = vadd.f32 %v12213_v22, %v6509_v62  ;;  %v6548_v59 = vadd.f32 %v12213_v22, %v6510_v42  ;;  %v6549_v12 = vadd.f32 %v12213_v22, %v6511_v8 }
 0x719   : > { %v6550_v35 = vadd.f32 %v12213_v22, %v6512_v36  ;;  %v6551_v38 = vadd.f32 %v12213_v22, %v6513_v29  ;;  %v6553_v2 = vadd.f32 %v12213_v22, %v6515_v4  ;;  %v6554_v1 = vadd.f32 %v12213_v22, %v6516_v28 }
 0x71a   : > { %v6561_v55 = vmul.f32 %v12218_v9, %v6523_v45  ;;  %v6562_v47 = vmul.f32 %v12218_v9, %v6524_v23  ;;  %v6563_v34 = vmul.f32 %v12218_v9, %v6525_v41  ;;  %v6564_v51 = vmul.f32 %v12218_v9, %v6526_v18 }
 0x71b   : > { %v6565_v0 = vmul.f32 %v12218_v9, %v6527_v44  ;;  %v6566_v19 = vmul.f32 %v12218_v9, %v6528_v31  ;;  %v6567_v13 = vmul.f32 %v12218_v9, %v6529_v7  ;;  %v6568_v39 = vmul.f32 %v12218_v9, %v6530_v58 }
 0x71c   : > { %v6569_v32 = vmul.f32 %v12218_v9, %v6531_v11  ;;  %v6570_v22 = vmul.f32 %v12218_v9, %v6532_v46  ;;  %v6571_v24 = vmul.f32 %v12218_v9, %v6533_v37  ;;  %v6572_v43 = vmul.f32 %v12218_v9, %v6534_v56 }
 0x71d   : > { %v6573_v3 = vmul.f32 %v12218_v9, %v6535_v54  ;;  %v6574_v6 = vmul.f32 %v12218_v9, %v6536_v21  ;;  %v6575_v16 = vmul.f32 %v12218_v9, %v6537_v40  ;;  %v6576_v57 = vmul.f32 %v12218_v9, %v6538_v49  ;;  %v6633_v54 = vld [vmem:[%s12223_s20 + $0x10] sm:$0xff]  ;;  %v6631_v21 = vld [vmem:[%s12223_s20] sm:$0xff]  ;;  %v6634_v40 = vld [vmem:[%s12223_s20 + $0x18] sm:$0xff] }
 0x71e   : > { %v6577_v52 = vmul.f32 %v12218_v9, %v6539_v5  ;;  %v6578_v26 = vmul.f32 %v12218_v9, %v6540_v27  ;;  %v6579_v61 = vmul.f32 %v12218_v9, %v6541_v20  ;;  %v6580_v17 = vmul.f32 %v12218_v9, %v6542_v53  ;;  %v6632_v49 = vld [vmem:[%s12223_s20 + $0x8] sm:$0xff] }
 0x71f   : > { %v6581_v60 = vmul.f32 %v12218_v9, %v6543_v25  ;;  %v6582_v62 = vmul.f32 %v12218_v9, %v6544_v10  ;;  %v6583_v42 = vmul.f32 %v12218_v9, %v6545_v33  ;;  %v6584_v8 = vmul.f32 %v12218_v9, %v6546_v30  ;;  %v6637_v25 = vld [vmem:[%s12223_s20 + $0x30] sm:$0xff]  ;;  %v6635_v10 = vld [vmem:[%s12223_s20 + $0x20] sm:$0xff]  ;;  %v6638_v33 = vld [vmem:[%s12223_s20 + $0x38] sm:$0xff] }
 0x720   : > { %v6585_v36 = vmul.f32 %v12218_v9, %v6547_v50  ;;  %v6586_v15 = vmul.f32 %v12218_v9, %v6548_v59  ;;  %v6587_v29 = vmul.f32 %v12218_v9, %v6549_v12  ;;  %v6588_v4 = vmul.f32 %v12218_v9, %v6550_v35  ;;  %v6636_v30 = vld [vmem:[%s12223_s20 + $0x28] sm:$0xff] }
 0x721   : > { %v6589_v28 = vmul.f32 %v12218_v9, %v6551_v38  ;;  %v6591_v45 = vmul.f32 %v12218_v9, %v6553_v2  ;;  %v6592_v23 = vmul.f32 %v12218_v9, %v6554_v1  ;;  %v6599_v41 = vadd.f32 %v12229_v14, %v6561_v55  ;;  %v6641_v38 = vld [vmem:[%s12223_s20 + $0x50] sm:$0xff]  ;;  %v6639_v2 = vld [vmem:[%s12223_s20 + $0x40] sm:$0xff]  ;;  %v6642_v1 = vld [vmem:[%s12223_s20 + $0x58] sm:$0xff] }
 0x722   : > { %v6600_v18 = vadd.f32 %v12229_v14, %v6562_v47  ;;  %v6601_v63 = vadd.f32 %v12229_v14, %v6563_v34  ;;  %v6602_v48 = vadd.f32 %v12229_v14, %v6564_v51  ;;  %v6603_v44 = vadd.f32 %v12229_v14, %v6565_v0  ;;  %v6640_v55 = vld [vmem:[%s12223_s20 + $0x48] sm:$0xff] }
 0x723   : > { %v6604_v31 = vadd.f32 %v12229_v14, %v6566_v19  ;;  %v6605_v7 = vadd.f32 %v12229_v14, %v6567_v13  ;;  %v6606_v9 = vadd.f32 %v12229_v14, %v6568_v39  ;;  %v6607_v58 = vadd.f32 %v12229_v14, %v6569_v32  ;;  %v6645_v19 = vld [vmem:[%s12223_s20 + $0x70] sm:$0xff]  ;;  %v6643_v13 = vld [vmem:[%s12223_s20 + $0x60] sm:$0xff]  ;;  %v6646_v39 = vld [vmem:[%s12223_s20 + $0x78] sm:$0xff] }
 0x724   : > { %v6608_v11 = vadd.f32 %v12229_v14, %v6570_v22  ;;  %v6609_v46 = vadd.f32 %v12229_v14, %v6571_v24  ;;  %v6610_v37 = vadd.f32 %v12229_v14, %v6572_v43  ;;  %v6611_v56 = vadd.f32 %v12229_v14, %v6573_v3  ;;  %v6644_v3 = vld [vmem:[%s12223_s20 + $0x68] sm:$0xff] }
 0x725   : > { %v6612_v5 = vadd.f32 %v12229_v14, %v6574_v6  ;;  %v6613_v27 = vadd.f32 %v12229_v14, %v6575_v16  ;;  %v6614_v20 = vadd.f32 %v12229_v14, %v6576_v57  ;;  %v6615_v53 = vadd.f32 %v12229_v14, %v6577_v52  ;;  %v6649_v6 = vld [vmem:[%s12223_s20 + $0x90] sm:$0xff]  ;;  %v6647_v16 = vld [vmem:[%s12223_s20 + $0x80] sm:$0xff] }
 0x726   : > { %v6616_v50 = vadd.f32 %v12229_v14, %v6578_v26  ;;  %v6617_v59 = vadd.f32 %v12229_v14, %v6579_v61  ;;  %v6618_v12 = vadd.f32 %v12229_v14, %v6580_v17  ;;  %v6619_v35 = vadd.f32 %v12229_v14, %v6581_v60  ;;  %v6650_v17 = vld [vmem:[%s12223_s20 + $0x98] sm:$0xff]  ;;  %v6648_v60 = vld [vmem:[%s12223_s20 + $0x88] sm:$0xff] }
 0x727   : > { %v6620_v47 = vadd.f32 %v12229_v14, %v6582_v62  ;;  %v6621_v34 = vadd.f32 %v12229_v14, %v6583_v42  ;;  %v6622_v51 = vadd.f32 %v12229_v14, %v6584_v8  ;;  %v6623_v0 = vadd.f32 %v12229_v14, %v6585_v36  ;;  %v6653_v62 = vld [vmem:[%s12223_s20 + $0xb0] sm:$0xff] }
 0x728   : > { %v6624_v32 = vadd.f32 %v12229_v14, %v6586_v15  ;;  %v6625_v22 = vadd.f32 %v12229_v14, %v6587_v29  ;;  %v6626_v24 = vadd.f32 %v12229_v14, %v6588_v4  ;;  %v6627_v43 = vadd.f32 %v12229_v14, %v6589_v28  ;;  %v6651_v29 = vld [vmem:[%s12223_s20 + $0xa0] sm:$0xff]  ;;  %v6654_v4 = vld [vmem:[%s12223_s20 + $0xb8] sm:$0xff]  ;;  %v6652_v28 = vld [vmem:[%s12223_s20 + $0xa8] sm:$0xff] }
 0x729   : > { %v6629_v57 = vadd.f32 %v12229_v14, %v6591_v45  ;;  %v6630_v52 = vadd.f32 %v12229_v14, %v6592_v23  ;;  %v6663_v26 = vmul.f32 %v6631_v21, %v6599_v41  ;;  %v6664_v61 = vmul.f32 %v6632_v49, %v6600_v18  ;;  %v6657_v18 = vld [vmem:[%s12223_s20 + $0xd0] sm:$0xff]  ;;  %v6655_v21 = vld [vmem:[%s12223_s20 + $0xc0] sm:$0xff]  ;;  %v6656_v49 = vld [vmem:[%s12223_s20 + $0xc8] sm:$0xff] }
 0x72a   : > { %v6665_v42 = vmul.f32 %v6633_v54, %v6601_v63  ;;  %v6666_v8 = vmul.f32 %v6634_v40, %v6602_v48  ;;  %v6667_v36 = vmul.f32 %v6635_v10, %v6603_v44  ;;  %v6668_v15 = vmul.f32 %v6636_v30, %v6604_v31  ;;  %v6658_v44 = vld [vmem:[%s12223_s20 + $0xd8] sm:$0xff]  ;;  %v6661_v10 = vld [vmem:[%s12223_s20 + $0xf0] sm:$0xff]  ;;  %v6659_v31 = vld [vmem:[%s12223_s20 + $0xe0] sm:$0xff] }
 0x72b   : > { %v6669_v45 = vmul.f32 %v6637_v25, %v6605_v7  ;;  %v6670_v14 = vmul.f32 %v6638_v33, %v6606_v9  ;;  %v6671_v23 = vmul.f32 %v6639_v2, %v6607_v58  ;;  %v6672_v41 = vmul.f32 %v6640_v55, %v6608_v11  ;;  %v6662_v33 = vld [vmem:[%s12223_s20 + $0xf8] sm:$0xff]  ;;  %s8929_s20 = sshll.u32 %s8996_s12, 4  ;;  %s8930_s20 = int_to_ptr.vmem [resolvable:$false] %s8929_s20 }
 0x72c   : > { %v6673_v54 = vmul.f32 %v6641_v38, %v6609_v46  ;;  %v6674_v63 = vmul.f32 %v6642_v1, %v6610_v37  ;;  %v6675_v40 = vmul.f32 %v6643_v13, %v6611_v56  ;;  %v6676_v48 = vmul.f32 %v6644_v3, %v6612_v5  ;;  %v8865_v1 = vld [vmem:[%s9164_s23 + $0x8] sm:$0xff]  ;;  %s8931_s30 = scalar_lea.vmem %s8930_s20, 8192  ;;  %p8932_p10 = scmp.lt.s32.totalorder %s12473_s29, %s8930_s20 }
 0x72d   : > { %v6677_v30 = vmul.f32 %v6645_v19, %v6613_v27  ;;  %v6678_v7 = vmul.f32 %v6646_v39, %v6614_v20  ;;  %v6679_v25 = vmul.f32 %v6647_v16, %v6615_v53  ;;  %v6680_v9 = vmul.f32 %v6648_v60, %v6616_v50  ;;  %v8868_v19 = vld [vmem:[%s9164_s23 + $0x20] sm:$0xff]  ;;  %v8869_v39 = vld [vmem:[%s9164_s23 + $0x28] sm:$0xff] }
 0x72e   : > { %v6681_v58 = vmul.f32 %v6649_v6, %v6617_v59  ;;  %v12365_v2 = vmul.f32 %v6650_v17, %v6618_v12  ;;  %v12367_v11 = vmul.f32 %v6651_v29, %v6619_v35  ;;  %v12369_v46 = vmul.f32 %v6652_v28, %v6620_v47  ;;  %v8864_v35 = vld [vmem:[%s9164_s23] sm:$0xff]  ;;  %v8866_v47 = vld [vmem:[%s9164_s23 + $0x10] sm:$0xff]  ;;  %v8875_v17 = vld [vmem:[%s9164_s23 + $0x58] sm:$0xff] }
 0x72f   : > { %v12371_v37 = vmul.f32 %v6653_v62, %v6621_v34  ;;  %v12373_v56 = vmul.f32 %v6654_v4, %v6622_v51  ;;  %v12375_v5 = vmul.f32 %v6655_v21, %v6623_v0  ;;  %v12377_v27 = vmul.f32 %v6656_v49, %v6624_v32  ;;  %v8867_v51 = vld [vmem:[%s9164_s23 + $0x18] sm:$0xff]  ;;  %v8872_v6 = vld [vmem:[%s9164_s23 + $0x40] sm:$0xff] }
 0x730   : > { %v12379_v20 = vmul.f32 %v6657_v18, %v6625_v22  ;;  %v12381_v53 = vmul.f32 %v6658_v44, %v6626_v24  ;;  %v12383_v50 = vmul.f32 %v6659_v31, %v6627_v43  ;;  %v12385_v59 = vmul.f32 %v6661_v10, %v6629_v57  ;;  %v8870_v22 = vld [vmem:[%s9164_s23 + $0x30] sm:$0xff]  ;;  %v8871_v43 = vld [vmem:[%s9164_s23 + $0x38] sm:$0xff]  ;;  %v8873_v57 = vld [vmem:[%s9164_s23 + $0x48] sm:$0xff] }
 0x731   : > { %v12387_v12 = vmul.f32 %v6662_v33, %v6630_v52  ;;  %v6695_v38 = vadd.f32 %v8864_v35, %v6663_v26  ;;  %v6696_v55 = vadd.f32 %v8865_v1, %v6664_v61  ;;  %v6697_v34 = vadd.f32 %v8866_v47, %v6665_v42  ;;  %v8874_v26 = vld [vmem:[%s9164_s23 + $0x50] sm:$0xff]  ;;  %v8876_v62 = vld [vmem:[%s9164_s23 + $0x60] sm:$0xff]  ;;  %v8879_v4 = vld [vmem:[%s9164_s23 + $0x78] sm:$0xff] }
 0x732   : > { %v6698_v0 = vadd.f32 %v8867_v51, %v6666_v8  ;;  %v6699_v13 = vadd.f32 %v8868_v19, %v6667_v36  ;;  %v6700_v32 = vadd.f32 %v8869_v39, %v6668_v15  ;;  %v6701_v24 = vadd.f32 %v8870_v22, %v6669_v45  ;;  %v8877_v8 = vld [vmem:[%s9164_s23 + $0x68] sm:$0xff]  ;;  %v8878_v15 = vld [vmem:[%s9164_s23 + $0x70] sm:$0xff]  ;;  %v8880_v45 = vld [vmem:[%s9164_s23 + $0x80] sm:$0xff] }
 0x733   : > { %v6702_v3 = vadd.f32 %v8871_v43, %v6670_v14  ;;  %v6703_v16 = vadd.f32 %v8872_v6, %v6671_v23  ;;  %v6704_v52 = vadd.f32 %v8873_v57, %v6672_v41  ;;  %v6705_v61 = vadd.f32 %v8874_v26, %v6673_v54  ;;  %6727 = vst.msk [vmem:[%s12248_s11] sm:$0xff] %vm13626_vm11, %v6695_v38  ;;  %v8881_v23 = vld [vmem:[%s9164_s23 + $0x88] sm:$0xff]  ;;  %v8882_v18 = vld [vmem:[%s9164_s23 + $0x90] sm:$0xff]  ;;  %v8883_v49 = vld [vmem:[%s9164_s23 + $0x98] sm:$0xff] }
 0x734   : > { %6728 = vst.msk [vmem:[%s12248_s11 + $0x8] sm:$0xff] %vm13627_vm12, %v6696_v55  ;;  %v6706_v60 = vadd.f32 %v8875_v17, %v6674_v63  ;;  %v6707_v42 = vadd.f32 %v8876_v62, %v6675_v40  ;;  %v6708_v36 = vadd.f32 %v8877_v8, %v6676_v48  ;;  %v6709_v29 = vadd.f32 %v8878_v15, %v6677_v30  ;;  %v8884_v63 = vld [vmem:[%s9164_s23 + $0xa0] sm:$0xff]  ;;  %v8885_v48 = vld [vmem:[%s9164_s23 + $0xa8] sm:$0xff]  ;;  %v8886_v10 = vld [vmem:[%s9164_s23 + $0xb0] sm:$0xff] }
 0x735   : > { %6729 = vst.msk [vmem:[%s12248_s11 + $0x10] sm:$0xff] %vm13628_vm3, %v6697_v34  ;;  %v6710_v28 = vadd.f32 %v8879_v4, %v6678_v7  ;;  %v6711_v14 = vadd.f32 %v8880_v45, %v6679_v25  ;;  %v6712_v41 = vadd.f32 %v8881_v23, %v6680_v9  ;;  %v6713_v21 = vadd.f32 %v8882_v18, %v6681_v58  ;;  %v8887_v30 = vld [vmem:[%s9164_s23 + $0xb8] sm:$0xff]  ;;  %v8888_v25 = vld [vmem:[%s9164_s23 + $0xc0] sm:$0xff]  ;;  %v8889_v33 = vld [vmem:[%s9164_s23 + $0xc8] sm:$0xff] }
 0x736   : > { %6730 = vst.msk [vmem:[%s12248_s11 + $0x18] sm:$0xff] %vm13629_vm4, %v6698_v0  ;;  %v6714_v54 = vadd.f32 %v8883_v49, %v12365_v2  ;;  %v6715_v40 = vadd.f32 %v8884_v63, %v12367_v11  ;;  %v6716_v44 = vadd.f32 %v8885_v48, %v12369_v46  ;;  %v6717_v31 = vadd.f32 %v8886_v10, %v12371_v37  ;;  %v8890_v2 = vld [vmem:[%s9164_s23 + $0xd0] sm:$0xff]  ;;  %vm13641_vm11 = vmmov %vm13428_vm0  ;;  %v8891_v46 = vld [vmem:[%s9164_s23 + $0xd8] sm:$0xff] }
 0x737   : > { %6731 = vst.msk [vmem:[%s12248_s11 + $0x20] sm:$0xff] %vm13428_vm0, %v6699_v13  ;;  %v6718_v7 = vadd.f32 %v8887_v30, %v12373_v56  ;;  %v6719_v9 = vadd.f32 %v8888_v25, %v12375_v5  ;;  %v6720_v58 = vadd.f32 %v8889_v33, %v12377_v27  ;;  %v6721_v11 = vadd.f32 %v8890_v2, %v12379_v20  ;;  %vm13642_vm12 = vmmov %vm13428_vm0  ;;  %v8892_v56 = vld [vmem:[%s9164_s23 + $0xe0] sm:$0xff]  ;;  %v8893_v27 = vld [vmem:[%s9164_s23 + $0xf0] sm:$0xff] }
 0x738   : > { %6732 = vst.msk [vmem:[%s12248_s11 + $0x28] sm:$0xff] %vm13630_vm14, %v6700_v32  ;;  %vm13643_vm3 = vmmov %vm13428_vm0  ;;  %v6722_v37 = vadd.f32 %v8891_v46, %v12381_v53  ;;  %v6723_v5 = vadd.f32 %v8892_v56, %v12383_v50  ;;  %v6725_v20 = vadd.f32 %v8893_v27, %v12385_v59  ;;  %v8894_v35 = vld [vmem:[%s9164_s23 + $0xf8] sm:$0xff]  ;;  %s8925_s23 = scalar_lea.vmem %s12473_s29, 4096 }
 0x739   : > { %6733 = vst.msk [vmem:[%s12248_s11 + $0x30] sm:$0xff] %vm13631_vm1, %v6701_v24  ;;  %v6726_v38 = vadd.f32 %v8894_v35, %v12387_v12  ;;  %vm13644_vm4 = vmmov %vm13428_vm0  ;;  %p8926_p11 = scmp.ne.s32.totalorder %s12473_s29, %s8925_s23  ;;  %p8933_p0 = scmp.lt.s32.totalorder %s8931_s30, %s8925_s23 }
 0x73a   : > { %6734 = vst.msk [vmem:[%s12248_s11 + $0x38] sm:$0xff] %vm13632_vm6, %v6702_v3  ;;  %vm13645_vm14 = vmmov %vm13428_vm0 }
 0x73b   : > { %6735 = vst.msk [vmem:[%s12248_s11 + $0x40] sm:$0xff] %vm13633_vm13, %v6703_v16  ;;  %vm13646_vm1 = vmmov %vm13428_vm0  ;;  %p8927_p13 = pnand %p8926_p11, %p13655_p12  ;;  %p8934_p2 = por %p8933_p0, %p8932_p10 }
 0x73c   : > { %6736 = vst.msk [vmem:[%s12248_s11 + $0x48] sm:$0xff] %vm13634_vm10, %v6704_v52  ;;  %vm13647_vm6 = vmmov %vm13428_vm0 }
 0x73d   : > { %6737 = vst.msk [vmem:[%s12248_s11 + $0x50] sm:$0xff] %vm13635_vm5, %v6705_v61  ;;  %vm13648_vm13 = vmmov %vm13428_vm0  ;;  %p8928_p8 = pneg %p8927_p13 }
 0x73e   : > { %6738 = vst.msk [vmem:[%s12248_s11 + $0x58] sm:$0xff] %vm13636_vm7, %v6706_v60  ;;  %vm13649_vm10 = vmmov %vm13428_vm0 }
 0x73f   : > { %6739 = vst.msk [vmem:[%s12248_s11 + $0x60] sm:$0xff] %vm13637_vm2, %v6707_v42  ;;  %vm13650_vm5 = vmmov %vm13428_vm0  ;;  %p8935_p4 = pnand %p8934_p2, %p8928_p8 }
 0x740   : > { %6740 = vst.msk [vmem:[%s12248_s11 + $0x68] sm:$0xff] %vm13638_vm9, %v6708_v36  ;;  %vm13651_vm7 = vmmov %vm13428_vm0 }
 0x741   : > { %6741 = vst.msk [vmem:[%s12248_s11 + $0x70] sm:$0xff] %vm13639_vm8, %v6709_v29  ;;  %vm13652_vm2 = vmmov %vm13428_vm0 }
 0x742   : > { %6742 = vst.msk [vmem:[%s12248_s11 + $0x78] sm:$0xff] %vm13640_vm15, %v6710_v28  ;;  %vm13653_vm9 = vmmov %vm13428_vm0 }
 0x743   : > { %6743 = vst.msk [vmem:[%s12248_s11 + $0x80] sm:$0xff] %vm13641_vm11, %v6711_v14  ;;  %vm13654_vm8 = vmmov %vm13428_vm0 }
 0x744   : > { %6744 = vst.msk [vmem:[%s12248_s11 + $0x88] sm:$0xff] %vm13642_vm12, %v6712_v41 }
 0x745   : > { %6745 = vst.msk [vmem:[%s12248_s11 + $0x90] sm:$0xff] %vm13643_vm3, %v6713_v21 }
 0x746   : > { %6746 = vst.msk [vmem:[%s12248_s11 + $0x98] sm:$0xff] %vm13644_vm4, %v6714_v54 }
 0x747   : > { %6747 = vst.msk [vmem:[%s12248_s11 + $0xa0] sm:$0xff] %vm13428_vm0, %v6715_v40 }
 0x748   : > { %6748 = vst.msk [vmem:[%s12248_s11 + $0xa8] sm:$0xff] %vm13645_vm14, %v6716_v44 }
 0x749   : > { %6749 = vst.msk [vmem:[%s12248_s11 + $0xb0] sm:$0xff] %vm13646_vm1, %v6717_v31 }
 0x74a   : > { %6750 = vst.msk [vmem:[%s12248_s11 + $0xb8] sm:$0xff] %vm13647_vm6, %v6718_v7 }
 0x74b   : > { %6751 = vst.msk [vmem:[%s12248_s11 + $0xc0] sm:$0xff] %vm13648_vm13, %v6719_v9 }
 0x74c   : > { %6752 = vst.msk [vmem:[%s12248_s11 + $0xc8] sm:$0xff] %vm13649_vm10, %v6720_v58 }
 0x74d   : > { %6753 = vst.msk [vmem:[%s12248_s11 + $0xd0] sm:$0xff] %vm13650_vm5, %v6721_v11 }
 0x74e   : > { %6754 = vst.msk [vmem:[%s12248_s11 + $0xd8] sm:$0xff] %vm13651_vm7, %v6722_v37 }
 0x74f   : > { %6755 = vst.msk [vmem:[%s12248_s11 + $0xe0] sm:$0xff] %vm13652_vm2, %v6723_v5 }
 0x750   : > { %6757 = vst.msk [vmem:[%s12248_s11 + $0xf0] sm:$0xff] %vm13653_vm9, %v6725_v20 }
 0x751   : > { %6758 = vst.msk [vmem:[%s12248_s11 + $0xf8] sm:$0xff] %vm13654_vm8, %v6726_v38 }
 0x752   : > { %8938 = shalt.err (!%p8935_p4)
}
 0x753   : > { %s8939_s21 = scalar_lea.hbm %s12469_s24, 4096  ;;  %s8943_s28 = scalar_lea.hbm %s12559_s10, 8192 }
 0x754   : > { %p8940_p5 = scmp.ne.s32.totalorder %s12469_s24, %s8939_s21  ;;  %p8944_p1 = scmp.lt.u32.totalorder %s12469_s24, %s12559_s10 }
 0x755   : > { %p8945_p3 = scmp.lt.u32.totalorder %s8943_s28, %s8939_s21  ;;  %p8947_p11 = scmp.lt.u32.totalorder %s8939_s21, %s12469_s24 }
 0x756   : > { %p8941_p7 = pnand %p8940_p5, %p13655_p12 }
 0x757   : > { %p8946_p6 = por %p8945_p3, %p8944_p1 }
 0x758   : > { %p8942_p9 = pneg %p8941_p7 }
 0x759   : > { %p8948_p13 = por %p8947_p11, %p8946_p6 }
 0x75b   : > { %p8949_p8 = pnand %p8948_p13, %p8942_p9 }
 0x75d   : > { %8952 = shalt.err (!%p8949_p8)
}
 0x75e   : > { %s8997_s23 = smov 128   ;;  %s8998_s20 = smov 8  }
 0x75f   : > { %8775 = dma.vmem_to_hbm [thread:$0]  (%p13655_p12), %s12473_s29, 4096, %s12469_s24, %s6760_s17, %s8997_s23, %s8997_s23, %s8998_s20  }
 0x760 PF: > { %s6788_s30 = sand.u32 1, %s8979_s13   ;;  %p13656_p10 = scmp.ne.s32.totalorder %s12764_s26, 0 }
 0x761   : > { %p13657_p0 = scmp.ge.s32.totalorder %s8991_s16, 2  ;;  %s6789_s21 = scalar_lea.sflag [#allocation4], %s6788_s30 }
 0x763   : > { %p8782_p2 = pnand %p13657_p0, %p13656_p10 }
 0x765   : > { %8974 = dma.done.wait (!%p8782_p2), %s6789_s21, 4096  }
 0x766   : > { %8976 = vsyncadd (!%p8782_p2), %s6789_s21, 4294963200  ;;  %s13658_s11 = sld [smem:[#allocation8_spill]]  ;;  %p23_p4 = scmp.ge.s32.totalorder %s9079_s19, 4  }
 0x767   : > { %s13659_s13 = smov %s8983_s14  ;;  %s13660_s14 = smov %s8987_s15 }
 0x768   : > { %s13662_s16 = smov %s9079_s19  ;;  %25 = sbr.rel (!%p23_p4) target bundleno = 5 (0x5), region = 130 }
 0x76c   : > { %s13661_s15 = smov %s13658_s11 }
 0x76f   :  { %6794 = vsyncpa [#allocation3], 1 }
 0x770   :  { %6796 = vsyncpa [#allocation3 + $0x1], 1 }
 0x771   :  { %6797 = vsyncpa [#allocation4], 1 }
 0x772   :  { %6799 = vsyncpa [#allocation4 + $0x1], 1 }

</bundles_post_ra>
